<compile_context>
chip_gen: v6e
topology: v6e:2x2x1
jax: 0.10.0
libtpu: 0.0.40
codegen_flags: <defaults>
</compile_context>

<pallas_src>
import jax
import jax.numpy as jnp
from jax.experimental import pallas as pl
from jax.experimental.pallas import tpu as pltpu


def _scale_bias_relu_kernel(x_ref, wb_ref, o_ref):
    # x_ref : (1, 1, ts)   spatial values of the single input plane (lane-major)
    # wb_ref: (tc, 2)      [:, 0] = conv_w * bn_scale, [:, 1] = folded bn bias
    # o_ref : (1, tc, ts)  output block in NCHW order (channels x spatial)
    x = x_ref[0]                       # (1, ts)
    w = wb_ref[:, 0:1]                 # (tc, 1)
    b = wb_ref[:, 1:2]                 # (tc, 1)
    y = w * x + b                      # (tc, ts) pure VPU broadcast mul-add
    o_ref[0] = jnp.maximum(y, 0.0).astype(o_ref.dtype)


def _default_ts_cap():
    # 1024-wide spatial tiles fit the 32 MiB default scoped VMEM of v6e / v7x;
    # stay at 512 on v5e (16 MiB default scoped limit) and anything unknown.
    try:
        kind = jax.devices()[0].device_kind.lower()
    except Exception:
        return 512
    if "v6" in kind or "v7" in kind or "trillium" in kind:
        return 1024
    return 512


def conv1x1_bn_relu_nchw(x_flat, wb, *, ts_cap=None, out_dtype=None):
    """x_flat: [N, 1, S] (S = H*W), wb: [Cout, 2] f32  ->  [N, Cout, S] (out_dtype)."""
    N, _, S = x_flat.shape
    Cout = wb.shape[0]
    assert Cout % 8 == 0
    if ts_cap is None:
        ts_cap = _default_ts_cap()
    if out_dtype is None:
        out_dtype = x_flat.dtype

    # Spatial tile: full extent when it fits (exact block, no masking); otherwise
    # lane-dense ts_cap-wide tiles, the ragged last tile handled by masked stores.
    ts = S if S <= ts_cap else ts_cap
    tc = Cout

    # Megacore heuristic: >= 4 parallel grid steps whenever possible so both v7x
    # TensorCores get >= 2 steps each (restores per-core DMA/compute overlap).
    def n_steps(ts_, tc_):
        return N * pl.cdiv(S, ts_) * (Cout // tc_)

    # Prefer splitting the spatial axis (weight block stays resident) ...
    while n_steps(ts, tc) < 4:
        half = (ts // 2) // 128 * 128          # keep ts a lane multiple
        if half < 128:
            break
        ts = half
    # ... and only split channels for very small spatial extents.
    while n_steps(ts, tc) < 4 and tc % 16 == 0 and tc > 8:
        tc //= 2

    grid = (N, Cout // tc, pl.cdiv(S, ts))

    out_bytes = jnp.dtype(out_dtype).itemsize
    cost = pl.CostEstimate(
        flops=3 * N * Cout * S,
        transcendentals=0,
        bytes_accessed=(N * Cout * S * out_bytes
                        + N * S * x_flat.dtype.itemsize
                        + 2 * Cout * wb.dtype.itemsize),
    )

    return pl.pallas_call(
        _scale_bias_relu_kernel,
        out_shape=jax.ShapeDtypeStruct((N, Cout, S), out_dtype),
        grid_spec=pltpu.PrefetchScalarGridSpec(
            num_scalar_prefetch=0,
            grid=grid,
            in_specs=[
                pl.BlockSpec((1, 1, ts), lambda n, c, s: (n, 0, s)),
                pl.BlockSpec((tc, 2), lambda n, c, s: (c, 0)),
            ],
            out_specs=pl.BlockSpec((1, tc, ts), lambda n, c, s: (n, c, s)),
        ),
        compiler_params=pltpu.CompilerParams(
            dimension_semantics=("parallel", "parallel", "parallel"),
        ),
        cost_estimate=cost,
    )(x_flat, wb)


def change_attention_size_forward(x_nchw, conv_w, bn_gamma, bn_beta,
                                  bn_mean, bn_var, bn_eps=1e-5, out_dtype=None):
    """Forward pass matching Change_Attention_Size.forward (BN in inference form).

    x_nchw : [N, 1, H, W]
    conv_w : [Cout, 1, 1, 1]  (PyTorch Conv2d weight layout)
    returns: [N, Cout, H, W]
    """
    # TODO(synk): training-mode BatchNorm (batch statistics + running-stat update)
    # is not implemented; this is the inference/eval form with running mean/var.
    N, Cin, H, W = x_nchw.shape
    assert Cin == 1, "Change_Attention_Size has a single input channel"
    Cout = conv_w.shape[0]

    # Fold BatchNorm into a per-output-channel affine, fold the scale into the
    # (scalar-per-channel) conv weight, and fuse weight + bias into one operand.
    inv_std = 1.0 / jnp.sqrt(bn_var.astype(jnp.float32) + bn_eps)
    scale = bn_gamma.astype(jnp.float32) * inv_std                    # [Cout]
    bias = bn_beta.astype(jnp.float32) - bn_mean.astype(jnp.float32) * scale
    w_fold = conv_w.reshape(Cout).astype(jnp.float32) * scale         # [Cout]
    wb = jnp.stack([w_fold, bias], axis=1)                            # [Cout, 2]

    # NCHW with Cin==1: [N,1,H,W] -> [N,1,H*W] is a pure reshape (no transpose).
    x_flat = x_nchw.reshape(N, 1, H * W)

    y = conv1x1_bn_relu_nchw(x_flat, wb, out_dtype=out_dtype)         # [N, Cout, H*W]
    return y.reshape(N, Cout, H, W)                                   # NCHW directly


if __name__ == "__main__":
    key = jax.random.PRNGKey(0)
    k_x, k_w = jax.random.split(key)

    N, Cin, H, W = 2, 1, 16, 16
    Cout = 2048

    x = jax.random.normal(k_x, (N, Cin, H, W), dtype=jnp.float32)

    # Deterministic "kaiming-uniform-like" conv weight init (synthetic).
    fan_in = Cin * 1 * 1
    bound = 1.0 / (fan_in ** 0.5)
    conv_w = jax.random.uniform(k_w, (Cout, Cin, 1, 1),
                                minval=-bound, maxval=bound, dtype=jnp.float32)

    # BatchNorm2d default init (inference form).
    bn_gamma = jnp.ones((Cout,), jnp.float32)
    bn_beta = jnp.zeros((Cout,), jnp.float32)
    bn_mean = jnp.zeros((Cout,), jnp.float32)
    bn_var = jnp.ones((Cout,), jnp.float32)

    out = change_attention_size_forward(x, conv_w, bn_gamma, bn_beta,
                                        bn_mean, bn_var)
    out = jax.block_until_ready(out)

    # Reference check in plain JAX.
    inv_std = 1.0 / jnp.sqrt(bn_var + 1e-5)
    ref = jnp.einsum('nchw,oc->nohw', x, conv_w.reshape(Cout, Cin))
    ref = ref * (bn_gamma * inv_std)[None, :, None, None] + \
          (bn_beta - bn_mean * bn_gamma * inv_std)[None, :, None, None]
    ref = jnp.maximum(ref, 0.0)
    assert out.shape == (N, Cout, H, W)
    assert jnp.allclose(out, ref, atol=1e-5, rtol=1e-5)

    print("KERNEL_OK")
</pallas_src>

<mosaic_0001>
module attributes {stable_mosaic.version = 11 : i64} {
  func.func @_scale_bias_relu_kernel(%arg0: i32, %arg1: i32, %arg2: i32, %arg3: memref<1x1x128xf32, #tpu.memory_space<vmem>>, %arg4: memref<2048x2xf32, #tpu.memory_space<vmem>>, %arg5: memref<1x2048x128xf32, #tpu.memory_space<vmem>>) attributes {dimension_semantics = [#tpu.dimension_semantics<parallel>, #tpu.dimension_semantics<parallel>, #tpu.dimension_semantics<parallel>], iteration_bounds = array<i64: 2, 1, 2>, scalar_prefetch = 0 : i64, scratch_operands = 0 : i64, tpu.core_type = #tpu.core_type<tc>, window_params = [{transform_indices = @transform_0, window_bounds = array<i64: 1, 1, 128>}, {transform_indices = @transform_1, window_bounds = array<i64: 2048, 2>}, {transform_indices = @transform_2, window_bounds = array<i64: 1, 2048, 128>}]} {
    %c0 = arith.constant 0 : index
    %c0_0 = arith.constant 0 : index
    %c0_1 = arith.constant 0 : index
    %0 = vector.load %arg3[%c0, %c0_0, %c0_1] : memref<1x1x128xf32, #tpu.memory_space<vmem>>, vector<1x1x128xf32>
    %1 = vector.shape_cast %0 : vector<1x1x128xf32> to vector<1x128xf32>
    %c0_2 = arith.constant 0 : index
    %c0_3 = arith.constant 0 : index
    %2 = vector.load %arg4[%c0_2, %c0_3] : memref<2048x2xf32, #tpu.memory_space<vmem>>, vector<2048x1xf32>
    %c0_4 = arith.constant 0 : index
    %c1 = arith.constant 1 : index
    %3 = vector.load %arg4[%c0_4, %c1] : memref<2048x2xf32, #tpu.memory_space<vmem>>, vector<2048x1xf32>
    %4 = vector.broadcast %2 : vector<2048x1xf32> to vector<2048x128xf32>
    %5 = vector.broadcast %1 : vector<1x128xf32> to vector<2048x128xf32>
    %6 = arith.mulf %4, %5 : vector<2048x128xf32>
    %7 = vector.broadcast %3 : vector<2048x1xf32> to vector<2048x128xf32>
    %8 = arith.addf %6, %7 : vector<2048x128xf32>
    %cst = arith.constant 0.000000e+00 : f32
    %9 = vector.broadcast %cst : f32 to vector<2048x128xf32>
    %10 = arith.maximumf %8, %9 : vector<2048x128xf32>
    %c0_5 = arith.constant 0 : index
    %c0_6 = arith.constant 0 : index
    %c0_7 = arith.constant 0 : index
    %11 = vector.load %arg5[%c0_5, %c0_6, %c0_7] : memref<1x2048x128xf32, #tpu.memory_space<vmem>>, vector<1x2048x128xf32>
    %12 = vector.shape_cast %11 : vector<1x2048x128xf32> to vector<2048x128xf32>
    %13 = vector.shape_cast %10 : vector<2048x128xf32> to vector<1x2048x128xf32>
    tpu.vector_store %arg5[%c0_5, %c0_6, %c0_7], %13 {strides = array<i32>} : memref<1x2048x128xf32, #tpu.memory_space<vmem>>, vector<1x2048x128xf32>,
    return
  }
  func.func @transform_0(%arg0: i32, %arg1: i32, %arg2: i32) -> (i32, i32, i32) {
    %c0_i32 = arith.constant 0 : i32
    %c0_i32_0 = arith.constant 0 : i32
    return %arg0, %c0_i32, %arg2 : i32, i32, i32
  }
  func.func @transform_1(%arg0: i32, %arg1: i32, %arg2: i32) -> (i32, i32) {
    %c0_i32 = arith.constant 0 : i32
    %c0_i32_0 = arith.constant 0 : i32
    return %arg1, %c0_i32 : i32, i32
  }
  func.func @transform_2(%arg0: i32, %arg1: i32, %arg2: i32) -> (i32, i32, i32) {
    %c0_i32 = arith.constant 0 : i32
    return %arg0, %arg1, %arg2 : i32, i32, i32
  }
}

</mosaic_0001>

<bundles_post_ra>
// kernel: tpu_custom_call.1
= control target key start
LH: loop header
LB: loop body
LE: loop exit
PB: predicated region body
PF: predicated region fallthrough
CT: control target
= control target key end

     0   :  { %7 = vsyncpa [#allocation3], 0  ;;  %s7429_s0 = inlined_call_operand.hbm [shape: f32[2,1,256], index: 0, kind: input, shape index: {}]   ;;  %s7430_s1 = inlined_call_operand.vmem [shape: f32[2048,2], index: 1, kind: input, shape index: {}]   ;;  %s7431_s2 = inlined_call_operand.hbm [shape: f32[2,2048,256], index: 2, kind: output, shape index: {}]  }
   0x1   :  { %9 = vsyncpa [#allocation3 + $0x1], 0 }
   0x2   :  { %10 = vsyncpa [#allocation4], 0 }
   0x3   :  { %12 = vsyncpa [#allocation4 + $0x1], 0  ;;  %s4428_s9 = smov 0   ;;  %s4430_s10 = smov 0  }
   0x4   :  { %s4432_s11 = smov 0   ;;  %s4434_s12 = smov 0  }
   0x5   :  { %s4436_s13 = smov 0   ;;  %s4438_s14 = smov 0  }
   0x6   :  { %s4440_s15 = smov 0   ;;  %s4442_s16 = smov 0  }
   0x7 LB: > { %s3920_s17 = sadd.s32 4294967295, %s4404_s16   ;;  %s3921_s18 = sadd.s32 4294967294, %s4404_s16   ;;  %s4404_s16 = sphi %s4442_s16, %s18_s16   ;;  %s4400_s15 = sphi %s4440_s15, %s7850_s15   ;;  %s4396_s14 = sphi %s4438_s14, %s7849_s14   ;;  %s4392_s13 = sphi %s4436_s13, %s7848_s13   ;;  %s4388_s12 = sphi %s4434_s12, %s7847_s12   ;;  %s4384_s11 = sphi %s4432_s11, %s7846_s11   ;;  %s4380_s10 = sphi %s4430_s10, %s7845_s10   ;;  %s4376_s9 = sphi %s4428_s9, %s7844_s9  }
   0x8   : > { %s30_s19 = sadd.s32 1, %s4396_s14  ;;  %s37_s20 = sadd.s32 1, %s4400_s15 }
   0x9   : > { %p31_p0 = scmp.ge.s32.totalorder %s30_s19, 2  ;;  %s46_s21 = sadd.s32 1, %s4384_s11 }
   0xa   : > { %p53_p1 = scmp.ne.s32.totalorder %s4384_s11, %s4380_s10  ;;  %p54_p2 = scmp.eq.s32.totalorder %s4404_s16, 0 }
   0xb   : > { %s7852_s19 = smov (%p31_p0, %s30_s19), 0  ;;  %s7854_s20 = smov (!%p31_p0, %s37_s20), %s4400_s15 }
   0xc   : > { %s42_s22 = ssub.s32 %s4396_s14, %s7852_s19  ;;  %p4481_p3 = por %p54_p2, %p53_p1 }
   0xd   : > { %p39_p4 = scmp.ge.s32.totalorder %s7854_s20, 2  ;;  %p59_p5 = scmp.ne.s32.totalorder %s4380_s10, %s4376_s9 }
   0xe   : > { %p60_p6 = scmp.eq.s32.totalorder %s3920_s17, 0  ;;  %p113_p7 = scmp.eq.s32.totalorder %s3920_s17, 3 }
   0xf   : > { %s7856_s20 = smov (%p39_p4, %s7854_s20), 0  ;;  %p119_p10 = scmp.eq.s32.totalorder %s3921_s18, 3 }
  0x10   : > { %p4489_p8 = por %p60_p6, %p59_p5  ;;  %p4493_p9 = por %p113_p7, %p53_p1 }
  0x11   : > { %s41_s26 = ssub.s32 %s4400_s15, %s7856_s20  ;;  %p4499_p12 = por %p119_p10, %p59_p5 }
  0x12   : > { %s43_s27 = sor.u32 %s42_s22, %s41_s26  ;;  %p3947_p13 = scmp.lt.s32.totalorder %s4404_s16, 4 }
  0x13   : > { %p44_p11 = scmp.eq.s32.totalorder %s43_s27, 0  ;;  %s148_s29 = sand.u32 1, %s4384_s11  }
  0x14   : > { %s7435_s28 = scalar_select %p4499_p12, 1, 0 }
  0x15   : > { %s4506_s30 = scalar_select %p44_p11, %s4384_s11, %s46_s21  }
  0x16   : > { %s3925_s3 = sshll.u32 %s4400_s15, 1  ;;  %s151_s4 = scalar_lea.vmem [#allocation2], %s148_s29 }
  0x17   : > { %s160_s5 = sshll.u32 %s151_s4, 4  ;;  %s156_s6 = sadd.s32 %s4396_s14, %s3925_s3  ;;  %s161_s5 = int_to_ptr.vmem [resolvable:$true] %s160_s5 }
  0x18   : > { %s3926_s7 = sshll.u32 %s156_s6, 4  ;;  %p4512_p0 = pnand %p3947_p13, %p4481_p3 }
  0x19   : > { %s158_s22 = scalar_lea.hbm %s7429_s0, %s3926_s7  ;;  %p3927_p1 = scmp.ge.s32.totalorder %s4404_s16, 1 }
  0x1a   : > { %p165_p2 = scmp.lt.s32.totalorder %s4404_s16, 5  ;;  %s149_s21 = scalar_lea.sflag [#allocation3], %s148_s29 }
  0x1b   : > { %p4282_p4 = pneg %p4512_p0  ;;  %s4293_s26 = scalar_lea.vmem %s161_s5, 16 }
  0x1c   : > { %p4294_p5 = scmp.ne.s32.totalorder %s161_s5, %s4293_s26  ;;  %s4406_s27 = smov [#allocation2]  }
  0x1d   : > { %s4298_s23 = sshll.u32 %s4406_s27, 4  ;;  %s4299_s23 = int_to_ptr.vmem [resolvable:$false] %s4298_s23 }
  0x1e   : > { %p4296_p6 = pnand %p4294_p5, %p4282_p4  ;;  %s4300_s3 = scalar_lea.vmem %s4299_s23, 32 }
  0x1f   : > { %p4301_p3 = scmp.lt.s32.totalorder %s161_s5, %s4299_s23  ;;  %p4302_p10 = scmp.lt.s32.totalorder %s4300_s3, %s4293_s26 }
  0x20   : > { %p4297_p7 = pneg %p4296_p6 }
  0x21   : > { %p4303_p11 = por %p4302_p10, %p4301_p3 }
  0x23   : > { %p4304_p13 = pnand %p4303_p11, %p4297_p7 }
  0x25   : > { %4307 = shalt.err (!%p4304_p13)
}
  0x26   : > { %3942 = dma.hbm_to_vmem [thread:$0]  (!%p4512_p0), %s158_s22, 16, %s161_s5, %s149_s21  }
  0x27   : > { %p166_p12 = pnand %p3927_p1, %p165_p2 }
  0x29   : > { %169 = sbr.rel (%p166_p12) target bundleno = 1215 (0x4bf), region = 28 }
  0x2e   : > { %s4530_s29 = sand.u32 1, %s4380_s10  }
  0x2f   : > { %s172_s4 = scalar_lea.sflag [#allocation3], %s4530_s29  ;;  %s4534_s6 = scalar_lea.vmem [#allocation2], %s4530_s29 }
  0x30   : > { %4367 = dma.done.wait (%p4489_p8), %s172_s4, 16  }
  0x31   : > { %4369 = vsyncadd (%p4489_p8), %s172_s4, 4294967280  ;;  %v4407_v0 = vmov 0   ;;  %v209_v1 = vld [vmem:[%s7430_s1 + $0x10] sm:$0xff]  ;;  %v207_v2 = vld [vmem:[%s7430_s1] sm:$0xff]  ;;  %s3928_s4 = sshll.u32 %s4530_s29, 11  ;;  %s3931_s5 = sshll.u32 %s4392_s13, 9 }
  0x32   : > { %4019 = vset.pattern.permute.xlu1 %v4407_v0  ;;  %4018 = vset.pattern.permute.xlu0 %v4407_v0  ;;  %v210_v3 = vld [vmem:[%s7430_s1 + $0x18] sm:$0xff]  ;;  %v208_v4 = vld [vmem:[%s7430_s1 + $0x8] sm:$0xff]  ;;  %v211_v6 = vld [vmem:[%s7430_s1 + $0x20] sm:$0xff]  ;;  %s6024_s18 = scalar_lea.vmem [#allocation5], %s3928_s4  ;;  %s3812_s7 = sadd.s32 %s4388_s12, %s3931_s5 }
  0x33   : > { %475 = vperm.xlu1 %4019, %v209_v1   ;;  %465 = vperm.xlu0 %4018, %v207_v2   ;;  %v212_v5 = vld [vmem:[%s7430_s1 + $0x28] sm:$0xff]  ;;  %v214_v7 = vld [vmem:[%s7430_s1 + $0x38] sm:$0xff]  ;;  %v213_v8 = vld [vmem:[%s7430_s1 + $0x30] sm:$0xff]  ;;  %s3932_s13 = sshll.u32 %s3812_s7, 7  ;;  %s3815_s12 = sshll.u32 %s6024_s18, 4  ;;  %s7374_s12 = int_to_ptr.vmem [resolvable:$true] %s3815_s12 }
  0x34   : > { %v216_v9 = vld [vmem:[%s7430_s1 + $0x48] sm:$0xff]  ;;  %v215_v10 = vld [vmem:[%s7430_s1 + $0x40] sm:$0xff]  ;;  %v218_v11 = vld [vmem:[%s7430_s1 + $0x58] sm:$0xff]  ;;  %s7372_s22 = scalar_lea.hbm %s7431_s2, %s3932_s13  ;;  %s3798_s21 = scalar_lea.sflag [#allocation4], %s4530_s29 }
  0x35   : > { %v217_v12 = vld [vmem:[%s7430_s1 + $0x50] sm:$0xff]  ;;  %v220_v13 = vld [vmem:[%s7430_s1 + $0x68] sm:$0xff]  ;;  %v219_v14 = vld [vmem:[%s7430_s1 + $0x60] sm:$0xff]  ;;  %s4308_s24 = scalar_lea.vmem %s7374_s12, 32768  ;;  %s4409_s26 = smov [#allocation5]  }
  0x36   : > { %v222_v15 = vld [vmem:[%s7430_s1 + $0x78] sm:$0xff]  ;;  %v221_v16 = vld [vmem:[%s7430_s1 + $0x70] sm:$0xff]  ;;  %v224_v17 = vld [vmem:[%s7430_s1 + $0x88] sm:$0xff]  ;;  %p4309_p8 = scmp.ne.s32.totalorder %s7374_s12, %s4308_s24  ;;  %s4312_s27 = sshll.u32 %s4409_s26, 4  ;;  %s4313_s27 = int_to_ptr.vmem [resolvable:$false] %s4312_s27 }
  0x37   : > { %480 = vperm.xlu1 %4019, %v210_v3   ;;  %470 = vperm.xlu0 %4018, %v208_v4   ;;  %v223_v18 = vld [vmem:[%s7430_s1 + $0x80] sm:$0xff]  ;;  %v226_v19 = vld [vmem:[%s7430_s1 + $0x98] sm:$0xff]  ;;  %v225_v20 = vld [vmem:[%s7430_s1 + $0x90] sm:$0xff]  ;;  %s4314_s23 = scalar_lea.vmem %s4313_s27, 65536  ;;  %p4315_p1 = scmp.lt.s32.totalorder %s7374_s12, %s4313_s27 }
  0x38   : > { %v228_v21 = vld [vmem:[%s7430_s1 + $0xa8] sm:$0xff]  ;;  %v227_v22 = vld [vmem:[%s7430_s1 + $0xa0] sm:$0xff]  ;;  %v230_v23 = vld [vmem:[%s7430_s1 + $0xb8] sm:$0xff]  ;;  %p4310_p12 = pnand %p4309_p8, %p4493_p9  ;;  %p4316_p2 = scmp.lt.s32.totalorder %s4314_s23, %s4308_s24 }
  0x39   : > { %v229_v24 = vld [vmem:[%s7430_s1 + $0xb0] sm:$0xff]  ;;  %v232_v25 = vld [vmem:[%s7430_s1 + $0xc8] sm:$0xff]  ;;  %v231_v26 = vld [vmem:[%s7430_s1 + $0xc0] sm:$0xff] }
  0x3a   : > { %v234_v27 = vld [vmem:[%s7430_s1 + $0xd8] sm:$0xff]  ;;  %v233_v28 = vld [vmem:[%s7430_s1 + $0xd0] sm:$0xff]  ;;  %v236_v29 = vld [vmem:[%s7430_s1 + $0xe8] sm:$0xff]  ;;  %p4311_p0 = pneg %p4310_p12  ;;  %p4317_p4 = por %p4316_p2, %p4315_p1 }
  0x3b   : > { %490 = vperm.xlu1 %4019, %v212_v5   ;;  %485 = vperm.xlu0 %4018, %v211_v6   ;;  %v235_v30 = vld [vmem:[%s7430_s1 + $0xe0] sm:$0xff]  ;;  %v238_v31 = vld [vmem:[%s7430_s1 + $0xf8] sm:$0xff]  ;;  %v237_v32 = vld [vmem:[%s7430_s1 + $0xf0] sm:$0xff] }
  0x3c   : > { %v240_v33 = vld [vmem:[%s7430_s1 + $0x108] sm:$0xff]  ;;  %v239_v34 = vld [vmem:[%s7430_s1 + $0x100] sm:$0xff]  ;;  %v242_v35 = vld [vmem:[%s7430_s1 + $0x118] sm:$0xff]  ;;  %p4318_p5 = pnand %p4317_p4, %p4311_p0 }
  0x3d   : > { %v241_v36 = vld [vmem:[%s7430_s1 + $0x110] sm:$0xff]  ;;  %v244_v37 = vld [vmem:[%s7430_s1 + $0x128] sm:$0xff]  ;;  %v243_v38 = vld [vmem:[%s7430_s1 + $0x120] sm:$0xff] }
  0x3e   : > { %v246_v39 = vld [vmem:[%s7430_s1 + $0x138] sm:$0xff]  ;;  %v245_v40 = vld [vmem:[%s7430_s1 + $0x130] sm:$0xff]  ;;  %v248_v41 = vld [vmem:[%s7430_s1 + $0x148] sm:$0xff] }
  0x3f   : > { %500 = vperm.xlu1 %4019, %v214_v7   ;;  %495 = vperm.xlu0 %4018, %v213_v8   ;;  %v247_v42 = vld [vmem:[%s7430_s1 + $0x140] sm:$0xff]  ;;  %v250_v43 = vld [vmem:[%s7430_s1 + $0x158] sm:$0xff]  ;;  %v249_v44 = vld [vmem:[%s7430_s1 + $0x150] sm:$0xff] }
  0x40   : > { %v252_v45 = vld [vmem:[%s7430_s1 + $0x168] sm:$0xff]  ;;  %v251_v46 = vld [vmem:[%s7430_s1 + $0x160] sm:$0xff]  ;;  %v254_v47 = vld [vmem:[%s7430_s1 + $0x178] sm:$0xff] }
  0x41   : > { %v253_v48 = vld [vmem:[%s7430_s1 + $0x170] sm:$0xff]  ;;  %v256_v49 = vld [vmem:[%s7430_s1 + $0x188] sm:$0xff]  ;;  %v255_v50 = vld [vmem:[%s7430_s1 + $0x180] sm:$0xff] }
  0x42   : > { %v258_v51 = vld [vmem:[%s7430_s1 + $0x198] sm:$0xff]  ;;  %v257_v52 = vld [vmem:[%s7430_s1 + $0x190] sm:$0xff]  ;;  %v260_v53 = vld [vmem:[%s7430_s1 + $0x1a8] sm:$0xff] }
  0x43   : > { %510 = vperm.xlu1 %4019, %v216_v9   ;;  %505 = vperm.xlu0 %4018, %v215_v10   ;;  %v259_v54 = vld [vmem:[%s7430_s1 + $0x1a0] sm:$0xff]  ;;  %v262_v55 = vld [vmem:[%s7430_s1 + $0x1b8] sm:$0xff]  ;;  %v261_v56 = vld [vmem:[%s7430_s1 + $0x1b0] sm:$0xff] }
  0x44   : > { %v264_v57 = vld [vmem:[%s7430_s1 + $0x1c8] sm:$0xff]  ;;  %v263_v58 = vld [vmem:[%s7430_s1 + $0x1c0] sm:$0xff]  ;;  %v266_v59 = vld [vmem:[%s7430_s1 + $0x1d8] sm:$0xff] }
  0x45   : > { %v265_v60 = vld [vmem:[%s7430_s1 + $0x1d0] sm:$0xff]  ;;  %v268_v61 = vld [vmem:[%s7430_s1 + $0x1e8] sm:$0xff]  ;;  %v267_v62 = vld [vmem:[%s7430_s1 + $0x1e0] sm:$0xff] }
  0x46   : > { %v270_v63 = vld [vmem:[%s7430_s1 + $0x1f8] sm:$0xff]  ;;  %v269_v0 = vld [vmem:[%s7430_s1 + $0x1f0] sm:$0xff]  ;;  %v272_v3 = vld [vmem:[%s7430_s1 + $0x208] sm:$0xff] }
  0x47   : > { %520 = vperm.xlu1 %4019, %v218_v11   ;;  %515 = vperm.xlu0 %4018, %v217_v12   ;;  %v271_v4 = vld [vmem:[%s7430_s1 + $0x200] sm:$0xff]  ;;  %v274_v7 = vld [vmem:[%s7430_s1 + $0x218] sm:$0xff]  ;;  %v273_v8 = vld [vmem:[%s7430_s1 + $0x210] sm:$0xff] }
  0x48   : > { %v276_v11 = vld [vmem:[%s7430_s1 + $0x228] sm:$0xff]  ;;  %v275_v12 = vld [vmem:[%s7430_s1 + $0x220] sm:$0xff] }
  0x4b   : > { %530 = vperm.xlu1 %4019, %v220_v13   ;;  %525 = vperm.xlu0 %4018, %v219_v14  }
  0x4f   : > { %540 = vperm.xlu1 %4019, %v222_v15   ;;  %535 = vperm.xlu0 %4018, %v221_v16   ;;  %v278_v15 = vld [vmem:[%s7430_s1 + $0x238] sm:$0xff]  ;;  %v277_v16 = vld [vmem:[%s7430_s1 + $0x230] sm:$0xff] }
  0x53   : > { %550 = vperm.xlu1 %4019, %v224_v17   ;;  %545 = vperm.xlu0 %4018, %v223_v18  }
  0x57   : > { %560 = vperm.xlu1 %4019, %v226_v19   ;;  %555 = vperm.xlu0 %4018, %v225_v20   ;;  %v280_v19 = vld [vmem:[%s7430_s1 + $0x248] sm:$0xff]  ;;  %v279_v20 = vld [vmem:[%s7430_s1 + $0x240] sm:$0xff] }
  0x5b   : > { %570 = vperm.xlu1 %4019, %v228_v21   ;;  %565 = vperm.xlu0 %4018, %v227_v22  }
  0x5f   : > { %580 = vperm.xlu1 %4019, %v230_v23   ;;  %575 = vperm.xlu0 %4018, %v229_v24   ;;  %v282_v23 = vld [vmem:[%s7430_s1 + $0x258] sm:$0xff]  ;;  %v281_v24 = vld [vmem:[%s7430_s1 + $0x250] sm:$0xff] }
  0x63   : > { %590 = vperm.xlu1 %4019, %v232_v25   ;;  %585 = vperm.xlu0 %4018, %v231_v26  }
  0x67   : > { %600 = vperm.xlu1 %4019, %v234_v27   ;;  %595 = vperm.xlu0 %4018, %v233_v28   ;;  %v284_v27 = vld [vmem:[%s7430_s1 + $0x268] sm:$0xff]  ;;  %v283_v28 = vld [vmem:[%s7430_s1 + $0x260] sm:$0xff] }
  0x6b   : > { %610 = vperm.xlu1 %4019, %v236_v29   ;;  %605 = vperm.xlu0 %4018, %v235_v30  }
  0x6f   : > { %620 = vperm.xlu1 %4019, %v238_v31   ;;  %615 = vperm.xlu0 %4018, %v237_v32   ;;  %v286_v31 = vld [vmem:[%s7430_s1 + $0x278] sm:$0xff]  ;;  %v285_v32 = vld [vmem:[%s7430_s1 + $0x270] sm:$0xff] }
  0x73   : > { %630 = vperm.xlu1 %4019, %v240_v33   ;;  %625 = vperm.xlu0 %4018, %v239_v34  }
  0x77   : > { %640 = vperm.xlu1 %4019, %v242_v35   ;;  %635 = vperm.xlu0 %4018, %v241_v36   ;;  %v288_v35 = vld [vmem:[%s7430_s1 + $0x288] sm:$0xff]  ;;  %v287_v36 = vld [vmem:[%s7430_s1 + $0x280] sm:$0xff] }
  0x7b   : > { %650 = vperm.xlu1 %4019, %v244_v37   ;;  %645 = vperm.xlu0 %4018, %v243_v38  }
  0x7f   : > { %660 = vperm.xlu1 %4019, %v246_v39   ;;  %655 = vperm.xlu0 %4018, %v245_v40   ;;  %v290_v39 = vld [vmem:[%s7430_s1 + $0x298] sm:$0xff]  ;;  %v289_v40 = vld [vmem:[%s7430_s1 + $0x290] sm:$0xff] }
  0x83   : > { %670 = vperm.xlu1 %4019, %v248_v41   ;;  %665 = vperm.xlu0 %4018, %v247_v42  }
  0x87   : > { %680 = vperm.xlu1 %4019, %v250_v43   ;;  %675 = vperm.xlu0 %4018, %v249_v44   ;;  %v292_v43 = vld [vmem:[%s7430_s1 + $0x2a8] sm:$0xff]  ;;  %v291_v44 = vld [vmem:[%s7430_s1 + $0x2a0] sm:$0xff] }
  0x8b   : > { %690 = vperm.xlu1 %4019, %v252_v45   ;;  %685 = vperm.xlu0 %4018, %v251_v46  }
  0x8f   : > { %700 = vperm.xlu1 %4019, %v254_v47   ;;  %695 = vperm.xlu0 %4018, %v253_v48   ;;  %v294_v47 = vld [vmem:[%s7430_s1 + $0x2b8] sm:$0xff]  ;;  %v293_v48 = vld [vmem:[%s7430_s1 + $0x2b0] sm:$0xff] }
  0x93   : > { %710 = vperm.xlu1 %4019, %v256_v49   ;;  %705 = vperm.xlu0 %4018, %v255_v50  }
  0x97   : > { %720 = vperm.xlu1 %4019, %v258_v51   ;;  %715 = vperm.xlu0 %4018, %v257_v52   ;;  %v296_v51 = vld [vmem:[%s7430_s1 + $0x2c8] sm:$0xff]  ;;  %v295_v52 = vld [vmem:[%s7430_s1 + $0x2c0] sm:$0xff] }
  0x9b   : > { %730 = vperm.xlu1 %4019, %v260_v53   ;;  %725 = vperm.xlu0 %4018, %v259_v54  }
  0x9f   : > { %740 = vperm.xlu1 %4019, %v262_v55   ;;  %735 = vperm.xlu0 %4018, %v261_v56   ;;  %v298_v55 = vld [vmem:[%s7430_s1 + $0x2d8] sm:$0xff]  ;;  %v297_v56 = vld [vmem:[%s7430_s1 + $0x2d0] sm:$0xff] }
  0xa3   : > { %750 = vperm.xlu1 %4019, %v264_v57   ;;  %745 = vperm.xlu0 %4018, %v263_v58  }
  0xa7   : > { %760 = vperm.xlu1 %4019, %v266_v59   ;;  %755 = vperm.xlu0 %4018, %v265_v60   ;;  %v300_v59 = vld [vmem:[%s7430_s1 + $0x2e8] sm:$0xff]  ;;  %v299_v60 = vld [vmem:[%s7430_s1 + $0x2e0] sm:$0xff] }
  0xab   : > { %770 = vperm.xlu1 %4019, %v268_v61   ;;  %765 = vperm.xlu0 %4018, %v267_v62  }
  0xae   : > { %v4732_v1 = vpop.permute.xlu1 %475  ;;  %v4734_v2 = vpop.permute.xlu0 %465 }
  0xaf   : > { %780 = vperm.xlu1 %4019, %v270_v63   ;;  %775 = vperm.xlu0 %4018, %v269_v0   ;;  %v302_v63 = vld [vmem:[%s7430_s1 + $0x2f8] sm:$0xff]  ;;  %v301_v0 = vld [vmem:[%s7430_s1 + $0x2f0] sm:$0xff] }
  0xb2   : > { %v4742_v5 = vpop.permute.xlu1 %480  ;;  %v4744_v6 = vpop.permute.xlu0 %470 }
  0xb3   : > { %790 = vperm.xlu1 %4019, %v272_v3   ;;  %785 = vperm.xlu0 %4018, %v271_v4  }
  0xb6   : > { %v4752_v9 = vpop.permute.xlu1 %490  ;;  %v4754_v10 = vpop.permute.xlu0 %485 }
  0xb7   : > { %800 = vperm.xlu1 %4019, %v274_v7   ;;  %795 = vperm.xlu0 %4018, %v273_v8   ;;  %v304_v7 = vld [vmem:[%s7430_s1 + $0x308] sm:$0xff]  ;;  %v303_v8 = vld [vmem:[%s7430_s1 + $0x300] sm:$0xff] }
  0xba   : > { %v4762_v13 = vpop.permute.xlu1 %500  ;;  %v4764_v14 = vpop.permute.xlu0 %495 }
  0xbb   : > { %810 = vperm.xlu1 %4019, %v276_v11   ;;  %805 = vperm.xlu0 %4018, %v275_v12  }
  0xbe   : > { %v4772_v17 = vpop.permute.xlu1 %510  ;;  %v4774_v18 = vpop.permute.xlu0 %505 }
  0xbf   : > { %820 = vperm.xlu1 %4019, %v278_v15   ;;  %815 = vperm.xlu0 %4018, %v277_v16   ;;  %v306_v15 = vld [vmem:[%s7430_s1 + $0x318] sm:$0xff]  ;;  %v305_v16 = vld [vmem:[%s7430_s1 + $0x310] sm:$0xff] }
  0xc2   : > { %v4782_v21 = vpop.permute.xlu1 %520  ;;  %v4784_v22 = vpop.permute.xlu0 %515 }
  0xc3   : > { %830 = vperm.xlu1 %4019, %v280_v19   ;;  %825 = vperm.xlu0 %4018, %v279_v20  }
  0xc6   : > { %v4792_v25 = vpop.permute.xlu1 %530  ;;  %v4794_v26 = vpop.permute.xlu0 %525 }
  0xc7   : > { %840 = vperm.xlu1 %4019, %v282_v23   ;;  %835 = vperm.xlu0 %4018, %v281_v24   ;;  %v308_v23 = vld [vmem:[%s7430_s1 + $0x328] sm:$0xff]  ;;  %v307_v24 = vld [vmem:[%s7430_s1 + $0x320] sm:$0xff] }
  0xca   : > { %v4802_v29 = vpop.permute.xlu1 %540  ;;  %v4804_v30 = vpop.permute.xlu0 %535 }
  0xcb   : > { %850 = vperm.xlu1 %4019, %v284_v27   ;;  %845 = vperm.xlu0 %4018, %v283_v28  }
  0xce   : > { %v4812_v33 = vpop.permute.xlu1 %550  ;;  %v4814_v34 = vpop.permute.xlu0 %545 }
  0xcf   : > { %860 = vperm.xlu1 %4019, %v286_v31   ;;  %855 = vperm.xlu0 %4018, %v285_v32   ;;  %v310_v31 = vld [vmem:[%s7430_s1 + $0x338] sm:$0xff]  ;;  %v309_v32 = vld [vmem:[%s7430_s1 + $0x330] sm:$0xff] }
  0xd2   : > { %v4822_v37 = vpop.permute.xlu1 %560  ;;  %v4824_v38 = vpop.permute.xlu0 %555 }
  0xd3   : > { %870 = vperm.xlu1 %4019, %v288_v35   ;;  %865 = vperm.xlu0 %4018, %v287_v36  }
  0xd6   : > { %v4832_v41 = vpop.permute.xlu1 %570  ;;  %v4834_v42 = vpop.permute.xlu0 %565 }
  0xd7   : > { %880 = vperm.xlu1 %4019, %v290_v39   ;;  %875 = vperm.xlu0 %4018, %v289_v40   ;;  %v312_v39 = vld [vmem:[%s7430_s1 + $0x348] sm:$0xff]  ;;  %v311_v40 = vld [vmem:[%s7430_s1 + $0x340] sm:$0xff] }
  0xda   : > { %v4842_v45 = vpop.permute.xlu1 %580  ;;  %v4844_v46 = vpop.permute.xlu0 %575 }
  0xdb   : > { %890 = vperm.xlu1 %4019, %v292_v43   ;;  %885 = vperm.xlu0 %4018, %v291_v44  }
  0xde   : > { %v4852_v49 = vpop.permute.xlu1 %590  ;;  %v4854_v50 = vpop.permute.xlu0 %585 }
  0xdf   : > { %900 = vperm.xlu1 %4019, %v294_v47   ;;  %895 = vperm.xlu0 %4018, %v293_v48   ;;  %v314_v47 = vld [vmem:[%s7430_s1 + $0x358] sm:$0xff]  ;;  %v313_v48 = vld [vmem:[%s7430_s1 + $0x350] sm:$0xff] }
  0xe2   : > { %v4862_v53 = vpop.permute.xlu1 %600  ;;  %v4864_v54 = vpop.permute.xlu0 %595 }
  0xe3   : > { %910 = vperm.xlu1 %4019, %v296_v51   ;;  %905 = vperm.xlu0 %4018, %v295_v52  }
  0xe6   : > { %v4872_v57 = vpop.permute.xlu1 %610  ;;  %v4874_v58 = vpop.permute.xlu0 %605 }
  0xe7   : > { %920 = vperm.xlu1 %4019, %v298_v55   ;;  %915 = vperm.xlu0 %4018, %v297_v56   ;;  %v316_v55 = vld [vmem:[%s7430_s1 + $0x368] sm:$0xff]  ;;  %v315_v56 = vld [vmem:[%s7430_s1 + $0x360] sm:$0xff] }
  0xea   : > { %v4882_v61 = vpop.permute.xlu1 %620  ;;  %v4884_v62 = vpop.permute.xlu0 %615 }
  0xeb   : > { %930 = vperm.xlu1 %4019, %v300_v59   ;;  %925 = vperm.xlu0 %4018, %v299_v60  }
  0xee   : > { %v4892_v3 = vpop.permute.xlu1 %630  ;;  %v4894_v4 = vpop.permute.xlu0 %625 }
  0xef   : > { %940 = vperm.xlu1 %4019, %v302_v63   ;;  %935 = vperm.xlu0 %4018, %v301_v0   ;;  %v318_v63 = vld [vmem:[%s7430_s1 + $0x378] sm:$0xff]  ;;  %v317_v0 = vld [vmem:[%s7430_s1 + $0x370] sm:$0xff] }
  0xf2   : > { %v4902_v11 = vpop.permute.xlu1 %640  ;;  %v4904_v12 = vpop.permute.xlu0 %635 }
  0xf3   : > { %950 = vperm.xlu1 %4019, %v304_v7   ;;  %945 = vperm.xlu0 %4018, %v303_v8  }
  0xf6   : > { %v4912_v19 = vpop.permute.xlu1 %650  ;;  %v4914_v20 = vpop.permute.xlu0 %645 }
  0xf7   : > { %960 = vperm.xlu1 %4019, %v306_v15   ;;  %955 = vperm.xlu0 %4018, %v305_v16   ;;  %v320_v15 = vld [vmem:[%s7430_s1 + $0x388] sm:$0xff]  ;;  %v319_v16 = vld [vmem:[%s7430_s1 + $0x380] sm:$0xff] }
  0xfa   : > { %v4922_v27 = vpop.permute.xlu1 %660  ;;  %v4924_v28 = vpop.permute.xlu0 %655 }
  0xfb   : > { %970 = vperm.xlu1 %4019, %v308_v23   ;;  %965 = vperm.xlu0 %4018, %v307_v24  }
  0xfe   : > { %v4932_v35 = vpop.permute.xlu1 %670  ;;  %v4934_v36 = vpop.permute.xlu0 %665 }
  0xff   : > { %980 = vperm.xlu1 %4019, %v310_v31   ;;  %975 = vperm.xlu0 %4018, %v309_v32   ;;  %v322_v31 = vld [vmem:[%s7430_s1 + $0x398] sm:$0xff]  ;;  %v321_v32 = vld [vmem:[%s7430_s1 + $0x390] sm:$0xff] }
 0x102   : > { %v4942_v43 = vpop.permute.xlu1 %680  ;;  %v4944_v44 = vpop.permute.xlu0 %675 }
 0x103   : > { %990 = vperm.xlu1 %4019, %v312_v39   ;;  %985 = vperm.xlu0 %4018, %v311_v40  }
 0x106   : > { %v4952_v51 = vpop.permute.xlu1 %690  ;;  %v4954_v52 = vpop.permute.xlu0 %685 }
 0x107   : > { %1000 = vperm.xlu1 %4019, %v314_v47   ;;  %995 = vperm.xlu0 %4018, %v313_v48   ;;  %v324_v47 = vld [vmem:[%s7430_s1 + $0x3a8] sm:$0xff]  ;;  %v323_v48 = vld [vmem:[%s7430_s1 + $0x3a0] sm:$0xff] }
 0x10a   : > { %v4962_v59 = vpop.permute.xlu1 %700  ;;  %v4964_v60 = vpop.permute.xlu0 %695 }
 0x10b   : > { %1010 = vperm.xlu1 %4019, %v316_v55   ;;  %1005 = vperm.xlu0 %4018, %v315_v56  }
 0x10e   : > { %v4972_v7 = vpop.permute.xlu1 %710  ;;  %v4974_v8 = vpop.permute.xlu0 %705 }
 0x10f   : > { %1020 = vperm.xlu1 %4019, %v318_v63   ;;  %1015 = vperm.xlu0 %4018, %v317_v0   ;;  %v326_v63 = vld [vmem:[%s7430_s1 + $0x3b8] sm:$0xff]  ;;  %v325_v0 = vld [vmem:[%s7430_s1 + $0x3b0] sm:$0xff] }
 0x112   : > { %v4982_v23 = vpop.permute.xlu1 %720  ;;  %v4984_v24 = vpop.permute.xlu0 %715 }
 0x113   : > { %1030 = vperm.xlu1 %4019, %v320_v15   ;;  %1025 = vperm.xlu0 %4018, %v319_v16  }
 0x116   : > { %v4992_v39 = vpop.permute.xlu1 %730  ;;  %v4994_v40 = vpop.permute.xlu0 %725 }
 0x117   : > { %7437 = vst [vmem:[#allocation8_spill] sm:$0xff] %v4994_v40  ;;  %1040 = vperm.xlu1 %4019, %v322_v31   ;;  %1035 = vperm.xlu0 %4018, %v321_v32   ;;  %v328_v31 = vld [vmem:[%s7430_s1 + $0x3c8] sm:$0xff]  ;;  %v327_v32 = vld [vmem:[%s7430_s1 + $0x3c0] sm:$0xff] }
 0x11a   : > { %v5002_v55 = vpop.permute.xlu1 %740  ;;  %v5004_v56 = vpop.permute.xlu0 %735 }
 0x11b   : > { %7438 = vst [vmem:[#allocation9_spill] sm:$0xff] %v5002_v55  ;;  %7439 = vst [vmem:[#allocation10_spill] sm:$0xff] %v5004_v56  ;;  %1050 = vperm.xlu1 %4019, %v324_v47   ;;  %1045 = vperm.xlu0 %4018, %v323_v48  }
 0x11e   : > { %v5012_v15 = vpop.permute.xlu1 %750  ;;  %v5014_v16 = vpop.permute.xlu0 %745 }
 0x11f   : > { %7440 = vst [vmem:[#allocation11_spill] sm:$0xff] %v5012_v15  ;;  %7441 = vst [vmem:[#allocation12_spill] sm:$0xff] %v5014_v16  ;;  %1060 = vperm.xlu1 %4019, %v326_v63   ;;  %1055 = vperm.xlu0 %4018, %v325_v0   ;;  %v330_v16 = vld [vmem:[%s7430_s1 + $0x3d8] sm:$0xff]  ;;  %v329_v63 = vld [vmem:[%s7430_s1 + $0x3d0] sm:$0xff] }
 0x122   : > { %v5022_v47 = vpop.permute.xlu1 %760  ;;  %v5024_v48 = vpop.permute.xlu0 %755 }
 0x123   : > { %7442 = vst [vmem:[#allocation13_spill] sm:$0xff] %v5022_v47  ;;  %7443 = vst [vmem:[#allocation14_spill] sm:$0xff] %v5024_v48  ;;  %1070 = vperm.xlu1 %4019, %v328_v31   ;;  %1065 = vperm.xlu0 %4018, %v327_v32   ;;  %v332_v48 = vld [vmem:[%s7430_s1 + $0x3e8] sm:$0xff]  ;;  %v331_v31 = vld [vmem:[%s7430_s1 + $0x3e0] sm:$0xff] }
 0x126   : > { %v5032_v0 = vpop.permute.xlu1 %770  ;;  %v5034_v15 = vpop.permute.xlu0 %765 }
 0x127   : > { %7444 = vst [vmem:[#allocation15_spill] sm:$0xff] %v5032_v0  ;;  %7445 = vst [vmem:[#allocation16_spill] sm:$0xff] %v5034_v15  ;;  %1080 = vperm.xlu1 %4019, %v330_v16   ;;  %1075 = vperm.xlu0 %4018, %v329_v63   ;;  %v334_v15 = vld [vmem:[%s7430_s1 + $0x3f8] sm:$0xff]  ;;  %v333_v16 = vld [vmem:[%s7430_s1 + $0x3f0] sm:$0xff] }
 0x12a   : > { %v5042_v32 = vpop.permute.xlu1 %780  ;;  %v5044_v47 = vpop.permute.xlu0 %775 }
 0x12b   : > { %7446 = vst [vmem:[#allocation17_spill] sm:$0xff] %v5042_v32  ;;  %7447 = vst [vmem:[#allocation18_spill] sm:$0xff] %v5044_v47  ;;  %1090 = vperm.xlu1 %4019, %v332_v48   ;;  %1085 = vperm.xlu0 %4018, %v331_v31   ;;  %v336_v47 = vld [vmem:[%s7430_s1 + $0x408] sm:$0xff]  ;;  %v335_v48 = vld [vmem:[%s7430_s1 + $0x400] sm:$0xff] }
 0x12e   : > { %v5052_v63 = vpop.permute.xlu1 %790  ;;  %v5054_v0 = vpop.permute.xlu0 %785 }
 0x12f   : > { %7448 = vst [vmem:[#allocation19_spill] sm:$0xff] %v5052_v63  ;;  %7449 = vst [vmem:[#allocation20_spill] sm:$0xff] %v5054_v0  ;;  %1100 = vperm.xlu1 %4019, %v334_v15   ;;  %1095 = vperm.xlu0 %4018, %v333_v16   ;;  %v338_v0 = vld [vmem:[%s7430_s1 + $0x418] sm:$0xff]  ;;  %v337_v15 = vld [vmem:[%s7430_s1 + $0x410] sm:$0xff] }
 0x132   : > { %v5062_v31 = vpop.permute.xlu1 %800  ;;  %v5064_v32 = vpop.permute.xlu0 %795 }
 0x133   : > { %7450 = vst [vmem:[#allocation21_spill] sm:$0xff] %v5062_v31  ;;  %7451 = vst [vmem:[#allocation22_spill] sm:$0xff] %v5064_v32  ;;  %1110 = vperm.xlu1 %4019, %v336_v47   ;;  %1105 = vperm.xlu0 %4018, %v335_v48   ;;  %v340_v32 = vld [vmem:[%s7430_s1 + $0x428] sm:$0xff]  ;;  %v339_v47 = vld [vmem:[%s7430_s1 + $0x420] sm:$0xff] }
 0x136   : > { %v5072_v16 = vpop.permute.xlu1 %810  ;;  %v5074_v63 = vpop.permute.xlu0 %805 }
 0x137   : > { %7452 = vst [vmem:[#allocation23_spill] sm:$0xff] %v5072_v16  ;;  %7453 = vst [vmem:[#allocation24_spill] sm:$0xff] %v5074_v63  ;;  %1120 = vperm.xlu1 %4019, %v338_v0   ;;  %1115 = vperm.xlu0 %4018, %v337_v15   ;;  %v342_v63 = vld [vmem:[%s7430_s1 + $0x438] sm:$0xff]  ;;  %v341_v0 = vld [vmem:[%s7430_s1 + $0x430] sm:$0xff] }
 0x13a   : > { %v5082_v48 = vpop.permute.xlu1 %820  ;;  %v5084_v31 = vpop.permute.xlu0 %815 }
 0x13b   : > { %7454 = vst [vmem:[#allocation25_spill] sm:$0xff] %v5082_v48  ;;  %7455 = vst [vmem:[#allocation26_spill] sm:$0xff] %v5084_v31  ;;  %1130 = vperm.xlu1 %4019, %v340_v32   ;;  %1125 = vperm.xlu0 %4018, %v339_v47   ;;  %v344_v31 = vld [vmem:[%s7430_s1 + $0x448] sm:$0xff]  ;;  %v343_v32 = vld [vmem:[%s7430_s1 + $0x440] sm:$0xff] }
 0x13e   : > { %v5092_v15 = vpop.permute.xlu1 %830  ;;  %v5094_v16 = vpop.permute.xlu0 %825 }
 0x13f   : > { %7456 = vst [vmem:[#allocation27_spill] sm:$0xff] %v5092_v15  ;;  %7457 = vst [vmem:[#allocation28_spill] sm:$0xff] %v5094_v16  ;;  %1140 = vperm.xlu1 %4019, %v342_v63   ;;  %1135 = vperm.xlu0 %4018, %v341_v0   ;;  %v346_v16 = vld [vmem:[%s7430_s1 + $0x458] sm:$0xff]  ;;  %v345_v63 = vld [vmem:[%s7430_s1 + $0x450] sm:$0xff] }
 0x142   : > { %v5102_v47 = vpop.permute.xlu1 %840  ;;  %v5104_v48 = vpop.permute.xlu0 %835 }
 0x143   : > { %7458 = vst [vmem:[#allocation29_spill] sm:$0xff] %v5102_v47  ;;  %7459 = vst [vmem:[#allocation30_spill] sm:$0xff] %v5104_v48  ;;  %1150 = vperm.xlu1 %4019, %v344_v31   ;;  %1145 = vperm.xlu0 %4018, %v343_v32   ;;  %v348_v48 = vld [vmem:[%s7430_s1 + $0x468] sm:$0xff]  ;;  %v347_v31 = vld [vmem:[%s7430_s1 + $0x460] sm:$0xff] }
 0x146   : > { %v5112_v0 = vpop.permute.xlu1 %850  ;;  %v5114_v15 = vpop.permute.xlu0 %845 }
 0x147   : > { %7460 = vst [vmem:[#allocation31_spill] sm:$0xff] %v5112_v0  ;;  %7461 = vst [vmem:[#allocation32_spill] sm:$0xff] %v5114_v15  ;;  %1160 = vperm.xlu1 %4019, %v346_v16   ;;  %1155 = vperm.xlu0 %4018, %v345_v63   ;;  %v350_v15 = vld [vmem:[%s7430_s1 + $0x478] sm:$0xff]  ;;  %v349_v16 = vld [vmem:[%s7430_s1 + $0x470] sm:$0xff] }
 0x14a   : > { %v5122_v32 = vpop.permute.xlu1 %860  ;;  %v5124_v47 = vpop.permute.xlu0 %855 }
 0x14b   : > { %7462 = vst [vmem:[#allocation33_spill] sm:$0xff] %v5122_v32  ;;  %7463 = vst [vmem:[#allocation34_spill] sm:$0xff] %v5124_v47  ;;  %1170 = vperm.xlu1 %4019, %v348_v48   ;;  %1165 = vperm.xlu0 %4018, %v347_v31   ;;  %v352_v47 = vld [vmem:[%s7430_s1 + $0x488] sm:$0xff]  ;;  %v351_v48 = vld [vmem:[%s7430_s1 + $0x480] sm:$0xff] }
 0x14e   : > { %v5132_v63 = vpop.permute.xlu1 %870  ;;  %v5134_v0 = vpop.permute.xlu0 %865 }
 0x14f   : > { %7464 = vst [vmem:[#allocation35_spill] sm:$0xff] %v5132_v63  ;;  %7465 = vst [vmem:[#allocation36_spill] sm:$0xff] %v5134_v0  ;;  %1180 = vperm.xlu1 %4019, %v350_v15   ;;  %1175 = vperm.xlu0 %4018, %v349_v16   ;;  %v354_v0 = vld [vmem:[%s7430_s1 + $0x498] sm:$0xff]  ;;  %v353_v15 = vld [vmem:[%s7430_s1 + $0x490] sm:$0xff] }
 0x152   : > { %v5142_v31 = vpop.permute.xlu1 %880  ;;  %v5144_v32 = vpop.permute.xlu0 %875 }
 0x153   : > { %7466 = vst [vmem:[#allocation37_spill] sm:$0xff] %v5142_v31  ;;  %7467 = vst [vmem:[#allocation38_spill] sm:$0xff] %v5144_v32  ;;  %1190 = vperm.xlu1 %4019, %v352_v47   ;;  %1185 = vperm.xlu0 %4018, %v351_v48   ;;  %v356_v32 = vld [vmem:[%s7430_s1 + $0x4a8] sm:$0xff]  ;;  %v355_v47 = vld [vmem:[%s7430_s1 + $0x4a0] sm:$0xff] }
 0x156   : > { %v5152_v16 = vpop.permute.xlu1 %890  ;;  %v5154_v63 = vpop.permute.xlu0 %885 }
 0x157   : > { %7468 = vst [vmem:[#allocation39_spill] sm:$0xff] %v5152_v16  ;;  %7469 = vst [vmem:[#allocation40_spill] sm:$0xff] %v5154_v63  ;;  %1200 = vperm.xlu1 %4019, %v354_v0   ;;  %1195 = vperm.xlu0 %4018, %v353_v15   ;;  %v358_v63 = vld [vmem:[%s7430_s1 + $0x4b8] sm:$0xff]  ;;  %v357_v0 = vld [vmem:[%s7430_s1 + $0x4b0] sm:$0xff] }
 0x15a   : > { %v5162_v48 = vpop.permute.xlu1 %900  ;;  %v5164_v31 = vpop.permute.xlu0 %895 }
 0x15b   : > { %7470 = vst [vmem:[#allocation41_spill] sm:$0xff] %v5162_v48  ;;  %7471 = vst [vmem:[#allocation42_spill] sm:$0xff] %v5164_v31  ;;  %1210 = vperm.xlu1 %4019, %v356_v32   ;;  %1205 = vperm.xlu0 %4018, %v355_v47   ;;  %v360_v31 = vld [vmem:[%s7430_s1 + $0x4c8] sm:$0xff]  ;;  %v359_v32 = vld [vmem:[%s7430_s1 + $0x4c0] sm:$0xff] }
 0x15e   : > { %v5172_v15 = vpop.permute.xlu1 %910  ;;  %v5174_v16 = vpop.permute.xlu0 %905 }
 0x15f   : > { %7472 = vst [vmem:[#allocation43_spill] sm:$0xff] %v5172_v15  ;;  %7473 = vst [vmem:[#allocation44_spill] sm:$0xff] %v5174_v16  ;;  %1220 = vperm.xlu1 %4019, %v358_v63   ;;  %1215 = vperm.xlu0 %4018, %v357_v0   ;;  %v362_v16 = vld [vmem:[%s7430_s1 + $0x4d8] sm:$0xff]  ;;  %v361_v63 = vld [vmem:[%s7430_s1 + $0x4d0] sm:$0xff] }
 0x162   : > { %v5182_v47 = vpop.permute.xlu1 %920  ;;  %v5184_v48 = vpop.permute.xlu0 %915 }
 0x163   : > { %7474 = vst [vmem:[#allocation45_spill] sm:$0xff] %v5182_v47  ;;  %7475 = vst [vmem:[#allocation46_spill] sm:$0xff] %v5184_v48  ;;  %1230 = vperm.xlu1 %4019, %v360_v31   ;;  %1225 = vperm.xlu0 %4018, %v359_v32   ;;  %v364_v48 = vld [vmem:[%s7430_s1 + $0x4e8] sm:$0xff]  ;;  %v363_v31 = vld [vmem:[%s7430_s1 + $0x4e0] sm:$0xff] }
 0x166   : > { %v5192_v0 = vpop.permute.xlu1 %930  ;;  %v5194_v15 = vpop.permute.xlu0 %925 }
 0x167   : > { %7476 = vst [vmem:[#allocation47_spill] sm:$0xff] %v5192_v0  ;;  %7477 = vst [vmem:[#allocation48_spill] sm:$0xff] %v5194_v15  ;;  %1240 = vperm.xlu1 %4019, %v362_v16   ;;  %1235 = vperm.xlu0 %4018, %v361_v63   ;;  %v366_v15 = vld [vmem:[%s7430_s1 + $0x4f8] sm:$0xff]  ;;  %v365_v16 = vld [vmem:[%s7430_s1 + $0x4f0] sm:$0xff] }
 0x16a   : > { %v5202_v32 = vpop.permute.xlu1 %940  ;;  %v5204_v47 = vpop.permute.xlu0 %935 }
 0x16b   : > { %7478 = vst [vmem:[#allocation49_spill] sm:$0xff] %v5202_v32  ;;  %7479 = vst [vmem:[#allocation50_spill] sm:$0xff] %v5204_v47  ;;  %1250 = vperm.xlu1 %4019, %v364_v48   ;;  %1245 = vperm.xlu0 %4018, %v363_v31   ;;  %v368_v47 = vld [vmem:[%s7430_s1 + $0x508] sm:$0xff]  ;;  %v367_v48 = vld [vmem:[%s7430_s1 + $0x500] sm:$0xff] }
 0x16e   : > { %v5212_v63 = vpop.permute.xlu1 %950  ;;  %v5214_v0 = vpop.permute.xlu0 %945 }
 0x16f   : > { %7480 = vst [vmem:[#allocation51_spill] sm:$0xff] %v5212_v63  ;;  %7481 = vst [vmem:[#allocation52_spill] sm:$0xff] %v5214_v0  ;;  %1260 = vperm.xlu1 %4019, %v366_v15   ;;  %1255 = vperm.xlu0 %4018, %v365_v16   ;;  %v370_v0 = vld [vmem:[%s7430_s1 + $0x518] sm:$0xff]  ;;  %v369_v15 = vld [vmem:[%s7430_s1 + $0x510] sm:$0xff] }
 0x172   : > { %v5222_v31 = vpop.permute.xlu1 %960  ;;  %v5224_v32 = vpop.permute.xlu0 %955 }
 0x173   : > { %7482 = vst [vmem:[#allocation53_spill] sm:$0xff] %v5222_v31  ;;  %7483 = vst [vmem:[#allocation54_spill] sm:$0xff] %v5224_v32  ;;  %1270 = vperm.xlu1 %4019, %v368_v47   ;;  %1265 = vperm.xlu0 %4018, %v367_v48   ;;  %v372_v32 = vld [vmem:[%s7430_s1 + $0x528] sm:$0xff]  ;;  %v371_v47 = vld [vmem:[%s7430_s1 + $0x520] sm:$0xff] }
 0x176   : > { %v5232_v16 = vpop.permute.xlu1 %970  ;;  %v5234_v63 = vpop.permute.xlu0 %965 }
 0x177   : > { %7484 = vst [vmem:[#allocation55_spill] sm:$0xff] %v5232_v16  ;;  %7485 = vst [vmem:[#allocation56_spill] sm:$0xff] %v5234_v63  ;;  %1280 = vperm.xlu1 %4019, %v370_v0   ;;  %1275 = vperm.xlu0 %4018, %v369_v15   ;;  %v374_v63 = vld [vmem:[%s7430_s1 + $0x538] sm:$0xff]  ;;  %v373_v0 = vld [vmem:[%s7430_s1 + $0x530] sm:$0xff] }
 0x17a   : > { %v5242_v48 = vpop.permute.xlu1 %980  ;;  %v5244_v31 = vpop.permute.xlu0 %975 }
 0x17b   : > { %7486 = vst [vmem:[#allocation57_spill] sm:$0xff] %v5242_v48  ;;  %7487 = vst [vmem:[#allocation58_spill] sm:$0xff] %v5244_v31  ;;  %1290 = vperm.xlu1 %4019, %v372_v32   ;;  %1285 = vperm.xlu0 %4018, %v371_v47   ;;  %v376_v31 = vld [vmem:[%s7430_s1 + $0x548] sm:$0xff]  ;;  %v375_v32 = vld [vmem:[%s7430_s1 + $0x540] sm:$0xff] }
 0x17e   : > { %v5252_v15 = vpop.permute.xlu1 %990  ;;  %v5254_v16 = vpop.permute.xlu0 %985 }
 0x17f   : > { %7488 = vst [vmem:[#allocation59_spill] sm:$0xff] %v5252_v15  ;;  %7489 = vst [vmem:[#allocation60_spill] sm:$0xff] %v5254_v16  ;;  %1300 = vperm.xlu1 %4019, %v374_v63   ;;  %1295 = vperm.xlu0 %4018, %v373_v0   ;;  %v378_v16 = vld [vmem:[%s7430_s1 + $0x558] sm:$0xff]  ;;  %v377_v63 = vld [vmem:[%s7430_s1 + $0x550] sm:$0xff] }
 0x182   : > { %v5262_v47 = vpop.permute.xlu1 %1000  ;;  %v5264_v48 = vpop.permute.xlu0 %995 }
 0x183   : > { %7490 = vst [vmem:[#allocation61_spill] sm:$0xff] %v5262_v47  ;;  %7491 = vst [vmem:[#allocation62_spill] sm:$0xff] %v5264_v48  ;;  %1310 = vperm.xlu1 %4019, %v376_v31   ;;  %1305 = vperm.xlu0 %4018, %v375_v32   ;;  %v380_v48 = vld [vmem:[%s7430_s1 + $0x568] sm:$0xff]  ;;  %v379_v31 = vld [vmem:[%s7430_s1 + $0x560] sm:$0xff] }
 0x186   : > { %v5272_v0 = vpop.permute.xlu1 %1010  ;;  %v5274_v15 = vpop.permute.xlu0 %1005 }
 0x187   : > { %7492 = vst [vmem:[#allocation63_spill] sm:$0xff] %v5272_v0  ;;  %7493 = vst [vmem:[#allocation64_spill] sm:$0xff] %v5274_v15  ;;  %1320 = vperm.xlu1 %4019, %v378_v16   ;;  %1315 = vperm.xlu0 %4018, %v377_v63   ;;  %v382_v15 = vld [vmem:[%s7430_s1 + $0x578] sm:$0xff]  ;;  %v381_v16 = vld [vmem:[%s7430_s1 + $0x570] sm:$0xff] }
 0x18a   : > { %v5282_v32 = vpop.permute.xlu1 %1020  ;;  %v5284_v47 = vpop.permute.xlu0 %1015 }
 0x18b   : > { %7494 = vst [vmem:[#allocation65_spill] sm:$0xff] %v5282_v32  ;;  %7495 = vst [vmem:[#allocation66_spill] sm:$0xff] %v5284_v47  ;;  %1330 = vperm.xlu1 %4019, %v380_v48   ;;  %1325 = vperm.xlu0 %4018, %v379_v31   ;;  %v384_v47 = vld [vmem:[%s7430_s1 + $0x588] sm:$0xff]  ;;  %v383_v48 = vld [vmem:[%s7430_s1 + $0x580] sm:$0xff] }
 0x18e   : > { %v5292_v63 = vpop.permute.xlu1 %1030  ;;  %v5294_v0 = vpop.permute.xlu0 %1025 }
 0x18f   : > { %7496 = vst [vmem:[#allocation67_spill] sm:$0xff] %v5292_v63  ;;  %7497 = vst [vmem:[#allocation68_spill] sm:$0xff] %v5294_v0  ;;  %1340 = vperm.xlu1 %4019, %v382_v15   ;;  %1335 = vperm.xlu0 %4018, %v381_v16   ;;  %v386_v0 = vld [vmem:[%s7430_s1 + $0x598] sm:$0xff]  ;;  %v385_v15 = vld [vmem:[%s7430_s1 + $0x590] sm:$0xff] }
 0x192   : > { %v5302_v31 = vpop.permute.xlu1 %1040  ;;  %v5304_v32 = vpop.permute.xlu0 %1035 }
 0x193   : > { %7498 = vst [vmem:[#allocation69_spill] sm:$0xff] %v5302_v31  ;;  %7499 = vst [vmem:[#allocation70_spill] sm:$0xff] %v5304_v32  ;;  %1350 = vperm.xlu1 %4019, %v384_v47   ;;  %1345 = vperm.xlu0 %4018, %v383_v48   ;;  %v388_v32 = vld [vmem:[%s7430_s1 + $0x5a8] sm:$0xff]  ;;  %v387_v47 = vld [vmem:[%s7430_s1 + $0x5a0] sm:$0xff] }
 0x196   : > { %v5312_v16 = vpop.permute.xlu1 %1050  ;;  %v5314_v63 = vpop.permute.xlu0 %1045 }
 0x197   : > { %7500 = vst [vmem:[#allocation71_spill] sm:$0xff] %v5312_v16  ;;  %7501 = vst [vmem:[#allocation72_spill] sm:$0xff] %v5314_v63  ;;  %1360 = vperm.xlu1 %4019, %v386_v0   ;;  %1355 = vperm.xlu0 %4018, %v385_v15   ;;  %v390_v63 = vld [vmem:[%s7430_s1 + $0x5b8] sm:$0xff]  ;;  %v389_v0 = vld [vmem:[%s7430_s1 + $0x5b0] sm:$0xff] }
 0x19a   : > { %v5322_v48 = vpop.permute.xlu1 %1060  ;;  %v5324_v31 = vpop.permute.xlu0 %1055 }
 0x19b   : > { %7502 = vst [vmem:[#allocation73_spill] sm:$0xff] %v5322_v48  ;;  %7503 = vst [vmem:[#allocation74_spill] sm:$0xff] %v5324_v31  ;;  %1370 = vperm.xlu1 %4019, %v388_v32   ;;  %1365 = vperm.xlu0 %4018, %v387_v47   ;;  %v392_v31 = vld [vmem:[%s7430_s1 + $0x5c8] sm:$0xff]  ;;  %v391_v32 = vld [vmem:[%s7430_s1 + $0x5c0] sm:$0xff] }
 0x19e   : > { %v5332_v15 = vpop.permute.xlu1 %1070  ;;  %v5334_v16 = vpop.permute.xlu0 %1065 }
 0x19f   : > { %7504 = vst [vmem:[#allocation75_spill] sm:$0xff] %v5332_v15  ;;  %7505 = vst [vmem:[#allocation76_spill] sm:$0xff] %v5334_v16  ;;  %1380 = vperm.xlu1 %4019, %v390_v63   ;;  %1375 = vperm.xlu0 %4018, %v389_v0   ;;  %v394_v16 = vld [vmem:[%s7430_s1 + $0x5d8] sm:$0xff]  ;;  %v393_v63 = vld [vmem:[%s7430_s1 + $0x5d0] sm:$0xff] }
 0x1a2   : > { %v5342_v47 = vpop.permute.xlu1 %1080  ;;  %v5344_v48 = vpop.permute.xlu0 %1075 }
 0x1a3   : > { %7506 = vst [vmem:[#allocation77_spill] sm:$0xff] %v5342_v47  ;;  %7507 = vst [vmem:[#allocation78_spill] sm:$0xff] %v5344_v48  ;;  %1390 = vperm.xlu1 %4019, %v392_v31   ;;  %1385 = vperm.xlu0 %4018, %v391_v32   ;;  %v396_v48 = vld [vmem:[%s7430_s1 + $0x5e8] sm:$0xff]  ;;  %v395_v31 = vld [vmem:[%s7430_s1 + $0x5e0] sm:$0xff] }
 0x1a6   : > { %v5352_v0 = vpop.permute.xlu1 %1090  ;;  %v5354_v15 = vpop.permute.xlu0 %1085 }
 0x1a7   : > { %7508 = vst [vmem:[#allocation79_spill] sm:$0xff] %v5352_v0  ;;  %7509 = vst [vmem:[#allocation80_spill] sm:$0xff] %v5354_v15  ;;  %1400 = vperm.xlu1 %4019, %v394_v16   ;;  %1395 = vperm.xlu0 %4018, %v393_v63   ;;  %v398_v15 = vld [vmem:[%s7430_s1 + $0x5f8] sm:$0xff]  ;;  %v397_v16 = vld [vmem:[%s7430_s1 + $0x5f0] sm:$0xff] }
 0x1aa   : > { %v5362_v32 = vpop.permute.xlu1 %1100  ;;  %v5364_v47 = vpop.permute.xlu0 %1095 }
 0x1ab   : > { %7510 = vst [vmem:[#allocation81_spill] sm:$0xff] %v5362_v32  ;;  %7511 = vst [vmem:[#allocation82_spill] sm:$0xff] %v5364_v47  ;;  %1410 = vperm.xlu1 %4019, %v396_v48   ;;  %1405 = vperm.xlu0 %4018, %v395_v31   ;;  %v400_v47 = vld [vmem:[%s7430_s1 + $0x608] sm:$0xff]  ;;  %v399_v48 = vld [vmem:[%s7430_s1 + $0x600] sm:$0xff] }
 0x1ae   : > { %v5372_v63 = vpop.permute.xlu1 %1110  ;;  %v5374_v0 = vpop.permute.xlu0 %1105 }
 0x1af   : > { %7512 = vst [vmem:[#allocation83_spill] sm:$0xff] %v5372_v63  ;;  %7513 = vst [vmem:[#allocation84_spill] sm:$0xff] %v5374_v0  ;;  %1420 = vperm.xlu1 %4019, %v398_v15   ;;  %1415 = vperm.xlu0 %4018, %v397_v16   ;;  %v402_v0 = vld [vmem:[%s7430_s1 + $0x618] sm:$0xff]  ;;  %v401_v15 = vld [vmem:[%s7430_s1 + $0x610] sm:$0xff] }
 0x1b2   : > { %v5382_v31 = vpop.permute.xlu1 %1120  ;;  %v5384_v32 = vpop.permute.xlu0 %1115 }
 0x1b3   : > { %7514 = vst [vmem:[#allocation85_spill] sm:$0xff] %v5382_v31  ;;  %7515 = vst [vmem:[#allocation86_spill] sm:$0xff] %v5384_v32  ;;  %1430 = vperm.xlu1 %4019, %v400_v47   ;;  %1425 = vperm.xlu0 %4018, %v399_v48   ;;  %v404_v32 = vld [vmem:[%s7430_s1 + $0x628] sm:$0xff]  ;;  %v403_v47 = vld [vmem:[%s7430_s1 + $0x620] sm:$0xff] }
 0x1b6   : > { %v5392_v16 = vpop.permute.xlu1 %1130  ;;  %v5394_v63 = vpop.permute.xlu0 %1125 }
 0x1b7   : > { %7516 = vst [vmem:[#allocation87_spill] sm:$0xff] %v5392_v16  ;;  %7517 = vst [vmem:[#allocation88_spill] sm:$0xff] %v5394_v63  ;;  %1440 = vperm.xlu1 %4019, %v402_v0   ;;  %1435 = vperm.xlu0 %4018, %v401_v15   ;;  %v406_v63 = vld [vmem:[%s7430_s1 + $0x638] sm:$0xff]  ;;  %v405_v0 = vld [vmem:[%s7430_s1 + $0x630] sm:$0xff] }
 0x1ba   : > { %v5402_v48 = vpop.permute.xlu1 %1140  ;;  %v5404_v31 = vpop.permute.xlu0 %1135 }
 0x1bb   : > { %7518 = vst [vmem:[#allocation89_spill] sm:$0xff] %v5402_v48  ;;  %7519 = vst [vmem:[#allocation90_spill] sm:$0xff] %v5404_v31  ;;  %1450 = vperm.xlu1 %4019, %v404_v32   ;;  %1445 = vperm.xlu0 %4018, %v403_v47   ;;  %v408_v31 = vld [vmem:[%s7430_s1 + $0x648] sm:$0xff]  ;;  %v407_v32 = vld [vmem:[%s7430_s1 + $0x640] sm:$0xff] }
 0x1be   : > { %v5412_v15 = vpop.permute.xlu1 %1150  ;;  %v5414_v16 = vpop.permute.xlu0 %1145 }
 0x1bf   : > { %7520 = vst [vmem:[#allocation91_spill] sm:$0xff] %v5412_v15  ;;  %7521 = vst [vmem:[#allocation92_spill] sm:$0xff] %v5414_v16  ;;  %1460 = vperm.xlu1 %4019, %v406_v63   ;;  %1455 = vperm.xlu0 %4018, %v405_v0   ;;  %v410_v16 = vld [vmem:[%s7430_s1 + $0x658] sm:$0xff]  ;;  %v409_v63 = vld [vmem:[%s7430_s1 + $0x650] sm:$0xff] }
 0x1c2   : > { %v5422_v47 = vpop.permute.xlu1 %1160  ;;  %v5424_v48 = vpop.permute.xlu0 %1155 }
 0x1c3   : > { %7522 = vst [vmem:[#allocation93_spill] sm:$0xff] %v5422_v47  ;;  %7523 = vst [vmem:[#allocation94_spill] sm:$0xff] %v5424_v48  ;;  %1470 = vperm.xlu1 %4019, %v408_v31   ;;  %1465 = vperm.xlu0 %4018, %v407_v32   ;;  %v412_v48 = vld [vmem:[%s7430_s1 + $0x668] sm:$0xff]  ;;  %v411_v31 = vld [vmem:[%s7430_s1 + $0x660] sm:$0xff] }
 0x1c6   : > { %v5432_v0 = vpop.permute.xlu1 %1170  ;;  %v5434_v15 = vpop.permute.xlu0 %1165 }
 0x1c7   : > { %7524 = vst [vmem:[#allocation95_spill] sm:$0xff] %v5432_v0  ;;  %7525 = vst [vmem:[#allocation96_spill] sm:$0xff] %v5434_v15  ;;  %1480 = vperm.xlu1 %4019, %v410_v16   ;;  %1475 = vperm.xlu0 %4018, %v409_v63   ;;  %v414_v15 = vld [vmem:[%s7430_s1 + $0x678] sm:$0xff]  ;;  %v413_v16 = vld [vmem:[%s7430_s1 + $0x670] sm:$0xff] }
 0x1ca   : > { %v5442_v32 = vpop.permute.xlu1 %1180  ;;  %v5444_v47 = vpop.permute.xlu0 %1175 }
 0x1cb   : > { %7526 = vst [vmem:[#allocation97_spill] sm:$0xff] %v5442_v32  ;;  %7527 = vst [vmem:[#allocation98_spill] sm:$0xff] %v5444_v47  ;;  %1490 = vperm.xlu1 %4019, %v412_v48   ;;  %1485 = vperm.xlu0 %4018, %v411_v31   ;;  %v416_v47 = vld [vmem:[%s7430_s1 + $0x688] sm:$0xff]  ;;  %v415_v48 = vld [vmem:[%s7430_s1 + $0x680] sm:$0xff] }
 0x1ce   : > { %v5452_v63 = vpop.permute.xlu1 %1190  ;;  %v5454_v0 = vpop.permute.xlu0 %1185 }
 0x1cf   : > { %7528 = vst [vmem:[#allocation99_spill] sm:$0xff] %v5452_v63  ;;  %7529 = vst [vmem:[#allocation100_spill] sm:$0xff] %v5454_v0  ;;  %1500 = vperm.xlu1 %4019, %v414_v15   ;;  %1495 = vperm.xlu0 %4018, %v413_v16   ;;  %v418_v0 = vld [vmem:[%s7430_s1 + $0x698] sm:$0xff]  ;;  %v417_v15 = vld [vmem:[%s7430_s1 + $0x690] sm:$0xff] }
 0x1d2   : > { %v5462_v31 = vpop.permute.xlu1 %1200  ;;  %v5464_v32 = vpop.permute.xlu0 %1195 }
 0x1d3   : > { %7530 = vst [vmem:[#allocation101_spill] sm:$0xff] %v5462_v31  ;;  %7531 = vst [vmem:[#allocation102_spill] sm:$0xff] %v5464_v32  ;;  %1510 = vperm.xlu1 %4019, %v416_v47   ;;  %1505 = vperm.xlu0 %4018, %v415_v48   ;;  %v420_v32 = vld [vmem:[%s7430_s1 + $0x6a8] sm:$0xff]  ;;  %v419_v47 = vld [vmem:[%s7430_s1 + $0x6a0] sm:$0xff] }
 0x1d6   : > { %v5472_v16 = vpop.permute.xlu1 %1210  ;;  %v5474_v63 = vpop.permute.xlu0 %1205 }
 0x1d7   : > { %7532 = vst [vmem:[#allocation103_spill] sm:$0xff] %v5472_v16  ;;  %7533 = vst [vmem:[#allocation104_spill] sm:$0xff] %v5474_v63  ;;  %1520 = vperm.xlu1 %4019, %v418_v0   ;;  %1515 = vperm.xlu0 %4018, %v417_v15   ;;  %v422_v63 = vld [vmem:[%s7430_s1 + $0x6b8] sm:$0xff]  ;;  %v421_v0 = vld [vmem:[%s7430_s1 + $0x6b0] sm:$0xff] }
 0x1da   : > { %v5482_v48 = vpop.permute.xlu1 %1220  ;;  %v5484_v31 = vpop.permute.xlu0 %1215 }
 0x1db   : > { %7534 = vst [vmem:[#allocation105_spill] sm:$0xff] %v5482_v48  ;;  %7535 = vst [vmem:[#allocation106_spill] sm:$0xff] %v5484_v31  ;;  %1530 = vperm.xlu1 %4019, %v420_v32   ;;  %1525 = vperm.xlu0 %4018, %v419_v47   ;;  %v424_v31 = vld [vmem:[%s7430_s1 + $0x6c8] sm:$0xff]  ;;  %v423_v32 = vld [vmem:[%s7430_s1 + $0x6c0] sm:$0xff] }
 0x1de   : > { %v5492_v15 = vpop.permute.xlu1 %1230  ;;  %v5494_v16 = vpop.permute.xlu0 %1225 }
 0x1df   : > { %7536 = vst [vmem:[#allocation107_spill] sm:$0xff] %v5492_v15  ;;  %7537 = vst [vmem:[#allocation108_spill] sm:$0xff] %v5494_v16  ;;  %1540 = vperm.xlu1 %4019, %v422_v63   ;;  %1535 = vperm.xlu0 %4018, %v421_v0   ;;  %v426_v16 = vld [vmem:[%s7430_s1 + $0x6d8] sm:$0xff]  ;;  %v425_v63 = vld [vmem:[%s7430_s1 + $0x6d0] sm:$0xff] }
 0x1e2   : > { %v5502_v47 = vpop.permute.xlu1 %1240  ;;  %v5504_v48 = vpop.permute.xlu0 %1235 }
 0x1e3   : > { %7538 = vst [vmem:[#allocation109_spill] sm:$0xff] %v5502_v47  ;;  %7539 = vst [vmem:[#allocation110_spill] sm:$0xff] %v5504_v48  ;;  %1550 = vperm.xlu1 %4019, %v424_v31   ;;  %1545 = vperm.xlu0 %4018, %v423_v32   ;;  %v428_v48 = vld [vmem:[%s7430_s1 + $0x6e8] sm:$0xff]  ;;  %v427_v31 = vld [vmem:[%s7430_s1 + $0x6e0] sm:$0xff] }
 0x1e6   : > { %v5512_v0 = vpop.permute.xlu1 %1250  ;;  %v5514_v15 = vpop.permute.xlu0 %1245 }
 0x1e7   : > { %7540 = vst [vmem:[#allocation111_spill] sm:$0xff] %v5512_v0  ;;  %7541 = vst [vmem:[#allocation112_spill] sm:$0xff] %v5514_v15  ;;  %1560 = vperm.xlu1 %4019, %v426_v16   ;;  %1555 = vperm.xlu0 %4018, %v425_v63   ;;  %v430_v15 = vld [vmem:[%s7430_s1 + $0x6f8] sm:$0xff]  ;;  %v429_v16 = vld [vmem:[%s7430_s1 + $0x6f0] sm:$0xff] }
 0x1ea   : > { %v5522_v32 = vpop.permute.xlu1 %1260  ;;  %v5524_v47 = vpop.permute.xlu0 %1255 }
 0x1eb   : > { %7542 = vst [vmem:[#allocation113_spill] sm:$0xff] %v5522_v32  ;;  %7543 = vst [vmem:[#allocation114_spill] sm:$0xff] %v5524_v47  ;;  %1570 = vperm.xlu1 %4019, %v428_v48   ;;  %1565 = vperm.xlu0 %4018, %v427_v31   ;;  %v432_v47 = vld [vmem:[%s7430_s1 + $0x708] sm:$0xff]  ;;  %v431_v48 = vld [vmem:[%s7430_s1 + $0x700] sm:$0xff] }
 0x1ee   : > { %v5532_v63 = vpop.permute.xlu1 %1270  ;;  %v5534_v0 = vpop.permute.xlu0 %1265 }
 0x1ef   : > { %7544 = vst [vmem:[#allocation115_spill] sm:$0xff] %v5532_v63  ;;  %7545 = vst [vmem:[#allocation116_spill] sm:$0xff] %v5534_v0  ;;  %1580 = vperm.xlu1 %4019, %v430_v15   ;;  %1575 = vperm.xlu0 %4018, %v429_v16   ;;  %v434_v0 = vld [vmem:[%s7430_s1 + $0x718] sm:$0xff]  ;;  %v433_v15 = vld [vmem:[%s7430_s1 + $0x710] sm:$0xff] }
 0x1f2   : > { %v5542_v31 = vpop.permute.xlu1 %1280  ;;  %v5544_v32 = vpop.permute.xlu0 %1275 }
 0x1f3   : > { %7546 = vst [vmem:[#allocation117_spill] sm:$0xff] %v5542_v31  ;;  %7547 = vst [vmem:[#allocation118_spill] sm:$0xff] %v5544_v32  ;;  %1590 = vperm.xlu1 %4019, %v432_v47   ;;  %1585 = vperm.xlu0 %4018, %v431_v48   ;;  %v436_v32 = vld [vmem:[%s7430_s1 + $0x728] sm:$0xff]  ;;  %v435_v47 = vld [vmem:[%s7430_s1 + $0x720] sm:$0xff] }
 0x1f6   : > { %v5552_v16 = vpop.permute.xlu1 %1290  ;;  %v5554_v63 = vpop.permute.xlu0 %1285 }
 0x1f7   : > { %7548 = vst [vmem:[#allocation119_spill] sm:$0xff] %v5552_v16  ;;  %7549 = vst [vmem:[#allocation120_spill] sm:$0xff] %v5554_v63  ;;  %1600 = vperm.xlu1 %4019, %v434_v0   ;;  %1595 = vperm.xlu0 %4018, %v433_v15   ;;  %v438_v63 = vld [vmem:[%s7430_s1 + $0x738] sm:$0xff]  ;;  %v437_v0 = vld [vmem:[%s7430_s1 + $0x730] sm:$0xff] }
 0x1fa   : > { %v5562_v48 = vpop.permute.xlu1 %1300  ;;  %v5564_v31 = vpop.permute.xlu0 %1295 }
 0x1fb   : > { %7550 = vst [vmem:[#allocation121_spill] sm:$0xff] %v5562_v48  ;;  %7551 = vst [vmem:[#allocation122_spill] sm:$0xff] %v5564_v31  ;;  %1610 = vperm.xlu1 %4019, %v436_v32   ;;  %1605 = vperm.xlu0 %4018, %v435_v47   ;;  %v440_v31 = vld [vmem:[%s7430_s1 + $0x748] sm:$0xff]  ;;  %v439_v32 = vld [vmem:[%s7430_s1 + $0x740] sm:$0xff] }
 0x1fe   : > { %v5572_v15 = vpop.permute.xlu1 %1310  ;;  %v5574_v16 = vpop.permute.xlu0 %1305 }
 0x1ff   : > { %7552 = vst [vmem:[#allocation123_spill] sm:$0xff] %v5572_v15  ;;  %7553 = vst [vmem:[#allocation124_spill] sm:$0xff] %v5574_v16  ;;  %1620 = vperm.xlu1 %4019, %v438_v63   ;;  %1615 = vperm.xlu0 %4018, %v437_v0   ;;  %v442_v16 = vld [vmem:[%s7430_s1 + $0x758] sm:$0xff]  ;;  %v441_v63 = vld [vmem:[%s7430_s1 + $0x750] sm:$0xff] }
 0x202   : > { %v5582_v47 = vpop.permute.xlu1 %1320  ;;  %v5584_v48 = vpop.permute.xlu0 %1315 }
 0x203   : > { %7554 = vst [vmem:[#allocation125_spill] sm:$0xff] %v5582_v47  ;;  %7555 = vst [vmem:[#allocation126_spill] sm:$0xff] %v5584_v48  ;;  %1630 = vperm.xlu1 %4019, %v440_v31   ;;  %1625 = vperm.xlu0 %4018, %v439_v32   ;;  %v444_v48 = vld [vmem:[%s7430_s1 + $0x768] sm:$0xff]  ;;  %v443_v31 = vld [vmem:[%s7430_s1 + $0x760] sm:$0xff] }
 0x206   : > { %v5592_v0 = vpop.permute.xlu1 %1330  ;;  %v5594_v15 = vpop.permute.xlu0 %1325 }
 0x207   : > { %7556 = vst [vmem:[#allocation127_spill] sm:$0xff] %v5592_v0  ;;  %7557 = vst [vmem:[#allocation128_spill] sm:$0xff] %v5594_v15  ;;  %1640 = vperm.xlu1 %4019, %v442_v16   ;;  %1635 = vperm.xlu0 %4018, %v441_v63   ;;  %v446_v15 = vld [vmem:[%s7430_s1 + $0x778] sm:$0xff]  ;;  %v445_v16 = vld [vmem:[%s7430_s1 + $0x770] sm:$0xff] }
 0x20a   : > { %v5602_v32 = vpop.permute.xlu1 %1340  ;;  %v5604_v47 = vpop.permute.xlu0 %1335 }
 0x20b   : > { %7558 = vst [vmem:[#allocation129_spill] sm:$0xff] %v5602_v32  ;;  %7559 = vst [vmem:[#allocation130_spill] sm:$0xff] %v5604_v47  ;;  %1650 = vperm.xlu1 %4019, %v444_v48   ;;  %1645 = vperm.xlu0 %4018, %v443_v31   ;;  %v448_v47 = vld [vmem:[%s7430_s1 + $0x788] sm:$0xff]  ;;  %v447_v48 = vld [vmem:[%s7430_s1 + $0x780] sm:$0xff] }
 0x20e   : > { %v5612_v63 = vpop.permute.xlu1 %1350  ;;  %v5614_v0 = vpop.permute.xlu0 %1345 }
 0x20f   : > { %7560 = vst [vmem:[#allocation131_spill] sm:$0xff] %v5612_v63  ;;  %7561 = vst [vmem:[#allocation132_spill] sm:$0xff] %v5614_v0  ;;  %1660 = vperm.xlu1 %4019, %v446_v15   ;;  %1655 = vperm.xlu0 %4018, %v445_v16   ;;  %v450_v0 = vld [vmem:[%s7430_s1 + $0x798] sm:$0xff]  ;;  %v449_v15 = vld [vmem:[%s7430_s1 + $0x790] sm:$0xff] }
 0x212   : > { %v5622_v31 = vpop.permute.xlu1 %1360  ;;  %v5624_v32 = vpop.permute.xlu0 %1355 }
 0x213   : > { %7562 = vst [vmem:[#allocation133_spill] sm:$0xff] %v5622_v31  ;;  %7563 = vst [vmem:[#allocation134_spill] sm:$0xff] %v5624_v32  ;;  %1670 = vperm.xlu1 %4019, %v448_v47   ;;  %1665 = vperm.xlu0 %4018, %v447_v48   ;;  %v452_v32 = vld [vmem:[%s7430_s1 + $0x7a8] sm:$0xff]  ;;  %v451_v47 = vld [vmem:[%s7430_s1 + $0x7a0] sm:$0xff] }
 0x216   : > { %v5632_v16 = vpop.permute.xlu1 %1370  ;;  %v5634_v63 = vpop.permute.xlu0 %1365 }
 0x217   : > { %7564 = vst [vmem:[#allocation135_spill] sm:$0xff] %v5632_v16  ;;  %7565 = vst [vmem:[#allocation136_spill] sm:$0xff] %v5634_v63  ;;  %1680 = vperm.xlu1 %4019, %v450_v0   ;;  %1675 = vperm.xlu0 %4018, %v449_v15   ;;  %v454_v63 = vld [vmem:[%s7430_s1 + $0x7b8] sm:$0xff]  ;;  %v453_v0 = vld [vmem:[%s7430_s1 + $0x7b0] sm:$0xff] }
 0x21a   : > { %v5642_v48 = vpop.permute.xlu1 %1380  ;;  %v5644_v31 = vpop.permute.xlu0 %1375 }
 0x21b   : > { %7566 = vst [vmem:[#allocation137_spill] sm:$0xff] %v5642_v48  ;;  %7567 = vst [vmem:[#allocation138_spill] sm:$0xff] %v5644_v31  ;;  %1690 = vperm.xlu1 %4019, %v452_v32   ;;  %1685 = vperm.xlu0 %4018, %v451_v47   ;;  %v456_v31 = vld [vmem:[%s7430_s1 + $0x7c8] sm:$0xff]  ;;  %v455_v32 = vld [vmem:[%s7430_s1 + $0x7c0] sm:$0xff] }
 0x21e   : > { %v5652_v15 = vpop.permute.xlu1 %1390  ;;  %v5654_v16 = vpop.permute.xlu0 %1385 }
 0x21f   : > { %7568 = vst [vmem:[#allocation139_spill] sm:$0xff] %v5652_v15  ;;  %7569 = vst [vmem:[#allocation140_spill] sm:$0xff] %v5654_v16  ;;  %1700 = vperm.xlu1 %4019, %v454_v63   ;;  %1695 = vperm.xlu0 %4018, %v453_v0   ;;  %v458_v16 = vld [vmem:[%s7430_s1 + $0x7d8] sm:$0xff]  ;;  %v457_v63 = vld [vmem:[%s7430_s1 + $0x7d0] sm:$0xff] }
 0x222   : > { %v5662_v47 = vpop.permute.xlu1 %1400  ;;  %v5664_v48 = vpop.permute.xlu0 %1395 }
 0x223   : > { %7570 = vst [vmem:[#allocation141_spill] sm:$0xff] %v5662_v47  ;;  %7571 = vst [vmem:[#allocation142_spill] sm:$0xff] %v5664_v48  ;;  %1710 = vperm.xlu1 %4019, %v456_v31   ;;  %1705 = vperm.xlu0 %4018, %v455_v32   ;;  %v460_v48 = vld [vmem:[%s7430_s1 + $0x7e8] sm:$0xff]  ;;  %v459_v31 = vld [vmem:[%s7430_s1 + $0x7e0] sm:$0xff] }
 0x226   : > { %v5672_v0 = vpop.permute.xlu1 %1410  ;;  %v5674_v15 = vpop.permute.xlu0 %1405 }
 0x227   : > { %7572 = vst [vmem:[#allocation143_spill] sm:$0xff] %v5672_v0  ;;  %7573 = vst [vmem:[#allocation144_spill] sm:$0xff] %v5674_v15  ;;  %1720 = vperm.xlu1 %4019, %v458_v16   ;;  %1715 = vperm.xlu0 %4018, %v457_v63   ;;  %v462_v15 = vld [vmem:[%s7430_s1 + $0x7f8] sm:$0xff]  ;;  %v461_v16 = vld [vmem:[%s7430_s1 + $0x7f0] sm:$0xff] }
 0x22a   : > { %v5682_v32 = vpop.permute.xlu1 %1420  ;;  %v5684_v47 = vpop.permute.xlu0 %1415 }
 0x22b   : > { %7574 = vst [vmem:[#allocation145_spill] sm:$0xff] %v5682_v32  ;;  %7575 = vst [vmem:[#allocation146_spill] sm:$0xff] %v5684_v47  ;;  %1730 = vperm.xlu1 %4019, %v460_v48   ;;  %1725 = vperm.xlu0 %4018, %v459_v31   ;;  %v4408_v48 = vmov 1   ;;  %v4022_v31 = vld [vmem:[%s7430_s1 + $0x8] sm:$0xff] }
 0x22e   : > { %v5692_v63 = vpop.permute.xlu1 %1430  ;;  %v5694_v0 = vpop.permute.xlu0 %1425 }
 0x22f   : > { %7576 = vst [vmem:[#allocation147_spill] sm:$0xff] %v5692_v63  ;;  %7577 = vst [vmem:[#allocation148_spill] sm:$0xff] %v5694_v0  ;;  %1740 = vperm.xlu1 %4019, %v462_v15   ;;  %1735 = vperm.xlu0 %4018, %v461_v16   ;;  %v4023_v63 = vld [vmem:[%s7430_s1] sm:$0xff]  ;;  %v4024_v16 = vld [vmem:[%s7430_s1 + $0x10] sm:$0xff] }
 0x232   : > { %v5696_v56 = vpop.permute.xlu1 %1440  ;;  %v5698_v32 = vpop.permute.xlu0 %1435 }
 0x233   : > { %7578 = vst [vmem:[#allocation149_spill] sm:$0xff] %v5696_v56  ;;  %7579 = vst [vmem:[#allocation150_spill] sm:$0xff] %v5698_v32  ;;  %4021 = vset.pattern.permute.xlu1 %v4408_v48  ;;  %4020 = vset.pattern.permute.xlu0 %v4408_v48  ;;  %v4025_v48 = vld [vmem:[%s7430_s1 + $0x18] sm:$0xff] }
 0x234   : > { %2010 = vperm.xlu1 %4021, %v4022_v31   ;;  %2006 = vperm.xlu0 %4020, %v4023_v63   ;;  %v4026_v63 = vld [vmem:[%s7430_s1 + $0x20] sm:$0xff] }
 0x236   : > { %v5706_v0 = vpop.permute.xlu1 %1450  ;;  %v5708_v15 = vpop.permute.xlu0 %1445 }
 0x237   : > { %7580 = vst [vmem:[#allocation151_spill] sm:$0xff] %v5706_v0  ;;  %7581 = vst [vmem:[#allocation152_spill] sm:$0xff] %v5708_v15  ;;  %v4027_v15 = vld [vmem:[%s7430_s1 + $0x28] sm:$0xff] }
 0x238   : > { %2014 = vperm.xlu1 %4021, %v4024_v16   ;;  %2018 = vperm.xlu0 %4020, %v4025_v48   ;;  %v4028_v48 = vld [vmem:[%s7430_s1 + $0x30] sm:$0xff] }
 0x23a   : > { %v5716_v31 = vpop.permute.xlu1 %1460  ;;  %v5718_v32 = vpop.permute.xlu0 %1455 }
 0x23b   : > { %7582 = vst [vmem:[#allocation153_spill] sm:$0xff] %v5716_v31  ;;  %7583 = vst [vmem:[#allocation154_spill] sm:$0xff] %v5718_v32  ;;  %v4029_v32 = vld [vmem:[%s7430_s1 + $0x38] sm:$0xff] }
 0x23c   : > { %2022 = vperm.xlu1 %4021, %v4026_v63   ;;  %2026 = vperm.xlu0 %4020, %v4027_v15   ;;  %v4030_v15 = vld [vmem:[%s7430_s1 + $0x40] sm:$0xff] }
 0x23e   : > { %v5726_v16 = vpop.permute.xlu1 %1470  ;;  %v5728_v0 = vpop.permute.xlu0 %1465 }
 0x23f   : > { %7584 = vst [vmem:[#allocation155_spill] sm:$0xff] %v5726_v16  ;;  %7585 = vst [vmem:[#allocation156_spill] sm:$0xff] %v5728_v0  ;;  %v4031_v0 = vld [vmem:[%s7430_s1 + $0x48] sm:$0xff] }
 0x240   : > { %2030 = vperm.xlu1 %4021, %v4028_v48   ;;  %2034 = vperm.xlu0 %4020, %v4029_v32   ;;  %v4032_v32 = vld [vmem:[%s7430_s1 + $0x50] sm:$0xff] }
 0x242   : > { %v5736_v63 = vpop.permute.xlu1 %1480  ;;  %v5738_v31 = vpop.permute.xlu0 %1475 }
 0x243   : > { %7586 = vst [vmem:[#allocation157_spill] sm:$0xff] %v5736_v63  ;;  %7587 = vst [vmem:[#allocation158_spill] sm:$0xff] %v5738_v31  ;;  %v4033_v31 = vld [vmem:[%s7430_s1 + $0x58] sm:$0xff] }
 0x244   : > { %2038 = vperm.xlu1 %4021, %v4030_v15   ;;  %2042 = vperm.xlu0 %4020, %v4031_v0   ;;  %v4034_v0 = vld [vmem:[%s7430_s1 + $0x60] sm:$0xff] }
 0x246   : > { %v5746_v48 = vpop.permute.xlu1 %1490  ;;  %v5748_v16 = vpop.permute.xlu0 %1485 }
 0x247   : > { %7588 = vst [vmem:[#allocation159_spill] sm:$0xff] %v5746_v48  ;;  %7589 = vst [vmem:[#allocation160_spill] sm:$0xff] %v5748_v16  ;;  %v4035_v16 = vld [vmem:[%s7430_s1 + $0x68] sm:$0xff] }
 0x248   : > { %2046 = vperm.xlu1 %4021, %v4032_v32   ;;  %2050 = vperm.xlu0 %4020, %v4033_v31   ;;  %v4036_v31 = vld [vmem:[%s7430_s1 + $0x70] sm:$0xff] }
 0x24a   : > { %v5756_v15 = vpop.permute.xlu1 %1500  ;;  %v5758_v63 = vpop.permute.xlu0 %1495 }
 0x24b   : > { %7590 = vst [vmem:[#allocation161_spill] sm:$0xff] %v5756_v15  ;;  %7591 = vst [vmem:[#allocation162_spill] sm:$0xff] %v5758_v63  ;;  %v4037_v63 = vld [vmem:[%s7430_s1 + $0x78] sm:$0xff] }
 0x24c   : > { %2054 = vperm.xlu1 %4021, %v4034_v0   ;;  %2058 = vperm.xlu0 %4020, %v4035_v16   ;;  %v4038_v16 = vld [vmem:[%s7430_s1 + $0x80] sm:$0xff] }
 0x24e   : > { %v5766_v32 = vpop.permute.xlu1 %1510  ;;  %v5768_v48 = vpop.permute.xlu0 %1505 }
 0x24f   : > { %7592 = vst [vmem:[#allocation163_spill] sm:$0xff] %v5766_v32  ;;  %7593 = vst [vmem:[#allocation164_spill] sm:$0xff] %v5768_v48  ;;  %v4039_v48 = vld [vmem:[%s7430_s1 + $0x88] sm:$0xff] }
 0x250   : > { %2062 = vperm.xlu1 %4021, %v4036_v31   ;;  %2066 = vperm.xlu0 %4020, %v4037_v63   ;;  %v4040_v63 = vld [vmem:[%s7430_s1 + $0x90] sm:$0xff] }
 0x252   : > { %v5776_v0 = vpop.permute.xlu1 %1520  ;;  %v5778_v15 = vpop.permute.xlu0 %1515 }
 0x253   : > { %7594 = vst [vmem:[#allocation165_spill] sm:$0xff] %v5776_v0  ;;  %7595 = vst [vmem:[#allocation166_spill] sm:$0xff] %v5778_v15  ;;  %v4041_v15 = vld [vmem:[%s7430_s1 + $0x98] sm:$0xff] }
 0x254   : > { %2070 = vperm.xlu1 %4021, %v4038_v16   ;;  %2074 = vperm.xlu0 %4020, %v4039_v48   ;;  %v4042_v48 = vld [vmem:[%s7430_s1 + $0xa0] sm:$0xff] }
 0x256   : > { %v5786_v31 = vpop.permute.xlu1 %1530  ;;  %v5788_v32 = vpop.permute.xlu0 %1525 }
 0x257   : > { %7596 = vst [vmem:[#allocation167_spill] sm:$0xff] %v5786_v31  ;;  %7597 = vst [vmem:[#allocation168_spill] sm:$0xff] %v5788_v32  ;;  %v4043_v32 = vld [vmem:[%s7430_s1 + $0xa8] sm:$0xff] }
 0x258   : > { %2078 = vperm.xlu1 %4021, %v4040_v63   ;;  %2082 = vperm.xlu0 %4020, %v4041_v15   ;;  %v4044_v15 = vld [vmem:[%s7430_s1 + $0xb0] sm:$0xff] }
 0x25a   : > { %v5796_v16 = vpop.permute.xlu1 %1540  ;;  %v5798_v0 = vpop.permute.xlu0 %1535 }
 0x25b   : > { %7598 = vst [vmem:[#allocation169_spill] sm:$0xff] %v5796_v16  ;;  %7599 = vst [vmem:[#allocation170_spill] sm:$0xff] %v5798_v0  ;;  %v4045_v0 = vld [vmem:[%s7430_s1 + $0xb8] sm:$0xff] }
 0x25c   : > { %2086 = vperm.xlu1 %4021, %v4042_v48   ;;  %2090 = vperm.xlu0 %4020, %v4043_v32   ;;  %v4046_v32 = vld [vmem:[%s7430_s1 + $0xc0] sm:$0xff] }
 0x25e   : > { %v5806_v63 = vpop.permute.xlu1 %1550  ;;  %v5808_v31 = vpop.permute.xlu0 %1545 }
 0x25f   : > { %7600 = vst [vmem:[#allocation171_spill] sm:$0xff] %v5806_v63  ;;  %7601 = vst [vmem:[#allocation172_spill] sm:$0xff] %v5808_v31  ;;  %v4047_v31 = vld [vmem:[%s7430_s1 + $0xc8] sm:$0xff] }
 0x260   : > { %2094 = vperm.xlu1 %4021, %v4044_v15   ;;  %2098 = vperm.xlu0 %4020, %v4045_v0   ;;  %v4048_v0 = vld [vmem:[%s7430_s1 + $0xd0] sm:$0xff] }
 0x262   : > { %v5816_v48 = vpop.permute.xlu1 %1560  ;;  %v5818_v16 = vpop.permute.xlu0 %1555 }
 0x263   : > { %7602 = vst [vmem:[#allocation173_spill] sm:$0xff] %v5816_v48  ;;  %7603 = vst [vmem:[#allocation174_spill] sm:$0xff] %v5818_v16  ;;  %v4049_v16 = vld [vmem:[%s7430_s1 + $0xd8] sm:$0xff] }
 0x264   : > { %2102 = vperm.xlu1 %4021, %v4046_v32   ;;  %2106 = vperm.xlu0 %4020, %v4047_v31   ;;  %v4050_v31 = vld [vmem:[%s7430_s1 + $0xe0] sm:$0xff] }
 0x266   : > { %v5826_v15 = vpop.permute.xlu1 %1570  ;;  %v5828_v63 = vpop.permute.xlu0 %1565 }
 0x267   : > { %7604 = vst [vmem:[#allocation175_spill] sm:$0xff] %v5826_v15  ;;  %7605 = vst [vmem:[#allocation176_spill] sm:$0xff] %v5828_v63  ;;  %v4051_v63 = vld [vmem:[%s7430_s1 + $0xe8] sm:$0xff] }
 0x268   : > { %2110 = vperm.xlu1 %4021, %v4048_v0   ;;  %2114 = vperm.xlu0 %4020, %v4049_v16   ;;  %v4052_v16 = vld [vmem:[%s7430_s1 + $0xf0] sm:$0xff] }
 0x26a   : > { %v5836_v32 = vpop.permute.xlu1 %1580  ;;  %v5838_v48 = vpop.permute.xlu0 %1575 }
 0x26b   : > { %7606 = vst [vmem:[#allocation177_spill] sm:$0xff] %v5836_v32  ;;  %7607 = vst [vmem:[#allocation178_spill] sm:$0xff] %v5838_v48  ;;  %v4053_v48 = vld [vmem:[%s7430_s1 + $0xf8] sm:$0xff] }
 0x26c   : > { %2118 = vperm.xlu1 %4021, %v4050_v31   ;;  %2122 = vperm.xlu0 %4020, %v4051_v63   ;;  %v4054_v63 = vld [vmem:[%s7430_s1 + $0x100] sm:$0xff] }
 0x26e   : > { %v5846_v0 = vpop.permute.xlu1 %1590  ;;  %v5848_v15 = vpop.permute.xlu0 %1585 }
 0x26f   : > { %7608 = vst [vmem:[#allocation179_spill] sm:$0xff] %v5846_v0  ;;  %7609 = vst [vmem:[#allocation180_spill] sm:$0xff] %v5848_v15  ;;  %v4055_v15 = vld [vmem:[%s7430_s1 + $0x108] sm:$0xff] }
 0x270   : > { %2126 = vperm.xlu1 %4021, %v4052_v16   ;;  %2130 = vperm.xlu0 %4020, %v4053_v48   ;;  %v4056_v48 = vld [vmem:[%s7430_s1 + $0x110] sm:$0xff] }
 0x272   : > { %v5856_v31 = vpop.permute.xlu1 %1600  ;;  %v5858_v32 = vpop.permute.xlu0 %1595 }
 0x273   : > { %7610 = vst [vmem:[#allocation181_spill] sm:$0xff] %v5856_v31  ;;  %7611 = vst [vmem:[#allocation182_spill] sm:$0xff] %v5858_v32  ;;  %v4057_v32 = vld [vmem:[%s7430_s1 + $0x118] sm:$0xff] }
 0x274   : > { %2134 = vperm.xlu1 %4021, %v4054_v63   ;;  %2138 = vperm.xlu0 %4020, %v4055_v15   ;;  %v4058_v15 = vld [vmem:[%s7430_s1 + $0x120] sm:$0xff] }
 0x276   : > { %v5866_v16 = vpop.permute.xlu1 %1610  ;;  %v5868_v0 = vpop.permute.xlu0 %1605 }
 0x277   : > { %7612 = vst [vmem:[#allocation183_spill] sm:$0xff] %v5866_v16  ;;  %7613 = vst [vmem:[#allocation184_spill] sm:$0xff] %v5868_v0  ;;  %v4059_v0 = vld [vmem:[%s7430_s1 + $0x128] sm:$0xff] }
 0x278   : > { %2142 = vperm.xlu1 %4021, %v4056_v48   ;;  %2146 = vperm.xlu0 %4020, %v4057_v32   ;;  %v4060_v32 = vld [vmem:[%s7430_s1 + $0x130] sm:$0xff] }
 0x27a   : > { %v5876_v63 = vpop.permute.xlu1 %1620  ;;  %v5878_v31 = vpop.permute.xlu0 %1615 }
 0x27b   : > { %7614 = vst [vmem:[#allocation185_spill] sm:$0xff] %v5876_v63  ;;  %7615 = vst [vmem:[#allocation186_spill] sm:$0xff] %v5878_v31  ;;  %v4061_v31 = vld [vmem:[%s7430_s1 + $0x138] sm:$0xff] }
 0x27c   : > { %2150 = vperm.xlu1 %4021, %v4058_v15   ;;  %2154 = vperm.xlu0 %4020, %v4059_v0   ;;  %v4062_v0 = vld [vmem:[%s7430_s1 + $0x140] sm:$0xff] }
 0x27e   : > { %v5886_v48 = vpop.permute.xlu1 %1630  ;;  %v5888_v16 = vpop.permute.xlu0 %1625 }
 0x27f   : > { %7616 = vst [vmem:[#allocation187_spill] sm:$0xff] %v5886_v48  ;;  %7617 = vst [vmem:[#allocation188_spill] sm:$0xff] %v5888_v16  ;;  %v4063_v16 = vld [vmem:[%s7430_s1 + $0x148] sm:$0xff] }
 0x280   : > { %2158 = vperm.xlu1 %4021, %v4060_v32   ;;  %2162 = vperm.xlu0 %4020, %v4061_v31   ;;  %v4064_v31 = vld [vmem:[%s7430_s1 + $0x150] sm:$0xff] }
 0x282   : > { %v5896_v15 = vpop.permute.xlu1 %1640  ;;  %v5898_v63 = vpop.permute.xlu0 %1635 }
 0x283   : > { %7618 = vst [vmem:[#allocation189_spill] sm:$0xff] %v5896_v15  ;;  %7619 = vst [vmem:[#allocation190_spill] sm:$0xff] %v5898_v63  ;;  %v4065_v63 = vld [vmem:[%s7430_s1 + $0x158] sm:$0xff] }
 0x284   : > { %2166 = vperm.xlu1 %4021, %v4062_v0   ;;  %2170 = vperm.xlu0 %4020, %v4063_v16   ;;  %v4066_v16 = vld [vmem:[%s7430_s1 + $0x160] sm:$0xff] }
 0x286   : > { %v5906_v32 = vpop.permute.xlu1 %1650  ;;  %v5908_v48 = vpop.permute.xlu0 %1645 }
 0x287   : > { %7620 = vst [vmem:[#allocation191_spill] sm:$0xff] %v5906_v32  ;;  %7621 = vst [vmem:[#allocation192_spill] sm:$0xff] %v5908_v48  ;;  %v4067_v48 = vld [vmem:[%s7430_s1 + $0x168] sm:$0xff] }
 0x288   : > { %2174 = vperm.xlu1 %4021, %v4064_v31   ;;  %2178 = vperm.xlu0 %4020, %v4065_v63   ;;  %v4068_v63 = vld [vmem:[%s7430_s1 + $0x170] sm:$0xff] }
 0x28a   : > { %v5916_v0 = vpop.permute.xlu1 %1660  ;;  %v5918_v15 = vpop.permute.xlu0 %1655 }
 0x28b   : > { %7622 = vst [vmem:[#allocation193_spill] sm:$0xff] %v5916_v0  ;;  %7623 = vst [vmem:[#allocation194_spill] sm:$0xff] %v5918_v15  ;;  %v4069_v15 = vld [vmem:[%s7430_s1 + $0x178] sm:$0xff] }
 0x28c   : > { %2182 = vperm.xlu1 %4021, %v4066_v16   ;;  %2186 = vperm.xlu0 %4020, %v4067_v48   ;;  %v4070_v48 = vld [vmem:[%s7430_s1 + $0x180] sm:$0xff] }
 0x28e   : > { %v5926_v31 = vpop.permute.xlu1 %1670  ;;  %v5928_v32 = vpop.permute.xlu0 %1665 }
 0x28f   : > { %7624 = vst [vmem:[#allocation195_spill] sm:$0xff] %v5926_v31  ;;  %7625 = vst [vmem:[#allocation196_spill] sm:$0xff] %v5928_v32  ;;  %v4071_v32 = vld [vmem:[%s7430_s1 + $0x188] sm:$0xff] }
 0x290   : > { %2190 = vperm.xlu1 %4021, %v4068_v63   ;;  %2194 = vperm.xlu0 %4020, %v4069_v15   ;;  %v4072_v15 = vld [vmem:[%s7430_s1 + $0x190] sm:$0xff] }
 0x292   : > { %v5936_v16 = vpop.permute.xlu1 %1680  ;;  %v5938_v0 = vpop.permute.xlu0 %1675 }
 0x293   : > { %7626 = vst [vmem:[#allocation197_spill] sm:$0xff] %v5936_v16  ;;  %7627 = vst [vmem:[#allocation198_spill] sm:$0xff] %v5938_v0  ;;  %v4073_v0 = vld [vmem:[%s7430_s1 + $0x198] sm:$0xff] }
 0x294   : > { %2198 = vperm.xlu1 %4021, %v4070_v48   ;;  %2202 = vperm.xlu0 %4020, %v4071_v32   ;;  %v4074_v32 = vld [vmem:[%s7430_s1 + $0x1a0] sm:$0xff] }
 0x296   : > { %v5946_v63 = vpop.permute.xlu1 %1690  ;;  %v5948_v31 = vpop.permute.xlu0 %1685 }
 0x297   : > { %7628 = vst [vmem:[#allocation199_spill] sm:$0xff] %v5946_v63  ;;  %7629 = vst [vmem:[#allocation200_spill] sm:$0xff] %v5948_v31  ;;  %v4075_v31 = vld [vmem:[%s7430_s1 + $0x1a8] sm:$0xff] }
 0x298   : > { %2206 = vperm.xlu1 %4021, %v4072_v15   ;;  %2210 = vperm.xlu0 %4020, %v4073_v0   ;;  %v4076_v0 = vld [vmem:[%s7430_s1 + $0x1b0] sm:$0xff] }
 0x29a   : > { %v5956_v48 = vpop.permute.xlu1 %1700  ;;  %v5958_v16 = vpop.permute.xlu0 %1695 }
 0x29b   : > { %7630 = vst [vmem:[#allocation201_spill] sm:$0xff] %v5956_v48  ;;  %7631 = vst [vmem:[#allocation202_spill] sm:$0xff] %v5958_v16  ;;  %v4077_v16 = vld [vmem:[%s7430_s1 + $0x1b8] sm:$0xff] }
 0x29c   : > { %2214 = vperm.xlu1 %4021, %v4074_v32   ;;  %2218 = vperm.xlu0 %4020, %v4075_v31   ;;  %v4078_v31 = vld [vmem:[%s7430_s1 + $0x1c0] sm:$0xff] }
 0x29e   : > { %v5966_v15 = vpop.permute.xlu1 %1710  ;;  %v5968_v63 = vpop.permute.xlu0 %1705 }
 0x29f   : > { %7632 = vst [vmem:[#allocation203_spill] sm:$0xff] %v5966_v15  ;;  %7633 = vst [vmem:[#allocation204_spill] sm:$0xff] %v5968_v63  ;;  %v4079_v63 = vld [vmem:[%s7430_s1 + $0x1c8] sm:$0xff] }
 0x2a0   : > { %2222 = vperm.xlu1 %4021, %v4076_v0   ;;  %2226 = vperm.xlu0 %4020, %v4077_v16   ;;  %v4080_v16 = vld [vmem:[%s7430_s1 + $0x1d0] sm:$0xff] }
 0x2a2   : > { %v5976_v32 = vpop.permute.xlu1 %1720  ;;  %v5978_v48 = vpop.permute.xlu0 %1715 }
 0x2a3   : > { %7634 = vst [vmem:[#allocation205_spill] sm:$0xff] %v5976_v32  ;;  %7635 = vst [vmem:[#allocation206_spill] sm:$0xff] %v5978_v48  ;;  %v4081_v48 = vld [vmem:[%s7430_s1 + $0x1d8] sm:$0xff] }
 0x2a4   : > { %2230 = vperm.xlu1 %4021, %v4078_v31   ;;  %2234 = vperm.xlu0 %4020, %v4079_v63   ;;  %v6001_v63 = vld [vmem:[%s4534_s6] ss:$0 sm:$0xff] }
 0x2a6   : > { %v5986_v0 = vpop.permute.xlu1 %1730  ;;  %v5988_v15 = vpop.permute.xlu0 %1725 }
 0x2a7   : > { %7636 = vst [vmem:[#allocation207_spill] sm:$0xff] %v5986_v0  ;;  %7637 = vst [vmem:[#allocation208_spill] sm:$0xff] %v5988_v15  ;;  %v4082_v15 = vld [vmem:[%s7430_s1 + $0x1e0] sm:$0xff]  ;;  %v1749_v0 = vmul.f32 %v6001_v63, %v4734_v2  ;;  %v1751_v2 = vmul.f32 %v6001_v63, %v4732_v1 }
 0x2a8   : > { %2238 = vperm.xlu1 %4021, %v4080_v16   ;;  %2242 = vperm.xlu0 %4020, %v4081_v48   ;;  %v4083_v16 = vld [vmem:[%s7430_s1 + $0x1e8] sm:$0xff]  ;;  %v1750_v48 = vmul.f32 %v6001_v63, %v4744_v6  ;;  %v1752_v6 = vmul.f32 %v6001_v63, %v4742_v5  ;;  %v4086_v1 = vld [vmem:[%s7430_s1 + $0x200] sm:$0xff] }
 0x2a9   : > { %v4087_v5 = vld [vmem:[%s7430_s1 + $0x208] sm:$0xff] }
 0x2aa   : > { %v5996_v31 = vpop.permute.xlu1 %1740  ;;  %v5998_v32 = vpop.permute.xlu0 %1735 }
 0x2ab   : > { %7638 = vst [vmem:[#allocation209_spill] sm:$0xff] %v5996_v31  ;;  %7639 = vst [vmem:[#allocation210_spill] sm:$0xff] %v5998_v32 }
 0x2ac   : > { %2246 = vperm.xlu1 %4021, %v4082_v15   ;;  %2250 = vperm.xlu0 %4020, %v4083_v16   ;;  %v4084_v15 = vld [vmem:[%s7430_s1 + $0x1f0] sm:$0xff]  ;;  %v4085_v16 = vld [vmem:[%s7430_s1 + $0x1f8] sm:$0xff] }
 0x2af   : > { %v2011_v32 = vpop.permute.xlu1 %2010  ;;  %v2007_v31 = vpop.permute.xlu0 %2006 }
 0x2b0   : > { %v3030_v56 = vadd.f32 %v2011_v32, %v1750_v48  ;;  %v3029_v47 = vadd.f32 %v2007_v31, %v1749_v0  ;;  %2254 = vperm.xlu1 %4021, %v4084_v15   ;;  %2258 = vperm.xlu0 %4020, %v4085_v16  }
 0x2b2   : > { %v3286_v55 = vmax.f32 %v3030_v56, 0.0  ;;  %v3285_v40 = vmax.f32 %v3029_v47, 0.0  ;;  %v1754_v56 = vmul.f32 %v6001_v63, %v4752_v9  ;;  %v1753_v47 = vmul.f32 %v6001_v63, %v4754_v10  ;;  %v4089_v9 = vld [vmem:[%s7430_s1 + $0x218] sm:$0xff] }
 0x2b3   : > { %v2015_v32 = vpop.permute.xlu1 %2014  ;;  %v2019_v0 = vpop.permute.xlu0 %2018  ;;  %v1756_v10 = vmul.f32 %v6001_v63, %v4762_v13  ;;  %v4091_v13 = vld [vmem:[%s7430_s1 + $0x228] sm:$0xff] }
 0x2b4   : > { %3542 = vst [vmem:[%s6024_s18 + $0x8] sm:$0xff] %v3286_v55  ;;  %3541 = vst [vmem:[%s6024_s18] sm:$0xff] %v3285_v40  ;;  %v3031_v31 = vadd.f32 %v2015_v32, %v1751_v2  ;;  %v3032_v48 = vadd.f32 %v2019_v0, %v1752_v6  ;;  %2262 = vperm.xlu1 %4021, %v4086_v1   ;;  %2266 = vperm.xlu0 %4020, %v4087_v5   ;;  %v4088_v32 = vld [vmem:[%s7430_s1 + $0x210] sm:$0xff] }
 0x2b5   : > { %v1755_v0 = vmul.f32 %v6001_v63, %v4764_v14  ;;  %v1758_v14 = vmul.f32 %v6001_v63, %v4772_v17  ;;  %v4093_v17 = vld [vmem:[%s7430_s1 + $0x238] sm:$0xff] }
 0x2b6   : > { %v3287_v55 = vmax.f32 %v3031_v31, 0.0  ;;  %v3288_v40 = vmax.f32 %v3032_v48, 0.0 }
 0x2b7   : > { %v2023_v15 = vpop.permute.xlu1 %2022  ;;  %v2027_v16 = vpop.permute.xlu0 %2026 }
 0x2b8   : > { %3543 = vst [vmem:[%s6024_s18 + $0x10] sm:$0xff] %v3287_v55  ;;  %3544 = vst [vmem:[%s6024_s18 + $0x18] sm:$0xff] %v3288_v40  ;;  %v3033_v2 = vadd.f32 %v2023_v15, %v1753_v47  ;;  %v3034_v6 = vadd.f32 %v2027_v16, %v1754_v56  ;;  %2270 = vperm.xlu1 %4021, %v4088_v32   ;;  %2274 = vperm.xlu0 %4020, %v4089_v9   ;;  %v4090_v55 = vld [vmem:[%s7430_s1 + $0x220] sm:$0xff] }
 0x2b9   : > { %v1757_v40 = vmul.f32 %v6001_v63, %v4774_v18  ;;  %v1760_v18 = vmul.f32 %v6001_v63, %v4782_v21  ;;  %v4095_v21 = vld [vmem:[%s7430_s1 + $0x248] sm:$0xff] }
 0x2ba   : > { %v3289_v31 = vmax.f32 %v3033_v2, 0.0  ;;  %v3290_v48 = vmax.f32 %v3034_v6, 0.0 }
 0x2bb   : > { %v2031_v1 = vpop.permute.xlu1 %2030  ;;  %v2035_v5 = vpop.permute.xlu0 %2034 }
 0x2bc   : > { %3545 = vst [vmem:[%s6024_s18 + $0x20] sm:$0xff] %v3289_v31  ;;  %3546 = vst [vmem:[%s6024_s18 + $0x28] sm:$0xff] %v3290_v48  ;;  %v3035_v56 = vadd.f32 %v2031_v1, %v1755_v0  ;;  %v3036_v47 = vadd.f32 %v2035_v5, %v1756_v10  ;;  %2278 = vperm.xlu1 %4021, %v4090_v55   ;;  %2282 = vperm.xlu0 %4020, %v4091_v13   ;;  %v4092_v10 = vld [vmem:[%s7430_s1 + $0x230] sm:$0xff]  ;;  %v4094_v55 = vld [vmem:[%s7430_s1 + $0x240] sm:$0xff] }
 0x2bd   : > { %v1759_v0 = vmul.f32 %v6001_v63, %v4784_v22  ;;  %v1762_v22 = vmul.f32 %v6001_v63, %v4792_v25  ;;  %v1761_v13 = vmul.f32 %v6001_v63, %v4794_v26  ;;  %v4097_v25 = vld [vmem:[%s7430_s1 + $0x258] sm:$0xff]  ;;  %v1764_v26 = vmul.f32 %v6001_v63, %v4802_v29  ;;  %v4099_v29 = vld [vmem:[%s7430_s1 + $0x268] sm:$0xff] }
 0x2be   : > { %v3291_v15 = vmax.f32 %v3035_v56, 0.0  ;;  %v3292_v16 = vmax.f32 %v3036_v47, 0.0 }
 0x2bf   : > { %v2039_v2 = vpop.permute.xlu1 %2038  ;;  %v2043_v6 = vpop.permute.xlu0 %2042 }
 0x2c0   : > { %3547 = vst [vmem:[%s6024_s18 + $0x30] sm:$0xff] %v3291_v15  ;;  %3548 = vst [vmem:[%s6024_s18 + $0x38] sm:$0xff] %v3292_v16  ;;  %v3037_v32 = vadd.f32 %v2039_v2, %v1757_v40  ;;  %v3038_v9 = vadd.f32 %v2043_v6, %v1758_v14  ;;  %2286 = vperm.xlu1 %4021, %v4092_v10   ;;  %2290 = vperm.xlu0 %4020, %v4093_v17  }
 0x2c2   : > { %v3293_v31 = vmax.f32 %v3037_v32, 0.0  ;;  %v3294_v48 = vmax.f32 %v3038_v9, 0.0  ;;  %v4096_v32 = vld [vmem:[%s7430_s1 + $0x250] sm:$0xff]  ;;  %v1763_v9 = vmul.f32 %v6001_v63, %v4804_v30  ;;  %v1766_v30 = vmul.f32 %v6001_v63, %v4812_v33  ;;  %v4101_v33 = vld [vmem:[%s7430_s1 + $0x278] sm:$0xff] }
 0x2c3   : > { %v2047_v1 = vpop.permute.xlu1 %2046  ;;  %v2051_v5 = vpop.permute.xlu0 %2050 }
 0x2c4   : > { %3549 = vst [vmem:[%s6024_s18 + $0x40] sm:$0xff] %v3293_v31  ;;  %3550 = vst [vmem:[%s6024_s18 + $0x48] sm:$0xff] %v3294_v48  ;;  %v3039_v56 = vadd.f32 %v2047_v1, %v1759_v0  ;;  %v3040_v47 = vadd.f32 %v2051_v5, %v1760_v18  ;;  %2294 = vperm.xlu1 %4021, %v4094_v55   ;;  %2298 = vperm.xlu0 %4020, %v4095_v21   ;;  %v4098_v1 = vld [vmem:[%s7430_s1 + $0x260] sm:$0xff] }
 0x2c5   : > { %v1765_v5 = vmul.f32 %v6001_v63, %v4814_v34  ;;  %v1768_v34 = vmul.f32 %v6001_v63, %v4822_v37  ;;  %v4103_v37 = vld [vmem:[%s7430_s1 + $0x288] sm:$0xff] }
 0x2c6   : > { %v3295_v14 = vmax.f32 %v3039_v56, 0.0  ;;  %v3296_v40 = vmax.f32 %v3040_v47, 0.0 }
 0x2c7   : > { %v2055_v15 = vpop.permute.xlu1 %2054  ;;  %v2059_v16 = vpop.permute.xlu0 %2058 }
 0x2c8   : > { %3551 = vst [vmem:[%s6024_s18 + $0x50] sm:$0xff] %v3295_v14  ;;  %3552 = vst [vmem:[%s6024_s18 + $0x58] sm:$0xff] %v3296_v40  ;;  %v3041_v2 = vadd.f32 %v2055_v15, %v1761_v13  ;;  %v3042_v6 = vadd.f32 %v2059_v16, %v1762_v22  ;;  %2302 = vperm.xlu1 %4021, %v4096_v32   ;;  %2306 = vperm.xlu0 %4020, %v4097_v25   ;;  %v4100_v14 = vld [vmem:[%s7430_s1 + $0x270] sm:$0xff] }
 0x2c9   : > { %v1767_v40 = vmul.f32 %v6001_v63, %v4824_v38  ;;  %v1770_v38 = vmul.f32 %v6001_v63, %v4832_v41  ;;  %v4105_v41 = vld [vmem:[%s7430_s1 + $0x298] sm:$0xff] }
 0x2ca   : > { %v3297_v10 = vmax.f32 %v3041_v2, 0.0  ;;  %v3298_v17 = vmax.f32 %v3042_v6, 0.0 }
 0x2cb   : > { %v2063_v18 = vpop.permute.xlu1 %2062  ;;  %v2067_v0 = vpop.permute.xlu0 %2066 }
 0x2cc   : > { %3553 = vst [vmem:[%s6024_s18 + $0x60] sm:$0xff] %v3297_v10  ;;  %3554 = vst [vmem:[%s6024_s18 + $0x68] sm:$0xff] %v3298_v17  ;;  %v3043_v31 = vadd.f32 %v2063_v18, %v1763_v9  ;;  %v3044_v48 = vadd.f32 %v2067_v0, %v1764_v26  ;;  %2310 = vperm.xlu1 %4021, %v4098_v1   ;;  %2314 = vperm.xlu0 %4020, %v4099_v29   ;;  %v4102_v26 = vld [vmem:[%s7430_s1 + $0x280] sm:$0xff]  ;;  %v4104_v1 = vld [vmem:[%s7430_s1 + $0x290] sm:$0xff] }
 0x2cd   : > { %v1769_v9 = vmul.f32 %v6001_v63, %v4834_v42  ;;  %v1772_v42 = vmul.f32 %v6001_v63, %v4842_v45  ;;  %v1771_v29 = vmul.f32 %v6001_v63, %v4844_v46  ;;  %v4107_v45 = vld [vmem:[%s7430_s1 + $0x2a8] sm:$0xff]  ;;  %v1774_v46 = vmul.f32 %v6001_v63, %v4852_v49  ;;  %v4109_v49 = vld [vmem:[%s7430_s1 + $0x2b8] sm:$0xff] }
 0x2ce   : > { %v3299_v56 = vmax.f32 %v3043_v31, 0.0  ;;  %v3300_v47 = vmax.f32 %v3044_v48, 0.0 }
 0x2cf   : > { %v2071_v55 = vpop.permute.xlu1 %2070  ;;  %v2075_v21 = vpop.permute.xlu0 %2074 }
 0x2d0   : > { %3555 = vst [vmem:[%s6024_s18 + $0x70] sm:$0xff] %v3299_v56  ;;  %3556 = vst [vmem:[%s6024_s18 + $0x78] sm:$0xff] %v3300_v47  ;;  %v3045_v22 = vadd.f32 %v2071_v55, %v1765_v5  ;;  %v3046_v13 = vadd.f32 %v2075_v21, %v1766_v30  ;;  %2318 = vperm.xlu1 %4021, %v4100_v14   ;;  %2322 = vperm.xlu0 %4020, %v4101_v33  }
 0x2d2   : > { %v3301_v15 = vmax.f32 %v3045_v22, 0.0  ;;  %v3302_v16 = vmax.f32 %v3046_v13, 0.0  ;;  %v4106_v22 = vld [vmem:[%s7430_s1 + $0x2a0] sm:$0xff]  ;;  %v1773_v13 = vmul.f32 %v6001_v63, %v4854_v50  ;;  %v1776_v50 = vmul.f32 %v6001_v63, %v4862_v53  ;;  %v4111_v53 = vld [vmem:[%s7430_s1 + $0x2c8] sm:$0xff] }
 0x2d3   : > { %v2079_v2 = vpop.permute.xlu1 %2078  ;;  %v2083_v6 = vpop.permute.xlu0 %2082 }
 0x2d4   : > { %3557 = vst [vmem:[%s6024_s18 + $0x80] sm:$0xff] %v3301_v15  ;;  %3558 = vst [vmem:[%s6024_s18 + $0x88] sm:$0xff] %v3302_v16  ;;  %v3047_v32 = vadd.f32 %v2079_v2, %v1767_v40  ;;  %v3048_v25 = vadd.f32 %v2083_v6, %v1768_v34  ;;  %2326 = vperm.xlu1 %4021, %v4102_v26   ;;  %2330 = vperm.xlu0 %4020, %v4103_v37   ;;  %v4108_v2 = vld [vmem:[%s7430_s1 + $0x2b0] sm:$0xff] }
 0x2d5   : > { %v1775_v6 = vmul.f32 %v6001_v63, %v4864_v54  ;;  %v1778_v54 = vmul.f32 %v6001_v63, %v4872_v57  ;;  %v4113_v57 = vld [vmem:[%s7430_s1 + $0x2d8] sm:$0xff] }
 0x2d6   : > { %v3303_v10 = vmax.f32 %v3047_v32, 0.0  ;;  %v3304_v17 = vmax.f32 %v3048_v25, 0.0 }
 0x2d7   : > { %v2087_v18 = vpop.permute.xlu1 %2086  ;;  %v2091_v0 = vpop.permute.xlu0 %2090 }
 0x2d8   : > { %3559 = vst [vmem:[%s6024_s18 + $0x90] sm:$0xff] %v3303_v10  ;;  %3560 = vst [vmem:[%s6024_s18 + $0x98] sm:$0xff] %v3304_v17  ;;  %v3049_v31 = vadd.f32 %v2087_v18, %v1769_v9  ;;  %v3050_v48 = vadd.f32 %v2091_v0, %v1770_v38  ;;  %2334 = vperm.xlu1 %4021, %v4104_v1   ;;  %2338 = vperm.xlu0 %4020, %v4105_v41   ;;  %v4110_v10 = vld [vmem:[%s7430_s1 + $0x2c0] sm:$0xff] }
 0x2d9   : > { %v1777_v17 = vmul.f32 %v6001_v63, %v4874_v58  ;;  %v1780_v58 = vmul.f32 %v6001_v63, %v4882_v61  ;;  %v4115_v61 = vld [vmem:[%s7430_s1 + $0x2e8] sm:$0xff] }
 0x2da   : > { %v3305_v30 = vmax.f32 %v3049_v31, 0.0  ;;  %v3306_v5 = vmax.f32 %v3050_v48, 0.0 }
 0x2db   : > { %v2095_v56 = vpop.permute.xlu1 %2094  ;;  %v2099_v47 = vpop.permute.xlu0 %2098 }
 0x2dc   : > { %3561 = vst [vmem:[%s6024_s18 + $0xa0] sm:$0xff] %v3305_v30  ;;  %3562 = vst [vmem:[%s6024_s18 + $0xa8] sm:$0xff] %v3306_v5  ;;  %v3051_v55 = vadd.f32 %v2095_v56, %v1771_v29  ;;  %v3052_v21 = vadd.f32 %v2099_v47, %v1772_v42  ;;  %2342 = vperm.xlu1 %4021, %v4106_v22   ;;  %2346 = vperm.xlu0 %4020, %v4107_v45   ;;  %v4112_v42 = vld [vmem:[%s7430_s1 + $0x2d0] sm:$0xff]  ;;  %v4114_v22 = vld [vmem:[%s7430_s1 + $0x2e0] sm:$0xff] }
 0x2dd   : > { %v1779_v29 = vmul.f32 %v6001_v63, %v4884_v62  ;;  %v1782_v62 = vmul.f32 %v6001_v63, %v4892_v3  ;;  %v1781_v45 = vmul.f32 %v6001_v63, %v4894_v4  ;;  %v4117_v3 = vld [vmem:[%s7430_s1 + $0x2f8] sm:$0xff]  ;;  %v1784_v4 = vmul.f32 %v6001_v63, %v4902_v11  ;;  %v4119_v11 = vld [vmem:[%s7430_s1 + $0x308] sm:$0xff] }
 0x2de   : > { %v3307_v14 = vmax.f32 %v3051_v55, 0.0  ;;  %v3308_v33 = vmax.f32 %v3052_v21, 0.0 }
 0x2df   : > { %v2103_v34 = vpop.permute.xlu1 %2102  ;;  %v2107_v40 = vpop.permute.xlu0 %2106 }
 0x2e0   : > { %3563 = vst [vmem:[%s6024_s18 + $0xb0] sm:$0xff] %v3307_v14  ;;  %3564 = vst [vmem:[%s6024_s18 + $0xb8] sm:$0xff] %v3308_v33  ;;  %v3053_v15 = vadd.f32 %v2103_v34, %v1773_v13  ;;  %v3054_v16 = vadd.f32 %v2107_v40, %v1774_v46  ;;  %2350 = vperm.xlu1 %4021, %v4108_v2   ;;  %2354 = vperm.xlu0 %4020, %v4109_v49  }
 0x2e2   : > { %v3309_v32 = vmax.f32 %v3053_v15, 0.0  ;;  %v3310_v25 = vmax.f32 %v3054_v16, 0.0  ;;  %v4116_v15 = vld [vmem:[%s7430_s1 + $0x2f0] sm:$0xff]  ;;  %v1783_v16 = vmul.f32 %v6001_v63, %v4904_v12  ;;  %v1786_v12 = vmul.f32 %v6001_v63, %v4912_v19  ;;  %v4121_v19 = vld [vmem:[%s7430_s1 + $0x318] sm:$0xff] }
 0x2e3   : > { %v2111_v26 = vpop.permute.xlu1 %2110  ;;  %v2115_v37 = vpop.permute.xlu0 %2114 }
 0x2e4   : > { %3565 = vst [vmem:[%s6024_s18 + $0xc0] sm:$0xff] %v3309_v32  ;;  %3566 = vst [vmem:[%s6024_s18 + $0xc8] sm:$0xff] %v3310_v25  ;;  %v3055_v38 = vadd.f32 %v2111_v26, %v1775_v6  ;;  %v3056_v9 = vadd.f32 %v2115_v37, %v1776_v50  ;;  %2358 = vperm.xlu1 %4021, %v4110_v10   ;;  %2362 = vperm.xlu0 %4020, %v4111_v53   ;;  %v4118_v26 = vld [vmem:[%s7430_s1 + $0x300] sm:$0xff] }
 0x2e5   : > { %v1785_v37 = vmul.f32 %v6001_v63, %v4914_v20  ;;  %v1788_v20 = vmul.f32 %v6001_v63, %v4922_v27  ;;  %v4123_v27 = vld [vmem:[%s7430_s1 + $0x328] sm:$0xff] }
 0x2e6   : > { %v3311_v18 = vmax.f32 %v3055_v38, 0.0  ;;  %v3312_v0 = vmax.f32 %v3056_v9, 0.0 }
 0x2e7   : > { %v2119_v31 = vpop.permute.xlu1 %2118  ;;  %v2123_v48 = vpop.permute.xlu0 %2122 }
 0x2e8   : > { %3567 = vst [vmem:[%s6024_s18 + $0xd0] sm:$0xff] %v3311_v18  ;;  %3568 = vst [vmem:[%s6024_s18 + $0xd8] sm:$0xff] %v3312_v0  ;;  %v3057_v1 = vadd.f32 %v2119_v31, %v1777_v17  ;;  %v3058_v41 = vadd.f32 %v2123_v48, %v1778_v54  ;;  %2366 = vperm.xlu1 %4021, %v4112_v42   ;;  %2370 = vperm.xlu0 %4020, %v4113_v57   ;;  %v4120_v18 = vld [vmem:[%s7430_s1 + $0x310] sm:$0xff] }
 0x2e9   : > { %v1787_v0 = vmul.f32 %v6001_v63, %v4924_v28  ;;  %v1790_v28 = vmul.f32 %v6001_v63, %v4932_v35  ;;  %v4125_v35 = vld [vmem:[%s7430_s1 + $0x338] sm:$0xff] }
 0x2ea   : > { %v3313_v30 = vmax.f32 %v3057_v1, 0.0  ;;  %v3314_v5 = vmax.f32 %v3058_v41, 0.0 }
 0x2eb   : > { %v2127_v56 = vpop.permute.xlu1 %2126  ;;  %v2131_v47 = vpop.permute.xlu0 %2130 }
 0x2ec   : > { %3569 = vst [vmem:[%s6024_s18 + $0xe0] sm:$0xff] %v3313_v30  ;;  %3570 = vst [vmem:[%s6024_s18 + $0xe8] sm:$0xff] %v3314_v5  ;;  %v3059_v55 = vadd.f32 %v2127_v56, %v1779_v29  ;;  %v3060_v21 = vadd.f32 %v2131_v47, %v1780_v58  ;;  %2374 = vperm.xlu1 %4021, %v4114_v22   ;;  %2378 = vperm.xlu0 %4020, %v4115_v61   ;;  %v4122_v58 = vld [vmem:[%s7430_s1 + $0x320] sm:$0xff]  ;;  %v4124_v22 = vld [vmem:[%s7430_s1 + $0x330] sm:$0xff] }
 0x2ed   : > { %v1789_v29 = vmul.f32 %v6001_v63, %v4934_v36  ;;  %v1792_v36 = vmul.f32 %v6001_v63, %v4942_v43  ;;  %v1791_v61 = vmul.f32 %v6001_v63, %v4944_v44  ;;  %v4127_v43 = vld [vmem:[%s7430_s1 + $0x348] sm:$0xff]  ;;  %v1794_v44 = vmul.f32 %v6001_v63, %v4952_v51  ;;  %v4129_v51 = vld [vmem:[%s7430_s1 + $0x358] sm:$0xff] }
 0x2ee   : > { %v3315_v46 = vmax.f32 %v3059_v55, 0.0  ;;  %v3316_v13 = vmax.f32 %v3060_v21, 0.0 }
 0x2ef   : > { %v2135_v14 = vpop.permute.xlu1 %2134  ;;  %v2139_v33 = vpop.permute.xlu0 %2138 }
 0x2f0   : > { %3571 = vst [vmem:[%s6024_s18 + $0xf0] sm:$0xff] %v3315_v46  ;;  %3572 = vst [vmem:[%s6024_s18 + $0xf8] sm:$0xff] %v3316_v13  ;;  %v3061_v34 = vadd.f32 %v2135_v14, %v1781_v45  ;;  %v3062_v40 = vadd.f32 %v2139_v33, %v1782_v62  ;;  %2382 = vperm.xlu1 %4021, %v4116_v15   ;;  %2386 = vperm.xlu0 %4020, %v4117_v3  }
 0x2f2   : > { %v3317_v2 = vmax.f32 %v3061_v34, 0.0  ;;  %v3318_v49 = vmax.f32 %v3062_v40, 0.0  ;;  %v4126_v34 = vld [vmem:[%s7430_s1 + $0x340] sm:$0xff]  ;;  %v1793_v40 = vmul.f32 %v6001_v63, %v4954_v52  ;;  %v1796_v52 = vmul.f32 %v6001_v63, %v4962_v59  ;;  %v4131_v59 = vld [vmem:[%s7430_s1 + $0x368] sm:$0xff] }
 0x2f3   : > { %v2143_v50 = vpop.permute.xlu1 %2142  ;;  %v2147_v6 = vpop.permute.xlu0 %2146 }
 0x2f4   : > { %3573 = vst [vmem:[%s6024_s18 + $0x100] sm:$0xff] %v3317_v2  ;;  %3574 = vst [vmem:[%s6024_s18 + $0x108] sm:$0xff] %v3318_v49  ;;  %v3063_v32 = vadd.f32 %v2143_v50, %v1783_v16  ;;  %v3064_v25 = vadd.f32 %v2147_v6, %v1784_v4  ;;  %2390 = vperm.xlu1 %4021, %v4118_v26   ;;  %2394 = vperm.xlu0 %4020, %v4119_v11   ;;  %v4128_v50 = vld [vmem:[%s7430_s1 + $0x350] sm:$0xff] }
 0x2f5   : > { %v1795_v6 = vmul.f32 %v6001_v63, %v4964_v60  ;;  %v1798_v60 = vmul.f32 %v6001_v63, %v4972_v7  ;;  %v4133_v7 = vld [vmem:[%s7430_s1 + $0x378] sm:$0xff] }
 0x2f6   : > { %v3319_v38 = vmax.f32 %v3063_v32, 0.0  ;;  %v3320_v9 = vmax.f32 %v3064_v25, 0.0 }
 0x2f7   : > { %v2151_v10 = vpop.permute.xlu1 %2150  ;;  %v2155_v53 = vpop.permute.xlu0 %2154 }
 0x2f8   : > { %3575 = vst [vmem:[%s6024_s18 + $0x110] sm:$0xff] %v3319_v38  ;;  %3576 = vst [vmem:[%s6024_s18 + $0x118] sm:$0xff] %v3320_v9  ;;  %v3065_v54 = vadd.f32 %v2151_v10, %v1785_v37  ;;  %v3066_v17 = vadd.f32 %v2155_v53, %v1786_v12  ;;  %2398 = vperm.xlu1 %4021, %v4120_v18   ;;  %2402 = vperm.xlu0 %4020, %v4121_v19   ;;  %v4130_v38 = vld [vmem:[%s7430_s1 + $0x360] sm:$0xff] }
 0x2f9   : > { %v1797_v9 = vmul.f32 %v6001_v63, %v4974_v8  ;;  %v1800_v8 = vmul.f32 %v6001_v63, %v4982_v23  ;;  %v4135_v23 = vld [vmem:[%s7430_s1 + $0x388] sm:$0xff] }
 0x2fa   : > { %v3321_v31 = vmax.f32 %v3065_v54, 0.0  ;;  %v3322_v48 = vmax.f32 %v3066_v17, 0.0 }
 0x2fb   : > { %v2159_v1 = vpop.permute.xlu1 %2158  ;;  %v2163_v41 = vpop.permute.xlu0 %2162 }
 0x2fc   : > { %3577 = vst [vmem:[%s6024_s18 + $0x120] sm:$0xff] %v3321_v31  ;;  %3578 = vst [vmem:[%s6024_s18 + $0x128] sm:$0xff] %v3322_v48  ;;  %v3067_v42 = vadd.f32 %v2159_v1, %v1787_v0  ;;  %v3068_v57 = vadd.f32 %v2163_v41, %v1788_v20  ;;  %2406 = vperm.xlu1 %4021, %v4122_v58   ;;  %2410 = vperm.xlu0 %4020, %v4123_v27   ;;  %v4132_v20 = vld [vmem:[%s7430_s1 + $0x370] sm:$0xff]  ;;  %v4134_v58 = vld [vmem:[%s7430_s1 + $0x380] sm:$0xff] }
 0x2fd   : > { %v1799_v0 = vmul.f32 %v6001_v63, %v4984_v24  ;;  %v1802_v24 = vmul.f32 %v6001_v63, %v4992_v39  ;;  %v7640_v27 = vld [vmem:[#allocation8_spill] sm:$0xff]  ;;  %v4137_v39 = vld [vmem:[%s7430_s1 + $0x398] sm:$0xff] }
 0x2fe   : > { %v3323_v30 = vmax.f32 %v3067_v42, 0.0  ;;  %v3324_v5 = vmax.f32 %v3068_v57, 0.0 }
 0x2ff   : > { %v2167_v56 = vpop.permute.xlu1 %2166  ;;  %v2171_v47 = vpop.permute.xlu0 %2170 }
 0x300   : > { %3579 = vst [vmem:[%s6024_s18 + $0x130] sm:$0xff] %v3323_v30  ;;  %3580 = vst [vmem:[%s6024_s18 + $0x138] sm:$0xff] %v3324_v5  ;;  %v3069_v55 = vadd.f32 %v2167_v56, %v1789_v29  ;;  %v3070_v21 = vadd.f32 %v2171_v47, %v1790_v28  ;;  %2414 = vperm.xlu1 %4021, %v4124_v22   ;;  %2418 = vperm.xlu0 %4020, %v4125_v35   ;;  %v7641_v22 = vld [vmem:[#allocation9_spill] sm:$0xff] }
 0x301   : > { %v1801_v28 = vmul.f32 %v6001_v63, %v7640_v27  ;;  %v1804_v35 = vmul.f32 %v6001_v63, %v7641_v22 }
 0x302   : > { %v3325_v62 = vmax.f32 %v3069_v55, 0.0  ;;  %v3326_v45 = vmax.f32 %v3070_v21, 0.0  ;;  %v4136_v21 = vld [vmem:[%s7430_s1 + $0x390] sm:$0xff] }
 0x303   : > { %v2175_v46 = vpop.permute.xlu1 %2174  ;;  %v2179_v13 = vpop.permute.xlu0 %2178 }
 0x304   : > { %3581 = vst [vmem:[%s6024_s18 + $0x140] sm:$0xff] %v3325_v62  ;;  %3582 = vst [vmem:[%s6024_s18 + $0x148] sm:$0xff] %v3326_v45  ;;  %v3071_v14 = vadd.f32 %v2175_v46, %v1791_v61  ;;  %v3072_v33 = vadd.f32 %v2179_v13, %v1792_v36  ;;  %2422 = vperm.xlu1 %4021, %v4126_v34   ;;  %2426 = vperm.xlu0 %4020, %v4127_v43   ;;  %v7642_v36 = vld [vmem:[#allocation10_spill] sm:$0xff]  ;;  %v4138_v34 = vld [vmem:[%s7430_s1 + $0x3a0] sm:$0xff] }
 0x305   : > { %v1803_v61 = vmul.f32 %v6001_v63, %v7642_v36  ;;  %v4139_v43 = vld [vmem:[%s7430_s1 + $0x3a8] sm:$0xff] }
 0x306   : > { %v3327_v15 = vmax.f32 %v3071_v14, 0.0  ;;  %v3328_v3 = vmax.f32 %v3072_v33, 0.0 }
 0x307   : > { %v2183_v4 = vpop.permute.xlu1 %2182  ;;  %v2187_v16 = vpop.permute.xlu0 %2186 }
 0x308   : > { %3583 = vst [vmem:[%s6024_s18 + $0x150] sm:$0xff] %v3327_v15  ;;  %3584 = vst [vmem:[%s6024_s18 + $0x158] sm:$0xff] %v3328_v3  ;;  %v3073_v2 = vadd.f32 %v2183_v4, %v1793_v40  ;;  %v3074_v49 = vadd.f32 %v2187_v16, %v1794_v44  ;;  %2430 = vperm.xlu1 %4021, %v4128_v50   ;;  %2434 = vperm.xlu0 %4020, %v4129_v51   ;;  %v7643_v44 = vld [vmem:[#allocation11_spill] sm:$0xff]  ;;  %v7644_v15 = vld [vmem:[#allocation12_spill] sm:$0xff] }
 0x309   : > { %v1806_v40 = vmul.f32 %v6001_v63, %v7643_v44  ;;  %v1805_v3 = vmul.f32 %v6001_v63, %v7644_v15 }
 0x30a   : > { %v3329_v32 = vmax.f32 %v3073_v2, 0.0  ;;  %v3330_v25 = vmax.f32 %v3074_v49, 0.0 }
 0x30b   : > { %v2191_v26 = vpop.permute.xlu1 %2190  ;;  %v2195_v11 = vpop.permute.xlu0 %2194 }
 0x30c   : > { %3585 = vst [vmem:[%s6024_s18 + $0x160] sm:$0xff] %v3329_v32  ;;  %3586 = vst [vmem:[%s6024_s18 + $0x168] sm:$0xff] %v3330_v25  ;;  %v3075_v12 = vadd.f32 %v2191_v26, %v1795_v6  ;;  %v3076_v37 = vadd.f32 %v2195_v11, %v1796_v52  ;;  %2438 = vperm.xlu1 %4021, %v4130_v38   ;;  %2442 = vperm.xlu0 %4020, %v4131_v59   ;;  %v4140_v52 = vld [vmem:[%s7430_s1 + $0x3b0] sm:$0xff]  ;;  %v4141_v6 = vld [vmem:[%s7430_s1 + $0x3b8] sm:$0xff] }
 0x30d   : > { %v7645_v32 = vld [vmem:[#allocation13_spill] sm:$0xff]  ;;  %v7646_v26 = vld [vmem:[#allocation14_spill] sm:$0xff] }
 0x30e   : > { %v3331_v10 = vmax.f32 %v3075_v12, 0.0  ;;  %v3332_v53 = vmax.f32 %v3076_v37, 0.0  ;;  %v1808_v25 = vmul.f32 %v6001_v63, %v7645_v32  ;;  %v1807_v11 = vmul.f32 %v6001_v63, %v7646_v26 }
 0x30f   : > { %v2199_v54 = vpop.permute.xlu1 %2198  ;;  %v2203_v17 = vpop.permute.xlu0 %2202 }
 0x310   : > { %3587 = vst [vmem:[%s6024_s18 + $0x170] sm:$0xff] %v3331_v10  ;;  %3588 = vst [vmem:[%s6024_s18 + $0x178] sm:$0xff] %v3332_v53  ;;  %v3077_v18 = vadd.f32 %v2199_v54, %v1797_v9  ;;  %v3078_v19 = vadd.f32 %v2203_v17, %v1798_v60  ;;  %2446 = vperm.xlu1 %4021, %v4132_v20   ;;  %2450 = vperm.xlu0 %4020, %v4133_v7   ;;  %v4142_v10 = vld [vmem:[%s7430_s1 + $0x3c0] sm:$0xff]  ;;  %v4143_v53 = vld [vmem:[%s7430_s1 + $0x3c8] sm:$0xff] }
 0x311   : > { %v7647_v54 = vld [vmem:[#allocation15_spill] sm:$0xff] }
 0x312   : > { %v3333_v31 = vmax.f32 %v3077_v18, 0.0  ;;  %v3334_v48 = vmax.f32 %v3078_v19, 0.0  ;;  %v1810_v17 = vmul.f32 %v6001_v63, %v7647_v54  ;;  %v7648_v18 = vld [vmem:[#allocation16_spill] sm:$0xff] }
 0x313   : > { %v2207_v1 = vpop.permute.xlu1 %2206  ;;  %v2211_v41 = vpop.permute.xlu0 %2210  ;;  %v1809_v19 = vmul.f32 %v6001_v63, %v7648_v18 }
 0x314   : > { %3589 = vst [vmem:[%s6024_s18 + $0x180] sm:$0xff] %v3333_v31  ;;  %3590 = vst [vmem:[%s6024_s18 + $0x188] sm:$0xff] %v3334_v48  ;;  %v3079_v42 = vadd.f32 %v2207_v1, %v1799_v0  ;;  %v3080_v57 = vadd.f32 %v2211_v41, %v1800_v8  ;;  %2454 = vperm.xlu1 %4021, %v4134_v58   ;;  %2458 = vperm.xlu0 %4020, %v4135_v23   ;;  %v4144_v1 = vld [vmem:[%s7430_s1 + $0x3d0] sm:$0xff]  ;;  %v4145_v41 = vld [vmem:[%s7430_s1 + $0x3d8] sm:$0xff] }
 0x315   : > { %v7650_v58 = vld [vmem:[#allocation18_spill] sm:$0xff] }
 0x316   : > { %v3335_v29 = vmax.f32 %v3079_v42, 0.0  ;;  %v3336_v30 = vmax.f32 %v3080_v57, 0.0  ;;  %v7649_v42 = vld [vmem:[#allocation17_spill] sm:$0xff]  ;;  %v1811_v23 = vmul.f32 %v6001_v63, %v7650_v58 }
 0x317   : > { %v2215_v5 = vpop.permute.xlu1 %2214  ;;  %v2219_v56 = vpop.permute.xlu0 %2218  ;;  %v1812_v57 = vmul.f32 %v6001_v63, %v7649_v42 }
 0x318   : > { %3591 = vst [vmem:[%s6024_s18 + $0x190] sm:$0xff] %v3335_v29  ;;  %3592 = vst [vmem:[%s6024_s18 + $0x198] sm:$0xff] %v3336_v30  ;;  %v3081_v47 = vadd.f32 %v2215_v5, %v1801_v28  ;;  %v3082_v55 = vadd.f32 %v2219_v56, %v1802_v24  ;;  %2462 = vperm.xlu1 %4021, %v4136_v21   ;;  %2466 = vperm.xlu0 %4020, %v4137_v39   ;;  %v4146_v56 = vld [vmem:[%s7430_s1 + $0x3e0] sm:$0xff] }
 0x319   : > { %v7652_v39 = vld [vmem:[#allocation20_spill] sm:$0xff] }
 0x31a   : > { %v3337_v62 = vmax.f32 %v3081_v47, 0.0  ;;  %v3338_v45 = vmax.f32 %v3082_v55, 0.0  ;;  %v4147_v47 = vld [vmem:[%s7430_s1 + $0x3e8] sm:$0xff]  ;;  %v7651_v55 = vld [vmem:[#allocation19_spill] sm:$0xff]  ;;  %v1813_v22 = vmul.f32 %v6001_v63, %v7652_v39 }
 0x31b   : > { %v2223_v46 = vpop.permute.xlu1 %2222  ;;  %v2227_v13 = vpop.permute.xlu0 %2226  ;;  %v1814_v21 = vmul.f32 %v6001_v63, %v7651_v55 }
 0x31c   : > { %3593 = vst [vmem:[%s6024_s18 + $0x1a0] sm:$0xff] %v3337_v62  ;;  %3594 = vst [vmem:[%s6024_s18 + $0x1a8] sm:$0xff] %v3338_v45  ;;  %v3083_v14 = vadd.f32 %v2223_v46, %v1803_v61  ;;  %v3084_v33 = vadd.f32 %v2227_v13, %v1804_v35  ;;  %2470 = vperm.xlu1 %4021, %v4138_v34   ;;  %2474 = vperm.xlu0 %4020, %v4139_v43   ;;  %v4148_v13 = vld [vmem:[%s7430_s1 + $0x3f0] sm:$0xff] }
 0x31d   : > { %v7654_v43 = vld [vmem:[#allocation22_spill] sm:$0xff] }
 0x31e   : > { %v3339_v4 = vmax.f32 %v3083_v14, 0.0  ;;  %v3340_v16 = vmax.f32 %v3084_v33, 0.0  ;;  %v4149_v14 = vld [vmem:[%s7430_s1 + $0x3f8] sm:$0xff]  ;;  %v7653_v33 = vld [vmem:[#allocation21_spill] sm:$0xff]  ;;  %v1815_v44 = vmul.f32 %v6001_v63, %v7654_v43 }
 0x31f   : > { %v2231_v2 = vpop.permute.xlu1 %2230  ;;  %v2235_v49 = vpop.permute.xlu0 %2234  ;;  %v1816_v34 = vmul.f32 %v6001_v63, %v7653_v33 }
 0x320   : > { %3595 = vst [vmem:[%s6024_s18 + $0x1b0] sm:$0xff] %v3339_v4  ;;  %3596 = vst [vmem:[%s6024_s18 + $0x1b8] sm:$0xff] %v3340_v16  ;;  %v3085_v50 = vadd.f32 %v2231_v2, %v1805_v3  ;;  %v3086_v51 = vadd.f32 %v2235_v49, %v1806_v40  ;;  %2478 = vperm.xlu1 %4021, %v4140_v52   ;;  %2482 = vperm.xlu0 %4020, %v4141_v6   ;;  %v4150_v49 = vld [vmem:[%s7430_s1 + $0x400] sm:$0xff] }
 0x321   : > { %v7656_v6 = vld [vmem:[#allocation24_spill] sm:$0xff] }
 0x322   : > { %v3341_v12 = vmax.f32 %v3085_v50, 0.0  ;;  %v3342_v37 = vmax.f32 %v3086_v51, 0.0  ;;  %v4151_v50 = vld [vmem:[%s7430_s1 + $0x408] sm:$0xff]  ;;  %v7655_v51 = vld [vmem:[#allocation23_spill] sm:$0xff]  ;;  %v1817_v32 = vmul.f32 %v6001_v63, %v7656_v6 }
 0x323   : > { %v2239_v38 = vpop.permute.xlu1 %2238  ;;  %v2243_v59 = vpop.permute.xlu0 %2242  ;;  %v1818_v52 = vmul.f32 %v6001_v63, %v7655_v51 }
 0x324   : > { %3597 = vst [vmem:[%s6024_s18 + $0x1c0] sm:$0xff] %v3341_v12  ;;  %3598 = vst [vmem:[%s6024_s18 + $0x1c8] sm:$0xff] %v3342_v37  ;;  %v3087_v60 = vadd.f32 %v2239_v38, %v1807_v11  ;;  %v3088_v9 = vadd.f32 %v2243_v59, %v1808_v25  ;;  %2486 = vperm.xlu1 %4021, %v4142_v10   ;;  %2490 = vperm.xlu0 %4020, %v4143_v53   ;;  %v4152_v59 = vld [vmem:[%s7430_s1 + $0x410] sm:$0xff] }
 0x325   : > { %v7658_v53 = vld [vmem:[#allocation26_spill] sm:$0xff] }
 0x326   : > { %v3343_v20 = vmax.f32 %v3087_v60, 0.0  ;;  %v3344_v7 = vmax.f32 %v3088_v9, 0.0  ;;  %v4153_v60 = vld [vmem:[%s7430_s1 + $0x418] sm:$0xff]  ;;  %v7657_v9 = vld [vmem:[#allocation25_spill] sm:$0xff]  ;;  %v1819_v54 = vmul.f32 %v6001_v63, %v7658_v53 }
 0x327   : > { %v2247_v8 = vpop.permute.xlu1 %2246  ;;  %v2251_v0 = vpop.permute.xlu0 %2250  ;;  %v1820_v10 = vmul.f32 %v6001_v63, %v7657_v9 }
 0x328   : > { %3599 = vst [vmem:[%s6024_s18 + $0x1d0] sm:$0xff] %v3343_v20  ;;  %3600 = vst [vmem:[%s6024_s18 + $0x1d8] sm:$0xff] %v3344_v7  ;;  %v3089_v31 = vadd.f32 %v2247_v8, %v1809_v19  ;;  %v3090_v48 = vadd.f32 %v2251_v0, %v1810_v17  ;;  %2494 = vperm.xlu1 %4021, %v4144_v1   ;;  %2498 = vperm.xlu0 %4020, %v4145_v41   ;;  %v4154_v0 = vld [vmem:[%s7430_s1 + $0x420] sm:$0xff] }
 0x329   : > { %v7660_v41 = vld [vmem:[#allocation28_spill] sm:$0xff] }
 0x32a   : > { %v3345_v24 = vmax.f32 %v3089_v31, 0.0  ;;  %v3346_v27 = vmax.f32 %v3090_v48, 0.0  ;;  %v4155_v31 = vld [vmem:[%s7430_s1 + $0x428] sm:$0xff]  ;;  %v7659_v48 = vld [vmem:[#allocation27_spill] sm:$0xff]  ;;  %v1821_v42 = vmul.f32 %v6001_v63, %v7660_v41 }
 0x32b   : > { %v2255_v28 = vpop.permute.xlu1 %2254  ;;  %v2259_v29 = vpop.permute.xlu0 %2258  ;;  %v1822_v1 = vmul.f32 %v6001_v63, %v7659_v48 }
 0x32c   : > { %3601 = vst [vmem:[%s6024_s18 + $0x1e0] sm:$0xff] %v3345_v24  ;;  %3602 = vst [vmem:[%s6024_s18 + $0x1e8] sm:$0xff] %v3346_v27  ;;  %v3091_v30 = vadd.f32 %v2255_v28, %v1811_v23  ;;  %v3092_v5 = vadd.f32 %v2259_v29, %v1812_v57  ;;  %2502 = vperm.xlu1 %4021, %v4146_v56   ;;  %2506 = vperm.xlu0 %4020, %v4147_v47   ;;  %v4156_v29 = vld [vmem:[%s7430_s1 + $0x430] sm:$0xff] }
 0x32d   : > { %v7662_v47 = vld [vmem:[#allocation30_spill] sm:$0xff] }
 0x32e   : > { %v3347_v35 = vmax.f32 %v3091_v30, 0.0  ;;  %v3348_v36 = vmax.f32 %v3092_v5, 0.0  ;;  %v4157_v30 = vld [vmem:[%s7430_s1 + $0x438] sm:$0xff]  ;;  %v7661_v5 = vld [vmem:[#allocation29_spill] sm:$0xff]  ;;  %v1823_v55 = vmul.f32 %v6001_v63, %v7662_v47 }
 0x32f   : > { %v2263_v61 = vpop.permute.xlu1 %2262  ;;  %v2267_v62 = vpop.permute.xlu0 %2266  ;;  %v1824_v56 = vmul.f32 %v6001_v63, %v7661_v5 }
 0x330   : > { %3603 = vst [vmem:[%s6024_s18 + $0x1f0] sm:$0xff] %v3347_v35  ;;  %3604 = vst [vmem:[%s6024_s18 + $0x1f8] sm:$0xff] %v3348_v36  ;;  %v3093_v45 = vadd.f32 %v2263_v61, %v1813_v22  ;;  %v3094_v46 = vadd.f32 %v2267_v62, %v1814_v21  ;;  %2510 = vperm.xlu1 %4021, %v4148_v13   ;;  %2514 = vperm.xlu0 %4020, %v4149_v14   ;;  %v4158_v62 = vld [vmem:[%s7430_s1 + $0x440] sm:$0xff] }
 0x331   : > { %v7664_v14 = vld [vmem:[#allocation32_spill] sm:$0xff] }
 0x332   : > { %v3349_v40 = vmax.f32 %v3093_v45, 0.0  ;;  %v3350_v15 = vmax.f32 %v3094_v46, 0.0  ;;  %v4159_v45 = vld [vmem:[%s7430_s1 + $0x448] sm:$0xff]  ;;  %v7663_v46 = vld [vmem:[#allocation31_spill] sm:$0xff]  ;;  %v1825_v33 = vmul.f32 %v6001_v63, %v7664_v14 }
 0x333   : > { %v2271_v3 = vpop.permute.xlu1 %2270  ;;  %v2275_v4 = vpop.permute.xlu0 %2274  ;;  %v1826_v13 = vmul.f32 %v6001_v63, %v7663_v46 }
 0x334   : > { %3605 = vst [vmem:[%s6024_s18 + $0x200] sm:$0xff] %v3349_v40  ;;  %3606 = vst [vmem:[%s6024_s18 + $0x208] sm:$0xff] %v3350_v15  ;;  %v3095_v16 = vadd.f32 %v2271_v3, %v1815_v44  ;;  %v3096_v2 = vadd.f32 %v2275_v4, %v1816_v34  ;;  %2518 = vperm.xlu1 %4021, %v4150_v49   ;;  %2522 = vperm.xlu0 %4020, %v4151_v50   ;;  %v4160_v4 = vld [vmem:[%s7430_s1 + $0x450] sm:$0xff] }
 0x335   : > { %v7666_v50 = vld [vmem:[#allocation34_spill] sm:$0xff] }
 0x336   : > { %v3351_v25 = vmax.f32 %v3095_v16, 0.0  ;;  %v3352_v26 = vmax.f32 %v3096_v2, 0.0  ;;  %v4161_v16 = vld [vmem:[%s7430_s1 + $0x458] sm:$0xff]  ;;  %v7665_v2 = vld [vmem:[#allocation33_spill] sm:$0xff]  ;;  %v1827_v51 = vmul.f32 %v6001_v63, %v7666_v50 }
 0x337   : > { %v2279_v11 = vpop.permute.xlu1 %2278  ;;  %v2283_v12 = vpop.permute.xlu0 %2282  ;;  %v1828_v49 = vmul.f32 %v6001_v63, %v7665_v2 }
 0x338   : > { %3607 = vst [vmem:[%s6024_s18 + $0x210] sm:$0xff] %v3351_v25  ;;  %3608 = vst [vmem:[%s6024_s18 + $0x218] sm:$0xff] %v3352_v26  ;;  %v3097_v37 = vadd.f32 %v2279_v11, %v1817_v32  ;;  %v3098_v38 = vadd.f32 %v2283_v12, %v1818_v52  ;;  %2526 = vperm.xlu1 %4021, %v4152_v59   ;;  %2530 = vperm.xlu0 %4020, %v4153_v60   ;;  %v4162_v12 = vld [vmem:[%s7430_s1 + $0x460] sm:$0xff] }
 0x339   : > { %v7668_v60 = vld [vmem:[#allocation36_spill] sm:$0xff] }
 0x33a   : > { %v3353_v17 = vmax.f32 %v3097_v37, 0.0  ;;  %v3354_v18 = vmax.f32 %v3098_v38, 0.0  ;;  %v4163_v37 = vld [vmem:[%s7430_s1 + $0x468] sm:$0xff]  ;;  %v7667_v38 = vld [vmem:[#allocation35_spill] sm:$0xff]  ;;  %v1829_v9 = vmul.f32 %v6001_v63, %v7668_v60 }
 0x33b   : > { %v2287_v19 = vpop.permute.xlu1 %2286  ;;  %v2291_v20 = vpop.permute.xlu0 %2290  ;;  %v1830_v59 = vmul.f32 %v6001_v63, %v7667_v38 }
 0x33c   : > { %3609 = vst [vmem:[%s6024_s18 + $0x220] sm:$0xff] %v3353_v17  ;;  %3610 = vst [vmem:[%s6024_s18 + $0x228] sm:$0xff] %v3354_v18  ;;  %v3099_v7 = vadd.f32 %v2287_v19, %v1819_v54  ;;  %v3100_v8 = vadd.f32 %v2291_v20, %v1820_v10  ;;  %2534 = vperm.xlu1 %4021, %v4154_v0   ;;  %2538 = vperm.xlu0 %4020, %v4155_v31   ;;  %v4164_v20 = vld [vmem:[%s7430_s1 + $0x470] sm:$0xff] }
 0x33d   : > { %v7670_v31 = vld [vmem:[#allocation38_spill] sm:$0xff] }
 0x33e   : > { %v3355_v57 = vmax.f32 %v3099_v7, 0.0  ;;  %v3356_v58 = vmax.f32 %v3100_v8, 0.0  ;;  %v4165_v7 = vld [vmem:[%s7430_s1 + $0x478] sm:$0xff]  ;;  %v7669_v8 = vld [vmem:[#allocation37_spill] sm:$0xff]  ;;  %v1831_v48 = vmul.f32 %v6001_v63, %v7670_v31 }
 0x33f   : > { %v2295_v23 = vpop.permute.xlu1 %2294  ;;  %v2299_v24 = vpop.permute.xlu0 %2298  ;;  %v1832_v0 = vmul.f32 %v6001_v63, %v7669_v8 }
 0x340   : > { %3611 = vst [vmem:[%s6024_s18 + $0x230] sm:$0xff] %v3355_v57  ;;  %3612 = vst [vmem:[%s6024_s18 + $0x238] sm:$0xff] %v3356_v58  ;;  %v3101_v27 = vadd.f32 %v2295_v23, %v1821_v42  ;;  %v3102_v28 = vadd.f32 %v2299_v24, %v1822_v1  ;;  %2542 = vperm.xlu1 %4021, %v4156_v29   ;;  %2546 = vperm.xlu0 %4020, %v4157_v30   ;;  %v4166_v24 = vld [vmem:[%s7430_s1 + $0x480] sm:$0xff] }
 0x341   : > { %v7672_v30 = vld [vmem:[#allocation40_spill] sm:$0xff] }
 0x342   : > { %v3357_v21 = vmax.f32 %v3101_v27, 0.0  ;;  %v3358_v39 = vmax.f32 %v3102_v28, 0.0  ;;  %v4167_v27 = vld [vmem:[%s7430_s1 + $0x488] sm:$0xff]  ;;  %v7671_v28 = vld [vmem:[#allocation39_spill] sm:$0xff]  ;;  %v1833_v5 = vmul.f32 %v6001_v63, %v7672_v30 }
 0x343   : > { %v2303_v22 = vpop.permute.xlu1 %2302  ;;  %v2307_v35 = vpop.permute.xlu0 %2306  ;;  %v1834_v29 = vmul.f32 %v6001_v63, %v7671_v28  ;;  %v6527_v63 = vld [vmem:[%s4534_s6] ss:$0 sm:$0xff] }
 0x344   : > { %3613 = vst [vmem:[%s6024_s18 + $0x240] sm:$0xff] %v3357_v21  ;;  %3614 = vst [vmem:[%s6024_s18 + $0x248] sm:$0xff] %v3358_v39  ;;  %v3103_v36 = vadd.f32 %v2303_v22, %v1823_v55  ;;  %v3104_v61 = vadd.f32 %v2307_v35, %v1824_v56  ;;  %2550 = vperm.xlu1 %4021, %v4158_v62   ;;  %2554 = vperm.xlu0 %4020, %v4159_v45   ;;  %v4168_v35 = vld [vmem:[%s7430_s1 + $0x490] sm:$0xff] }
 0x345   : > { %v7674_v45 = vld [vmem:[#allocation42_spill] sm:$0xff] }
 0x346   : > { %v3359_v34 = vmax.f32 %v3103_v36, 0.0  ;;  %v3360_v43 = vmax.f32 %v3104_v61, 0.0  ;;  %v4169_v36 = vld [vmem:[%s7430_s1 + $0x498] sm:$0xff]  ;;  %v7673_v61 = vld [vmem:[#allocation41_spill] sm:$0xff]  ;;  %v1835_v46 = vmul.f32 %v6527_v63, %v7674_v45 }
 0x347   : > { %v2311_v44 = vpop.permute.xlu1 %2310  ;;  %v2315_v40 = vpop.permute.xlu0 %2314  ;;  %v1836_v62 = vmul.f32 %v6527_v63, %v7673_v61 }
 0x348   : > { %3615 = vst [vmem:[%s6024_s18 + $0x250] sm:$0xff] %v3359_v34  ;;  %3616 = vst [vmem:[%s6024_s18 + $0x258] sm:$0xff] %v3360_v43  ;;  %v3105_v15 = vadd.f32 %v2311_v44, %v1825_v33  ;;  %v3106_v3 = vadd.f32 %v2315_v40, %v1826_v13  ;;  %2558 = vperm.xlu1 %4021, %v4160_v4   ;;  %2562 = vperm.xlu0 %4020, %v4161_v16   ;;  %v4171_v40 = vld [vmem:[%s7430_s1 + $0x4a0] sm:$0xff] }
 0x349   : > { %v7676_v16 = vld [vmem:[#allocation44_spill] sm:$0xff] }
 0x34a   : > { %v3361_v52 = vmax.f32 %v3105_v15, 0.0  ;;  %v3362_v6 = vmax.f32 %v3106_v3, 0.0  ;;  %v4172_v15 = vld [vmem:[%s7430_s1 + $0x4a8] sm:$0xff]  ;;  %v7675_v3 = vld [vmem:[#allocation43_spill] sm:$0xff]  ;;  %v1837_v2 = vmul.f32 %v6527_v63, %v7676_v16 }
 0x34b   : > { %v2319_v32 = vpop.permute.xlu1 %2318  ;;  %v2323_v25 = vpop.permute.xlu0 %2322  ;;  %v1838_v4 = vmul.f32 %v6527_v63, %v7675_v3 }
 0x34c   : > { %3617 = vst [vmem:[%s6024_s18 + $0x260] sm:$0xff] %v3361_v52  ;;  %3618 = vst [vmem:[%s6024_s18 + $0x268] sm:$0xff] %v3362_v6  ;;  %v3107_v26 = vadd.f32 %v2319_v32, %v1827_v51  ;;  %v3108_v11 = vadd.f32 %v2323_v25, %v1828_v49  ;;  %2566 = vperm.xlu1 %4021, %v4162_v12   ;;  %2570 = vperm.xlu0 %4020, %v4163_v37   ;;  %v4173_v25 = vld [vmem:[%s7430_s1 + $0x4b0] sm:$0xff] }
 0x34d   : > { %v7678_v37 = vld [vmem:[#allocation46_spill] sm:$0xff] }
 0x34e   : > { %v3363_v10 = vmax.f32 %v3107_v26, 0.0  ;;  %v3364_v53 = vmax.f32 %v3108_v11, 0.0  ;;  %v4174_v26 = vld [vmem:[%s7430_s1 + $0x4b8] sm:$0xff]  ;;  %v7677_v11 = vld [vmem:[#allocation45_spill] sm:$0xff]  ;;  %v1839_v38 = vmul.f32 %v6527_v63, %v7678_v37 }
 0x34f   : > { %v2327_v54 = vpop.permute.xlu1 %2326  ;;  %v2331_v17 = vpop.permute.xlu0 %2330  ;;  %v1840_v12 = vmul.f32 %v6527_v63, %v7677_v11 }
 0x350   : > { %3619 = vst [vmem:[%s6024_s18 + $0x270] sm:$0xff] %v3363_v10  ;;  %3620 = vst [vmem:[%s6024_s18 + $0x278] sm:$0xff] %v3364_v53  ;;  %v3109_v18 = vadd.f32 %v2327_v54, %v1829_v9  ;;  %v3110_v19 = vadd.f32 %v2331_v17, %v1830_v59  ;;  %2574 = vperm.xlu1 %4021, %v4164_v20   ;;  %2578 = vperm.xlu0 %4020, %v4165_v7   ;;  %v4175_v17 = vld [vmem:[%s7430_s1 + $0x4c0] sm:$0xff] }
 0x351   : > { %v7680_v7 = vld [vmem:[#allocation48_spill] sm:$0xff] }
 0x352   : > { %v3365_v1 = vmax.f32 %v3109_v18, 0.0  ;;  %v3366_v41 = vmax.f32 %v3110_v19, 0.0  ;;  %v4176_v18 = vld [vmem:[%s7430_s1 + $0x4c8] sm:$0xff]  ;;  %v7679_v19 = vld [vmem:[#allocation47_spill] sm:$0xff]  ;;  %v1841_v8 = vmul.f32 %v6527_v63, %v7680_v7 }
 0x353   : > { %v2335_v42 = vpop.permute.xlu1 %2334  ;;  %v2339_v57 = vpop.permute.xlu0 %2338  ;;  %v1842_v20 = vmul.f32 %v6527_v63, %v7679_v19 }
 0x354   : > { %3621 = vst [vmem:[%s6024_s18 + $0x280] sm:$0xff] %v3365_v1  ;;  %3622 = vst [vmem:[%s6024_s18 + $0x288] sm:$0xff] %v3366_v41  ;;  %v3111_v58 = vadd.f32 %v2335_v42, %v1831_v48  ;;  %v3112_v23 = vadd.f32 %v2339_v57, %v1832_v0  ;;  %2582 = vperm.xlu1 %4021, %v4166_v24   ;;  %2586 = vperm.xlu0 %4020, %v4167_v27   ;;  %v4177_v57 = vld [vmem:[%s7430_s1 + $0x4d0] sm:$0xff] }
 0x355   : > { %v7682_v27 = vld [vmem:[#allocation50_spill] sm:$0xff] }
 0x356   : > { %v3367_v56 = vmax.f32 %v3111_v58, 0.0  ;;  %v3368_v47 = vmax.f32 %v3112_v23, 0.0  ;;  %v4178_v58 = vld [vmem:[%s7430_s1 + $0x4d8] sm:$0xff]  ;;  %v7681_v23 = vld [vmem:[#allocation49_spill] sm:$0xff]  ;;  %v1843_v28 = vmul.f32 %v6527_v63, %v7682_v27 }
 0x357   : > { %v2343_v55 = vpop.permute.xlu1 %2342  ;;  %v2347_v21 = vpop.permute.xlu0 %2346  ;;  %v1844_v24 = vmul.f32 %v6527_v63, %v7681_v23 }
 0x358   : > { %3623 = vst [vmem:[%s6024_s18 + $0x290] sm:$0xff] %v3367_v56  ;;  %3624 = vst [vmem:[%s6024_s18 + $0x298] sm:$0xff] %v3368_v47  ;;  %v3113_v39 = vadd.f32 %v2343_v55, %v1833_v5  ;;  %v3114_v22 = vadd.f32 %v2347_v21, %v1834_v29  ;;  %2590 = vperm.xlu1 %4021, %v4168_v35   ;;  %2594 = vperm.xlu0 %4020, %v4169_v36   ;;  %v4179_v21 = vld [vmem:[%s7430_s1 + $0x4e0] sm:$0xff] }
 0x359   : > { %v7684_v36 = vld [vmem:[#allocation52_spill] sm:$0xff] }
 0x35a   : > { %v3369_v13 = vmax.f32 %v3113_v39, 0.0  ;;  %v3370_v14 = vmax.f32 %v3114_v22, 0.0  ;;  %v4180_v39 = vld [vmem:[%s7430_s1 + $0x4e8] sm:$0xff]  ;;  %v7683_v22 = vld [vmem:[#allocation51_spill] sm:$0xff]  ;;  %v1845_v61 = vmul.f32 %v6527_v63, %v7684_v36 }
 0x35b   : > { %v2351_v33 = vpop.permute.xlu1 %2350  ;;  %v2355_v34 = vpop.permute.xlu0 %2354  ;;  %v1846_v35 = vmul.f32 %v6527_v63, %v7683_v22 }
 0x35c   : > { %3625 = vst [vmem:[%s6024_s18 + $0x2a0] sm:$0xff] %v3369_v13  ;;  %3626 = vst [vmem:[%s6024_s18 + $0x2a8] sm:$0xff] %v3370_v14  ;;  %v3115_v43 = vadd.f32 %v2351_v33, %v1835_v46  ;;  %v3116_v44 = vadd.f32 %v2355_v34, %v1836_v62  ;;  %2598 = vperm.xlu1 %4021, %v4171_v40   ;;  %2602 = vperm.xlu0 %4020, %v4172_v15   ;;  %v4181_v34 = vld [vmem:[%s7430_s1 + $0x4f0] sm:$0xff] }
 0x35d   : > { %v7686_v15 = vld [vmem:[#allocation54_spill] sm:$0xff] }
 0x35e   : > { %v3371_v49 = vmax.f32 %v3115_v43, 0.0  ;;  %v3372_v50 = vmax.f32 %v3116_v44, 0.0  ;;  %v4182_v43 = vld [vmem:[%s7430_s1 + $0x4f8] sm:$0xff]  ;;  %v7685_v44 = vld [vmem:[#allocation53_spill] sm:$0xff]  ;;  %v1847_v3 = vmul.f32 %v6527_v63, %v7686_v15 }
 0x35f   : > { %v2359_v51 = vpop.permute.xlu1 %2358  ;;  %v2363_v52 = vpop.permute.xlu0 %2362  ;;  %v1848_v40 = vmul.f32 %v6527_v63, %v7685_v44 }
 0x360   : > { %3627 = vst [vmem:[%s6024_s18 + $0x2b0] sm:$0xff] %v3371_v49  ;;  %3628 = vst [vmem:[%s6024_s18 + $0x2b8] sm:$0xff] %v3372_v50  ;;  %v3117_v6 = vadd.f32 %v2359_v51, %v1837_v2  ;;  %v3118_v32 = vadd.f32 %v2363_v52, %v1838_v4  ;;  %2606 = vperm.xlu1 %4021, %v4173_v25   ;;  %2610 = vperm.xlu0 %4020, %v4174_v26   ;;  %v4183_v52 = vld [vmem:[%s7430_s1 + $0x500] sm:$0xff] }
 0x361   : > { %v7688_v26 = vld [vmem:[#allocation56_spill] sm:$0xff] }
 0x362   : > { %v3373_v59 = vmax.f32 %v3117_v6, 0.0  ;;  %v3374_v60 = vmax.f32 %v3118_v32, 0.0  ;;  %v4184_v6 = vld [vmem:[%s7430_s1 + $0x508] sm:$0xff]  ;;  %v7687_v32 = vld [vmem:[#allocation55_spill] sm:$0xff]  ;;  %v1849_v11 = vmul.f32 %v6527_v63, %v7688_v26 }
 0x363   : > { %v2367_v9 = vpop.permute.xlu1 %2366  ;;  %v2371_v10 = vpop.permute.xlu0 %2370  ;;  %v1850_v25 = vmul.f32 %v6527_v63, %v7687_v32 }
 0x364   : > { %3629 = vst [vmem:[%s6024_s18 + $0x2c0] sm:$0xff] %v3373_v59  ;;  %3630 = vst [vmem:[%s6024_s18 + $0x2c8] sm:$0xff] %v3374_v60  ;;  %v3119_v53 = vadd.f32 %v2367_v9, %v1839_v38  ;;  %v3120_v54 = vadd.f32 %v2371_v10, %v1840_v12  ;;  %2614 = vperm.xlu1 %4021, %v4175_v17   ;;  %2618 = vperm.xlu0 %4020, %v4176_v18   ;;  %v4185_v10 = vld [vmem:[%s7430_s1 + $0x510] sm:$0xff] }
 0x365   : > { %v7690_v18 = vld [vmem:[#allocation58_spill] sm:$0xff] }
 0x366   : > { %v3375_v0 = vmax.f32 %v3119_v53, 0.0  ;;  %v3376_v31 = vmax.f32 %v3120_v54, 0.0  ;;  %v4186_v53 = vld [vmem:[%s7430_s1 + $0x518] sm:$0xff]  ;;  %v7689_v54 = vld [vmem:[#allocation57_spill] sm:$0xff]  ;;  %v1851_v19 = vmul.f32 %v6527_v63, %v7690_v18 }
 0x367   : > { %v2375_v48 = vpop.permute.xlu1 %2374  ;;  %v2379_v1 = vpop.permute.xlu0 %2378  ;;  %v1852_v17 = vmul.f32 %v6527_v63, %v7689_v54 }
 0x368   : > { %3631 = vst [vmem:[%s6024_s18 + $0x2d0] sm:$0xff] %v3375_v0  ;;  %3632 = vst [vmem:[%s6024_s18 + $0x2d8] sm:$0xff] %v3376_v31  ;;  %v3121_v41 = vadd.f32 %v2375_v48, %v1841_v8  ;;  %v3122_v42 = vadd.f32 %v2379_v1, %v1842_v20  ;;  %2622 = vperm.xlu1 %4021, %v4177_v57   ;;  %2626 = vperm.xlu0 %4020, %v4178_v58   ;;  %v4187_v1 = vld [vmem:[%s7430_s1 + $0x520] sm:$0xff] }
 0x369   : > { %v7692_v58 = vld [vmem:[#allocation60_spill] sm:$0xff] }
 0x36a   : > { %v3377_v29 = vmax.f32 %v3121_v41, 0.0  ;;  %v3378_v30 = vmax.f32 %v3122_v42, 0.0  ;;  %v4188_v41 = vld [vmem:[%s7430_s1 + $0x528] sm:$0xff]  ;;  %v7691_v42 = vld [vmem:[#allocation59_spill] sm:$0xff]  ;;  %v1853_v23 = vmul.f32 %v6527_v63, %v7692_v58 }
 0x36b   : > { %v2383_v5 = vpop.permute.xlu1 %2382  ;;  %v2387_v56 = vpop.permute.xlu0 %2386  ;;  %v1854_v57 = vmul.f32 %v6527_v63, %v7691_v42 }
 0x36c   : > { %3633 = vst [vmem:[%s6024_s18 + $0x2e0] sm:$0xff] %v3377_v29  ;;  %3634 = vst [vmem:[%s6024_s18 + $0x2e8] sm:$0xff] %v3378_v30  ;;  %v3123_v47 = vadd.f32 %v2383_v5, %v1843_v28  ;;  %v3124_v55 = vadd.f32 %v2387_v56, %v1844_v24  ;;  %2630 = vperm.xlu1 %4021, %v4179_v21   ;;  %2634 = vperm.xlu0 %4020, %v4180_v39   ;;  %v4189_v56 = vld [vmem:[%s7430_s1 + $0x530] sm:$0xff] }
 0x36d   : > { %v7694_v39 = vld [vmem:[#allocation62_spill] sm:$0xff] }
 0x36e   : > { %v3379_v62 = vmax.f32 %v3123_v47, 0.0  ;;  %v3380_v45 = vmax.f32 %v3124_v55, 0.0  ;;  %v4190_v47 = vld [vmem:[%s7430_s1 + $0x538] sm:$0xff]  ;;  %v7693_v55 = vld [vmem:[#allocation61_spill] sm:$0xff]  ;;  %v1855_v22 = vmul.f32 %v6527_v63, %v7694_v39 }
 0x36f   : > { %v2391_v46 = vpop.permute.xlu1 %2390  ;;  %v2395_v13 = vpop.permute.xlu0 %2394  ;;  %v1856_v21 = vmul.f32 %v6527_v63, %v7693_v55 }
 0x370   : > { %3635 = vst [vmem:[%s6024_s18 + $0x2f0] sm:$0xff] %v3379_v62  ;;  %3636 = vst [vmem:[%s6024_s18 + $0x2f8] sm:$0xff] %v3380_v45  ;;  %v3125_v14 = vadd.f32 %v2391_v46, %v1845_v61  ;;  %v3126_v33 = vadd.f32 %v2395_v13, %v1846_v35  ;;  %2638 = vperm.xlu1 %4021, %v4181_v34   ;;  %2642 = vperm.xlu0 %4020, %v4182_v43   ;;  %v4191_v13 = vld [vmem:[%s7430_s1 + $0x540] sm:$0xff] }
 0x371   : > { %v7696_v43 = vld [vmem:[#allocation64_spill] sm:$0xff] }
 0x372   : > { %v3381_v4 = vmax.f32 %v3125_v14, 0.0  ;;  %v3382_v16 = vmax.f32 %v3126_v33, 0.0  ;;  %v4192_v14 = vld [vmem:[%s7430_s1 + $0x548] sm:$0xff]  ;;  %v7695_v33 = vld [vmem:[#allocation63_spill] sm:$0xff]  ;;  %v1857_v44 = vmul.f32 %v6527_v63, %v7696_v43 }
 0x373   : > { %v2399_v2 = vpop.permute.xlu1 %2398  ;;  %v2403_v49 = vpop.permute.xlu0 %2402  ;;  %v1858_v34 = vmul.f32 %v6527_v63, %v7695_v33 }
 0x374   : > { %3637 = vst [vmem:[%s6024_s18 + $0x300] sm:$0xff] %v3381_v4  ;;  %3638 = vst [vmem:[%s6024_s18 + $0x308] sm:$0xff] %v3382_v16  ;;  %v3127_v50 = vadd.f32 %v2399_v2, %v1847_v3  ;;  %v3128_v51 = vadd.f32 %v2403_v49, %v1848_v40  ;;  %2646 = vperm.xlu1 %4021, %v4183_v52   ;;  %2650 = vperm.xlu0 %4020, %v4184_v6   ;;  %v4193_v49 = vld [vmem:[%s7430_s1 + $0x550] sm:$0xff] }
 0x375   : > { %v7698_v6 = vld [vmem:[#allocation66_spill] sm:$0xff] }
 0x376   : > { %v3383_v12 = vmax.f32 %v3127_v50, 0.0  ;;  %v3384_v37 = vmax.f32 %v3128_v51, 0.0  ;;  %v4194_v50 = vld [vmem:[%s7430_s1 + $0x558] sm:$0xff]  ;;  %v7697_v51 = vld [vmem:[#allocation65_spill] sm:$0xff]  ;;  %v1859_v32 = vmul.f32 %v6527_v63, %v7698_v6 }
 0x377   : > { %v2407_v38 = vpop.permute.xlu1 %2406  ;;  %v2411_v59 = vpop.permute.xlu0 %2410  ;;  %v1860_v52 = vmul.f32 %v6527_v63, %v7697_v51 }
 0x378   : > { %3639 = vst [vmem:[%s6024_s18 + $0x310] sm:$0xff] %v3383_v12  ;;  %3640 = vst [vmem:[%s6024_s18 + $0x318] sm:$0xff] %v3384_v37  ;;  %v3129_v60 = vadd.f32 %v2407_v38, %v1849_v11  ;;  %v3130_v9 = vadd.f32 %v2411_v59, %v1850_v25  ;;  %2654 = vperm.xlu1 %4021, %v4185_v10   ;;  %2658 = vperm.xlu0 %4020, %v4186_v53   ;;  %v4195_v59 = vld [vmem:[%s7430_s1 + $0x560] sm:$0xff] }
 0x379   : > { %v7700_v53 = vld [vmem:[#allocation68_spill] sm:$0xff] }
 0x37a   : > { %v3385_v20 = vmax.f32 %v3129_v60, 0.0  ;;  %v3386_v7 = vmax.f32 %v3130_v9, 0.0  ;;  %v4196_v60 = vld [vmem:[%s7430_s1 + $0x568] sm:$0xff]  ;;  %v7699_v9 = vld [vmem:[#allocation67_spill] sm:$0xff]  ;;  %v1861_v54 = vmul.f32 %v6527_v63, %v7700_v53 }
 0x37b   : > { %v2415_v8 = vpop.permute.xlu1 %2414  ;;  %v2419_v0 = vpop.permute.xlu0 %2418  ;;  %v1862_v10 = vmul.f32 %v6527_v63, %v7699_v9 }
 0x37c   : > { %3641 = vst [vmem:[%s6024_s18 + $0x320] sm:$0xff] %v3385_v20  ;;  %3642 = vst [vmem:[%s6024_s18 + $0x328] sm:$0xff] %v3386_v7  ;;  %v3131_v31 = vadd.f32 %v2415_v8, %v1851_v19  ;;  %v3132_v48 = vadd.f32 %v2419_v0, %v1852_v17  ;;  %2662 = vperm.xlu1 %4021, %v4187_v1   ;;  %2666 = vperm.xlu0 %4020, %v4188_v41   ;;  %v4197_v0 = vld [vmem:[%s7430_s1 + $0x570] sm:$0xff] }
 0x37d   : > { %v7702_v41 = vld [vmem:[#allocation70_spill] sm:$0xff] }
 0x37e   : > { %v3387_v24 = vmax.f32 %v3131_v31, 0.0  ;;  %v3388_v27 = vmax.f32 %v3132_v48, 0.0  ;;  %v4198_v31 = vld [vmem:[%s7430_s1 + $0x578] sm:$0xff]  ;;  %v7701_v48 = vld [vmem:[#allocation69_spill] sm:$0xff]  ;;  %v1863_v42 = vmul.f32 %v6527_v63, %v7702_v41 }
 0x37f   : > { %v2423_v28 = vpop.permute.xlu1 %2422  ;;  %v2427_v29 = vpop.permute.xlu0 %2426  ;;  %v1864_v1 = vmul.f32 %v6527_v63, %v7701_v48 }
 0x380   : > { %3643 = vst [vmem:[%s6024_s18 + $0x330] sm:$0xff] %v3387_v24  ;;  %3644 = vst [vmem:[%s6024_s18 + $0x338] sm:$0xff] %v3388_v27  ;;  %v3133_v30 = vadd.f32 %v2423_v28, %v1853_v23  ;;  %v3134_v5 = vadd.f32 %v2427_v29, %v1854_v57  ;;  %2670 = vperm.xlu1 %4021, %v4189_v56   ;;  %2674 = vperm.xlu0 %4020, %v4190_v47   ;;  %v4199_v29 = vld [vmem:[%s7430_s1 + $0x580] sm:$0xff] }
 0x381   : > { %v7704_v47 = vld [vmem:[#allocation72_spill] sm:$0xff] }
 0x382   : > { %v3389_v35 = vmax.f32 %v3133_v30, 0.0  ;;  %v3390_v36 = vmax.f32 %v3134_v5, 0.0  ;;  %v4200_v30 = vld [vmem:[%s7430_s1 + $0x588] sm:$0xff]  ;;  %v7703_v5 = vld [vmem:[#allocation71_spill] sm:$0xff]  ;;  %v1865_v55 = vmul.f32 %v6527_v63, %v7704_v47 }
 0x383   : > { %v2431_v61 = vpop.permute.xlu1 %2430  ;;  %v2435_v62 = vpop.permute.xlu0 %2434  ;;  %v1866_v56 = vmul.f32 %v6527_v63, %v7703_v5 }
 0x384   : > { %3645 = vst [vmem:[%s6024_s18 + $0x340] sm:$0xff] %v3389_v35  ;;  %3646 = vst [vmem:[%s6024_s18 + $0x348] sm:$0xff] %v3390_v36  ;;  %v3135_v45 = vadd.f32 %v2431_v61, %v1855_v22  ;;  %v3136_v46 = vadd.f32 %v2435_v62, %v1856_v21  ;;  %2678 = vperm.xlu1 %4021, %v4191_v13   ;;  %2682 = vperm.xlu0 %4020, %v4192_v14   ;;  %v4201_v62 = vld [vmem:[%s7430_s1 + $0x590] sm:$0xff] }
 0x385   : > { %v7706_v14 = vld [vmem:[#allocation74_spill] sm:$0xff] }
 0x386   : > { %v3391_v40 = vmax.f32 %v3135_v45, 0.0  ;;  %v3392_v15 = vmax.f32 %v3136_v46, 0.0  ;;  %v4202_v45 = vld [vmem:[%s7430_s1 + $0x598] sm:$0xff]  ;;  %v7705_v46 = vld [vmem:[#allocation73_spill] sm:$0xff]  ;;  %v1867_v33 = vmul.f32 %v6527_v63, %v7706_v14 }
 0x387   : > { %v2439_v3 = vpop.permute.xlu1 %2438  ;;  %v2443_v4 = vpop.permute.xlu0 %2442  ;;  %v1868_v13 = vmul.f32 %v6527_v63, %v7705_v46 }
 0x388   : > { %3647 = vst [vmem:[%s6024_s18 + $0x350] sm:$0xff] %v3391_v40  ;;  %3648 = vst [vmem:[%s6024_s18 + $0x358] sm:$0xff] %v3392_v15  ;;  %v3137_v16 = vadd.f32 %v2439_v3, %v1857_v44  ;;  %v3138_v2 = vadd.f32 %v2443_v4, %v1858_v34  ;;  %2686 = vperm.xlu1 %4021, %v4193_v49   ;;  %2690 = vperm.xlu0 %4020, %v4194_v50   ;;  %v4203_v4 = vld [vmem:[%s7430_s1 + $0x5a0] sm:$0xff] }
 0x389   : > { %v7708_v50 = vld [vmem:[#allocation76_spill] sm:$0xff] }
 0x38a   : > { %v3393_v25 = vmax.f32 %v3137_v16, 0.0  ;;  %v3394_v26 = vmax.f32 %v3138_v2, 0.0  ;;  %v4204_v16 = vld [vmem:[%s7430_s1 + $0x5a8] sm:$0xff]  ;;  %v7707_v2 = vld [vmem:[#allocation75_spill] sm:$0xff]  ;;  %v1869_v51 = vmul.f32 %v6527_v63, %v7708_v50 }
 0x38b   : > { %v2447_v11 = vpop.permute.xlu1 %2446  ;;  %v2451_v12 = vpop.permute.xlu0 %2450  ;;  %v1870_v49 = vmul.f32 %v6527_v63, %v7707_v2 }
 0x38c   : > { %3649 = vst [vmem:[%s6024_s18 + $0x360] sm:$0xff] %v3393_v25  ;;  %3650 = vst [vmem:[%s6024_s18 + $0x368] sm:$0xff] %v3394_v26  ;;  %v3139_v37 = vadd.f32 %v2447_v11, %v1859_v32  ;;  %v3140_v38 = vadd.f32 %v2451_v12, %v1860_v52  ;;  %2694 = vperm.xlu1 %4021, %v4195_v59   ;;  %2698 = vperm.xlu0 %4020, %v4196_v60   ;;  %v4205_v12 = vld [vmem:[%s7430_s1 + $0x5b0] sm:$0xff] }
 0x38d   : > { %v7710_v60 = vld [vmem:[#allocation78_spill] sm:$0xff] }
 0x38e   : > { %v3395_v17 = vmax.f32 %v3139_v37, 0.0  ;;  %v3396_v18 = vmax.f32 %v3140_v38, 0.0  ;;  %v4206_v37 = vld [vmem:[%s7430_s1 + $0x5b8] sm:$0xff]  ;;  %v7709_v38 = vld [vmem:[#allocation77_spill] sm:$0xff]  ;;  %v1871_v9 = vmul.f32 %v6527_v63, %v7710_v60 }
 0x38f   : > { %v2455_v19 = vpop.permute.xlu1 %2454  ;;  %v2459_v20 = vpop.permute.xlu0 %2458  ;;  %v1872_v59 = vmul.f32 %v6527_v63, %v7709_v38 }
 0x390   : > { %3651 = vst [vmem:[%s6024_s18 + $0x370] sm:$0xff] %v3395_v17  ;;  %3652 = vst [vmem:[%s6024_s18 + $0x378] sm:$0xff] %v3396_v18  ;;  %v3141_v7 = vadd.f32 %v2455_v19, %v1861_v54  ;;  %v3142_v8 = vadd.f32 %v2459_v20, %v1862_v10  ;;  %2702 = vperm.xlu1 %4021, %v4197_v0   ;;  %2706 = vperm.xlu0 %4020, %v4198_v31   ;;  %v4207_v20 = vld [vmem:[%s7430_s1 + $0x5c0] sm:$0xff] }
 0x391   : > { %v7712_v31 = vld [vmem:[#allocation80_spill] sm:$0xff] }
 0x392   : > { %v3397_v57 = vmax.f32 %v3141_v7, 0.0  ;;  %v3398_v58 = vmax.f32 %v3142_v8, 0.0  ;;  %v4208_v7 = vld [vmem:[%s7430_s1 + $0x5c8] sm:$0xff]  ;;  %v7711_v8 = vld [vmem:[#allocation79_spill] sm:$0xff]  ;;  %v1873_v48 = vmul.f32 %v6527_v63, %v7712_v31 }
 0x393   : > { %v2463_v23 = vpop.permute.xlu1 %2462  ;;  %v2467_v24 = vpop.permute.xlu0 %2466  ;;  %v1874_v0 = vmul.f32 %v6527_v63, %v7711_v8 }
 0x394   : > { %3653 = vst [vmem:[%s6024_s18 + $0x380] sm:$0xff] %v3397_v57  ;;  %3654 = vst [vmem:[%s6024_s18 + $0x388] sm:$0xff] %v3398_v58  ;;  %v3143_v27 = vadd.f32 %v2463_v23, %v1863_v42  ;;  %v3144_v28 = vadd.f32 %v2467_v24, %v1864_v1  ;;  %2710 = vperm.xlu1 %4021, %v4199_v29   ;;  %2714 = vperm.xlu0 %4020, %v4200_v30   ;;  %v4209_v24 = vld [vmem:[%s7430_s1 + $0x5d0] sm:$0xff] }
 0x395   : > { %v7714_v30 = vld [vmem:[#allocation82_spill] sm:$0xff] }
 0x396   : > { %v3399_v21 = vmax.f32 %v3143_v27, 0.0  ;;  %v3400_v39 = vmax.f32 %v3144_v28, 0.0  ;;  %v4210_v27 = vld [vmem:[%s7430_s1 + $0x5d8] sm:$0xff]  ;;  %v7713_v28 = vld [vmem:[#allocation81_spill] sm:$0xff]  ;;  %v1875_v5 = vmul.f32 %v6527_v63, %v7714_v30 }
 0x397   : > { %v2471_v22 = vpop.permute.xlu1 %2470  ;;  %v2475_v35 = vpop.permute.xlu0 %2474  ;;  %v1876_v29 = vmul.f32 %v6527_v63, %v7713_v28 }
 0x398   : > { %3655 = vst [vmem:[%s6024_s18 + $0x390] sm:$0xff] %v3399_v21  ;;  %3656 = vst [vmem:[%s6024_s18 + $0x398] sm:$0xff] %v3400_v39  ;;  %v3145_v36 = vadd.f32 %v2471_v22, %v1865_v55  ;;  %v3146_v61 = vadd.f32 %v2475_v35, %v1866_v56  ;;  %2718 = vperm.xlu1 %4021, %v4201_v62   ;;  %2722 = vperm.xlu0 %4020, %v4202_v45   ;;  %v4211_v35 = vld [vmem:[%s7430_s1 + $0x5e0] sm:$0xff] }
 0x399   : > { %v7716_v45 = vld [vmem:[#allocation84_spill] sm:$0xff] }
 0x39a   : > { %v3401_v34 = vmax.f32 %v3145_v36, 0.0  ;;  %v3402_v43 = vmax.f32 %v3146_v61, 0.0  ;;  %v4212_v36 = vld [vmem:[%s7430_s1 + $0x5e8] sm:$0xff]  ;;  %v7715_v61 = vld [vmem:[#allocation83_spill] sm:$0xff]  ;;  %v1877_v46 = vmul.f32 %v6527_v63, %v7716_v45 }
 0x39b   : > { %v2479_v44 = vpop.permute.xlu1 %2478  ;;  %v2483_v40 = vpop.permute.xlu0 %2482  ;;  %v1878_v62 = vmul.f32 %v6527_v63, %v7715_v61 }
 0x39c   : > { %3657 = vst [vmem:[%s6024_s18 + $0x3a0] sm:$0xff] %v3401_v34  ;;  %3658 = vst [vmem:[%s6024_s18 + $0x3a8] sm:$0xff] %v3402_v43  ;;  %v3147_v15 = vadd.f32 %v2479_v44, %v1867_v33  ;;  %v3148_v3 = vadd.f32 %v2483_v40, %v1868_v13  ;;  %2726 = vperm.xlu1 %4021, %v4203_v4   ;;  %2730 = vperm.xlu0 %4020, %v4204_v16   ;;  %v4213_v40 = vld [vmem:[%s7430_s1 + $0x5f0] sm:$0xff] }
 0x39d   : > { %v7718_v16 = vld [vmem:[#allocation86_spill] sm:$0xff] }
 0x39e   : > { %v3403_v52 = vmax.f32 %v3147_v15, 0.0  ;;  %v3404_v6 = vmax.f32 %v3148_v3, 0.0  ;;  %v4214_v15 = vld [vmem:[%s7430_s1 + $0x5f8] sm:$0xff]  ;;  %v7717_v3 = vld [vmem:[#allocation85_spill] sm:$0xff]  ;;  %v1879_v2 = vmul.f32 %v6527_v63, %v7718_v16 }
 0x39f   : > { %v2487_v32 = vpop.permute.xlu1 %2486  ;;  %v2491_v25 = vpop.permute.xlu0 %2490  ;;  %v1880_v4 = vmul.f32 %v6527_v63, %v7717_v3 }
 0x3a0   : > { %3659 = vst [vmem:[%s6024_s18 + $0x3b0] sm:$0xff] %v3403_v52  ;;  %3660 = vst [vmem:[%s6024_s18 + $0x3b8] sm:$0xff] %v3404_v6  ;;  %v3149_v26 = vadd.f32 %v2487_v32, %v1869_v51  ;;  %v3150_v11 = vadd.f32 %v2491_v25, %v1870_v49  ;;  %2734 = vperm.xlu1 %4021, %v4205_v12   ;;  %2738 = vperm.xlu0 %4020, %v4206_v37   ;;  %v4215_v25 = vld [vmem:[%s7430_s1 + $0x600] sm:$0xff] }
 0x3a1   : > { %v7720_v37 = vld [vmem:[#allocation88_spill] sm:$0xff] }
 0x3a2   : > { %v3405_v10 = vmax.f32 %v3149_v26, 0.0  ;;  %v3406_v53 = vmax.f32 %v3150_v11, 0.0  ;;  %v4216_v26 = vld [vmem:[%s7430_s1 + $0x608] sm:$0xff]  ;;  %v7719_v11 = vld [vmem:[#allocation87_spill] sm:$0xff]  ;;  %v1881_v38 = vmul.f32 %v6527_v63, %v7720_v37 }
 0x3a3   : > { %v2495_v54 = vpop.permute.xlu1 %2494  ;;  %v2499_v17 = vpop.permute.xlu0 %2498  ;;  %v1882_v12 = vmul.f32 %v6527_v63, %v7719_v11 }
 0x3a4   : > { %3661 = vst [vmem:[%s6024_s18 + $0x3c0] sm:$0xff] %v3405_v10  ;;  %3662 = vst [vmem:[%s6024_s18 + $0x3c8] sm:$0xff] %v3406_v53  ;;  %v3151_v18 = vadd.f32 %v2495_v54, %v1871_v9  ;;  %v3152_v19 = vadd.f32 %v2499_v17, %v1872_v59  ;;  %2742 = vperm.xlu1 %4021, %v4207_v20   ;;  %2746 = vperm.xlu0 %4020, %v4208_v7   ;;  %v4217_v17 = vld [vmem:[%s7430_s1 + $0x610] sm:$0xff] }
 0x3a5   : > { %v7722_v7 = vld [vmem:[#allocation90_spill] sm:$0xff] }
 0x3a6   : > { %v3407_v1 = vmax.f32 %v3151_v18, 0.0  ;;  %v3408_v41 = vmax.f32 %v3152_v19, 0.0  ;;  %v4218_v18 = vld [vmem:[%s7430_s1 + $0x618] sm:$0xff]  ;;  %v7721_v19 = vld [vmem:[#allocation89_spill] sm:$0xff]  ;;  %v1883_v8 = vmul.f32 %v6527_v63, %v7722_v7 }
 0x3a7   : > { %v2503_v42 = vpop.permute.xlu1 %2502  ;;  %v2507_v57 = vpop.permute.xlu0 %2506  ;;  %v1884_v20 = vmul.f32 %v6527_v63, %v7721_v19 }
 0x3a8   : > { %3663 = vst [vmem:[%s6024_s18 + $0x3d0] sm:$0xff] %v3407_v1  ;;  %3664 = vst [vmem:[%s6024_s18 + $0x3d8] sm:$0xff] %v3408_v41  ;;  %v3153_v58 = vadd.f32 %v2503_v42, %v1873_v48  ;;  %v3154_v23 = vadd.f32 %v2507_v57, %v1874_v0  ;;  %2750 = vperm.xlu1 %4021, %v4209_v24   ;;  %2754 = vperm.xlu0 %4020, %v4210_v27   ;;  %v4219_v57 = vld [vmem:[%s7430_s1 + $0x620] sm:$0xff] }
 0x3a9   : > { %v7724_v27 = vld [vmem:[#allocation92_spill] sm:$0xff] }
 0x3aa   : > { %v3409_v56 = vmax.f32 %v3153_v58, 0.0  ;;  %v3410_v47 = vmax.f32 %v3154_v23, 0.0  ;;  %v4220_v58 = vld [vmem:[%s7430_s1 + $0x628] sm:$0xff]  ;;  %v7723_v23 = vld [vmem:[#allocation91_spill] sm:$0xff]  ;;  %v1885_v28 = vmul.f32 %v6527_v63, %v7724_v27 }
 0x3ab   : > { %v2511_v55 = vpop.permute.xlu1 %2510  ;;  %v2515_v21 = vpop.permute.xlu0 %2514  ;;  %v1886_v24 = vmul.f32 %v6527_v63, %v7723_v23 }
 0x3ac   : > { %3665 = vst [vmem:[%s6024_s18 + $0x3e0] sm:$0xff] %v3409_v56  ;;  %3666 = vst [vmem:[%s6024_s18 + $0x3e8] sm:$0xff] %v3410_v47  ;;  %v3155_v39 = vadd.f32 %v2511_v55, %v1875_v5  ;;  %v3156_v22 = vadd.f32 %v2515_v21, %v1876_v29  ;;  %2758 = vperm.xlu1 %4021, %v4211_v35   ;;  %2762 = vperm.xlu0 %4020, %v4212_v36   ;;  %v4221_v21 = vld [vmem:[%s7430_s1 + $0x630] sm:$0xff] }
 0x3ad   : > { %v7726_v36 = vld [vmem:[#allocation94_spill] sm:$0xff] }
 0x3ae   : > { %v3411_v13 = vmax.f32 %v3155_v39, 0.0  ;;  %v3412_v14 = vmax.f32 %v3156_v22, 0.0  ;;  %v4222_v39 = vld [vmem:[%s7430_s1 + $0x638] sm:$0xff]  ;;  %v7725_v22 = vld [vmem:[#allocation93_spill] sm:$0xff]  ;;  %v1887_v61 = vmul.f32 %v6527_v63, %v7726_v36 }
 0x3af   : > { %v2519_v33 = vpop.permute.xlu1 %2518  ;;  %v2523_v34 = vpop.permute.xlu0 %2522  ;;  %v1888_v35 = vmul.f32 %v6527_v63, %v7725_v22 }
 0x3b0   : > { %3667 = vst [vmem:[%s6024_s18 + $0x3f0] sm:$0xff] %v3411_v13  ;;  %3668 = vst [vmem:[%s6024_s18 + $0x3f8] sm:$0xff] %v3412_v14  ;;  %v3157_v43 = vadd.f32 %v2519_v33, %v1877_v46  ;;  %v3158_v44 = vadd.f32 %v2523_v34, %v1878_v62  ;;  %2766 = vperm.xlu1 %4021, %v4213_v40   ;;  %2770 = vperm.xlu0 %4020, %v4214_v15   ;;  %v4223_v34 = vld [vmem:[%s7430_s1 + $0x640] sm:$0xff] }
 0x3b1   : > { %v7728_v15 = vld [vmem:[#allocation96_spill] sm:$0xff] }
 0x3b2   : > { %v3413_v49 = vmax.f32 %v3157_v43, 0.0  ;;  %v3414_v50 = vmax.f32 %v3158_v44, 0.0  ;;  %v4224_v43 = vld [vmem:[%s7430_s1 + $0x648] sm:$0xff]  ;;  %v7727_v44 = vld [vmem:[#allocation95_spill] sm:$0xff]  ;;  %v1889_v3 = vmul.f32 %v6527_v63, %v7728_v15 }
 0x3b3   : > { %v2527_v51 = vpop.permute.xlu1 %2526  ;;  %v2531_v52 = vpop.permute.xlu0 %2530  ;;  %v1890_v40 = vmul.f32 %v6527_v63, %v7727_v44 }
 0x3b4   : > { %3669 = vst [vmem:[%s6024_s18 + $0x400] sm:$0xff] %v3413_v49  ;;  %3670 = vst [vmem:[%s6024_s18 + $0x408] sm:$0xff] %v3414_v50  ;;  %v3159_v6 = vadd.f32 %v2527_v51, %v1879_v2  ;;  %v3160_v32 = vadd.f32 %v2531_v52, %v1880_v4  ;;  %2774 = vperm.xlu1 %4021, %v4215_v25   ;;  %2778 = vperm.xlu0 %4020, %v4216_v26   ;;  %v4225_v52 = vld [vmem:[%s7430_s1 + $0x650] sm:$0xff] }
 0x3b5   : > { %v7730_v26 = vld [vmem:[#allocation98_spill] sm:$0xff] }
 0x3b6   : > { %v3415_v59 = vmax.f32 %v3159_v6, 0.0  ;;  %v3416_v60 = vmax.f32 %v3160_v32, 0.0  ;;  %v4226_v6 = vld [vmem:[%s7430_s1 + $0x658] sm:$0xff]  ;;  %v7729_v32 = vld [vmem:[#allocation97_spill] sm:$0xff]  ;;  %v1891_v11 = vmul.f32 %v6527_v63, %v7730_v26 }
 0x3b7   : > { %v2535_v9 = vpop.permute.xlu1 %2534  ;;  %v2539_v10 = vpop.permute.xlu0 %2538  ;;  %v1892_v25 = vmul.f32 %v6527_v63, %v7729_v32 }
 0x3b8   : > { %3671 = vst [vmem:[%s6024_s18 + $0x410] sm:$0xff] %v3415_v59  ;;  %3672 = vst [vmem:[%s6024_s18 + $0x418] sm:$0xff] %v3416_v60  ;;  %v3161_v53 = vadd.f32 %v2535_v9, %v1881_v38  ;;  %v3162_v54 = vadd.f32 %v2539_v10, %v1882_v12  ;;  %2782 = vperm.xlu1 %4021, %v4217_v17   ;;  %2786 = vperm.xlu0 %4020, %v4218_v18   ;;  %v4227_v10 = vld [vmem:[%s7430_s1 + $0x660] sm:$0xff] }
 0x3b9   : > { %v7732_v18 = vld [vmem:[#allocation100_spill] sm:$0xff] }
 0x3ba   : > { %v3417_v0 = vmax.f32 %v3161_v53, 0.0  ;;  %v3418_v31 = vmax.f32 %v3162_v54, 0.0  ;;  %v4228_v53 = vld [vmem:[%s7430_s1 + $0x668] sm:$0xff]  ;;  %v7731_v54 = vld [vmem:[#allocation99_spill] sm:$0xff]  ;;  %v1893_v19 = vmul.f32 %v6527_v63, %v7732_v18 }
 0x3bb   : > { %v2543_v48 = vpop.permute.xlu1 %2542  ;;  %v2547_v1 = vpop.permute.xlu0 %2546  ;;  %v1894_v17 = vmul.f32 %v6527_v63, %v7731_v54 }
 0x3bc   : > { %3673 = vst [vmem:[%s6024_s18 + $0x420] sm:$0xff] %v3417_v0  ;;  %3674 = vst [vmem:[%s6024_s18 + $0x428] sm:$0xff] %v3418_v31  ;;  %v3163_v41 = vadd.f32 %v2543_v48, %v1883_v8  ;;  %v3164_v42 = vadd.f32 %v2547_v1, %v1884_v20  ;;  %2790 = vperm.xlu1 %4021, %v4219_v57   ;;  %2794 = vperm.xlu0 %4020, %v4220_v58   ;;  %v4229_v1 = vld [vmem:[%s7430_s1 + $0x670] sm:$0xff] }
 0x3bd   : > { %v7734_v58 = vld [vmem:[#allocation102_spill] sm:$0xff] }
 0x3be   : > { %v3419_v29 = vmax.f32 %v3163_v41, 0.0  ;;  %v3420_v30 = vmax.f32 %v3164_v42, 0.0  ;;  %v4230_v41 = vld [vmem:[%s7430_s1 + $0x678] sm:$0xff]  ;;  %v7733_v42 = vld [vmem:[#allocation101_spill] sm:$0xff]  ;;  %v1895_v23 = vmul.f32 %v6527_v63, %v7734_v58 }
 0x3bf   : > { %v2551_v5 = vpop.permute.xlu1 %2550  ;;  %v2555_v56 = vpop.permute.xlu0 %2554  ;;  %v1896_v57 = vmul.f32 %v6527_v63, %v7733_v42 }
 0x3c0   : > { %3675 = vst [vmem:[%s6024_s18 + $0x430] sm:$0xff] %v3419_v29  ;;  %3676 = vst [vmem:[%s6024_s18 + $0x438] sm:$0xff] %v3420_v30  ;;  %v3165_v47 = vadd.f32 %v2551_v5, %v1885_v28  ;;  %v3166_v55 = vadd.f32 %v2555_v56, %v1886_v24  ;;  %2798 = vperm.xlu1 %4021, %v4221_v21   ;;  %2802 = vperm.xlu0 %4020, %v4222_v39   ;;  %v4231_v56 = vld [vmem:[%s7430_s1 + $0x680] sm:$0xff] }
 0x3c1   : > { %v7736_v39 = vld [vmem:[#allocation104_spill] sm:$0xff] }
 0x3c2   : > { %v3421_v62 = vmax.f32 %v3165_v47, 0.0  ;;  %v3422_v45 = vmax.f32 %v3166_v55, 0.0  ;;  %v4232_v47 = vld [vmem:[%s7430_s1 + $0x688] sm:$0xff]  ;;  %v7735_v55 = vld [vmem:[#allocation103_spill] sm:$0xff]  ;;  %v1897_v22 = vmul.f32 %v6527_v63, %v7736_v39 }
 0x3c3   : > { %v2559_v46 = vpop.permute.xlu1 %2558  ;;  %v2563_v13 = vpop.permute.xlu0 %2562  ;;  %v1898_v21 = vmul.f32 %v6527_v63, %v7735_v55 }
 0x3c4   : > { %3677 = vst [vmem:[%s6024_s18 + $0x440] sm:$0xff] %v3421_v62  ;;  %3678 = vst [vmem:[%s6024_s18 + $0x448] sm:$0xff] %v3422_v45  ;;  %v3167_v14 = vadd.f32 %v2559_v46, %v1887_v61  ;;  %v3168_v33 = vadd.f32 %v2563_v13, %v1888_v35  ;;  %2806 = vperm.xlu1 %4021, %v4223_v34   ;;  %2810 = vperm.xlu0 %4020, %v4224_v43   ;;  %v4233_v13 = vld [vmem:[%s7430_s1 + $0x690] sm:$0xff] }
 0x3c5   : > { %v7738_v43 = vld [vmem:[#allocation106_spill] sm:$0xff] }
 0x3c6   : > { %v3423_v4 = vmax.f32 %v3167_v14, 0.0  ;;  %v3424_v16 = vmax.f32 %v3168_v33, 0.0  ;;  %v4234_v14 = vld [vmem:[%s7430_s1 + $0x698] sm:$0xff]  ;;  %v7737_v33 = vld [vmem:[#allocation105_spill] sm:$0xff]  ;;  %v1899_v44 = vmul.f32 %v6527_v63, %v7738_v43 }
 0x3c7   : > { %v2567_v2 = vpop.permute.xlu1 %2566  ;;  %v2571_v49 = vpop.permute.xlu0 %2570  ;;  %v1900_v34 = vmul.f32 %v6527_v63, %v7737_v33 }
 0x3c8   : > { %3679 = vst [vmem:[%s6024_s18 + $0x450] sm:$0xff] %v3423_v4  ;;  %3680 = vst [vmem:[%s6024_s18 + $0x458] sm:$0xff] %v3424_v16  ;;  %v3169_v50 = vadd.f32 %v2567_v2, %v1889_v3  ;;  %v3170_v51 = vadd.f32 %v2571_v49, %v1890_v40  ;;  %2814 = vperm.xlu1 %4021, %v4225_v52   ;;  %2818 = vperm.xlu0 %4020, %v4226_v6   ;;  %v4235_v49 = vld [vmem:[%s7430_s1 + $0x6a0] sm:$0xff] }
 0x3c9   : > { %v7740_v6 = vld [vmem:[#allocation108_spill] sm:$0xff] }
 0x3ca   : > { %v3425_v12 = vmax.f32 %v3169_v50, 0.0  ;;  %v3426_v37 = vmax.f32 %v3170_v51, 0.0  ;;  %v4236_v50 = vld [vmem:[%s7430_s1 + $0x6a8] sm:$0xff]  ;;  %v7739_v51 = vld [vmem:[#allocation107_spill] sm:$0xff]  ;;  %v1901_v32 = vmul.f32 %v6527_v63, %v7740_v6 }
 0x3cb   : > { %v2575_v38 = vpop.permute.xlu1 %2574  ;;  %v2579_v59 = vpop.permute.xlu0 %2578  ;;  %v1902_v52 = vmul.f32 %v6527_v63, %v7739_v51 }
 0x3cc   : > { %3681 = vst [vmem:[%s6024_s18 + $0x460] sm:$0xff] %v3425_v12  ;;  %3682 = vst [vmem:[%s6024_s18 + $0x468] sm:$0xff] %v3426_v37  ;;  %v3171_v60 = vadd.f32 %v2575_v38, %v1891_v11  ;;  %v3172_v9 = vadd.f32 %v2579_v59, %v1892_v25  ;;  %2822 = vperm.xlu1 %4021, %v4227_v10   ;;  %2826 = vperm.xlu0 %4020, %v4228_v53   ;;  %v4237_v59 = vld [vmem:[%s7430_s1 + $0x6b0] sm:$0xff] }
 0x3cd   : > { %v7742_v53 = vld [vmem:[#allocation110_spill] sm:$0xff] }
 0x3ce   : > { %v3427_v20 = vmax.f32 %v3171_v60, 0.0  ;;  %v3428_v7 = vmax.f32 %v3172_v9, 0.0  ;;  %v4238_v60 = vld [vmem:[%s7430_s1 + $0x6b8] sm:$0xff]  ;;  %v7741_v9 = vld [vmem:[#allocation109_spill] sm:$0xff]  ;;  %v1903_v54 = vmul.f32 %v6527_v63, %v7742_v53 }
 0x3cf   : > { %v2583_v8 = vpop.permute.xlu1 %2582  ;;  %v2587_v0 = vpop.permute.xlu0 %2586  ;;  %v1904_v10 = vmul.f32 %v6527_v63, %v7741_v9 }
 0x3d0   : > { %3683 = vst [vmem:[%s6024_s18 + $0x470] sm:$0xff] %v3427_v20  ;;  %3684 = vst [vmem:[%s6024_s18 + $0x478] sm:$0xff] %v3428_v7  ;;  %v3173_v31 = vadd.f32 %v2583_v8, %v1893_v19  ;;  %v3174_v48 = vadd.f32 %v2587_v0, %v1894_v17  ;;  %2830 = vperm.xlu1 %4021, %v4229_v1   ;;  %2834 = vperm.xlu0 %4020, %v4230_v41   ;;  %v4239_v0 = vld [vmem:[%s7430_s1 + $0x6c0] sm:$0xff] }
 0x3d1   : > { %v7744_v41 = vld [vmem:[#allocation112_spill] sm:$0xff] }
 0x3d2   : > { %v3429_v24 = vmax.f32 %v3173_v31, 0.0  ;;  %v3430_v27 = vmax.f32 %v3174_v48, 0.0  ;;  %v4240_v31 = vld [vmem:[%s7430_s1 + $0x6c8] sm:$0xff]  ;;  %v7743_v48 = vld [vmem:[#allocation111_spill] sm:$0xff]  ;;  %v1905_v42 = vmul.f32 %v6527_v63, %v7744_v41 }
 0x3d3   : > { %v2591_v28 = vpop.permute.xlu1 %2590  ;;  %v2595_v29 = vpop.permute.xlu0 %2594  ;;  %v1906_v1 = vmul.f32 %v6527_v63, %v7743_v48 }
 0x3d4   : > { %3685 = vst [vmem:[%s6024_s18 + $0x480] sm:$0xff] %v3429_v24  ;;  %3686 = vst [vmem:[%s6024_s18 + $0x488] sm:$0xff] %v3430_v27  ;;  %v3175_v30 = vadd.f32 %v2591_v28, %v1895_v23  ;;  %v3176_v5 = vadd.f32 %v2595_v29, %v1896_v57  ;;  %2838 = vperm.xlu1 %4021, %v4231_v56   ;;  %2842 = vperm.xlu0 %4020, %v4232_v47   ;;  %v4241_v29 = vld [vmem:[%s7430_s1 + $0x6d0] sm:$0xff] }
 0x3d5   : > { %v7746_v47 = vld [vmem:[#allocation114_spill] sm:$0xff] }
 0x3d6   : > { %v3431_v35 = vmax.f32 %v3175_v30, 0.0  ;;  %v3432_v36 = vmax.f32 %v3176_v5, 0.0  ;;  %v4242_v30 = vld [vmem:[%s7430_s1 + $0x6d8] sm:$0xff]  ;;  %v7745_v5 = vld [vmem:[#allocation113_spill] sm:$0xff]  ;;  %v1907_v55 = vmul.f32 %v6527_v63, %v7746_v47 }
 0x3d7   : > { %v2599_v61 = vpop.permute.xlu1 %2598  ;;  %v2603_v62 = vpop.permute.xlu0 %2602  ;;  %v1908_v56 = vmul.f32 %v6527_v63, %v7745_v5 }
 0x3d8   : > { %3687 = vst [vmem:[%s6024_s18 + $0x490] sm:$0xff] %v3431_v35  ;;  %3688 = vst [vmem:[%s6024_s18 + $0x498] sm:$0xff] %v3432_v36  ;;  %v3177_v45 = vadd.f32 %v2599_v61, %v1897_v22  ;;  %v3178_v46 = vadd.f32 %v2603_v62, %v1898_v21  ;;  %2846 = vperm.xlu1 %4021, %v4233_v13   ;;  %2850 = vperm.xlu0 %4020, %v4234_v14   ;;  %v4243_v62 = vld [vmem:[%s7430_s1 + $0x6e0] sm:$0xff] }
 0x3d9   : > { %v7748_v14 = vld [vmem:[#allocation116_spill] sm:$0xff] }
 0x3da   : > { %v3433_v40 = vmax.f32 %v3177_v45, 0.0  ;;  %v3434_v15 = vmax.f32 %v3178_v46, 0.0  ;;  %v4244_v45 = vld [vmem:[%s7430_s1 + $0x6e8] sm:$0xff]  ;;  %v7747_v46 = vld [vmem:[#allocation115_spill] sm:$0xff]  ;;  %v1909_v33 = vmul.f32 %v6527_v63, %v7748_v14 }
 0x3db   : > { %v2607_v3 = vpop.permute.xlu1 %2606  ;;  %v2611_v4 = vpop.permute.xlu0 %2610  ;;  %v1910_v13 = vmul.f32 %v6527_v63, %v7747_v46 }
 0x3dc   : > { %3689 = vst [vmem:[%s6024_s18 + $0x4a0] sm:$0xff] %v3433_v40  ;;  %3690 = vst [vmem:[%s6024_s18 + $0x4a8] sm:$0xff] %v3434_v15  ;;  %v3179_v16 = vadd.f32 %v2607_v3, %v1899_v44  ;;  %v3180_v2 = vadd.f32 %v2611_v4, %v1900_v34  ;;  %2854 = vperm.xlu1 %4021, %v4235_v49   ;;  %2858 = vperm.xlu0 %4020, %v4236_v50   ;;  %v4245_v4 = vld [vmem:[%s7430_s1 + $0x6f0] sm:$0xff] }
 0x3dd   : > { %v7750_v50 = vld [vmem:[#allocation118_spill] sm:$0xff] }
 0x3de   : > { %v3435_v25 = vmax.f32 %v3179_v16, 0.0  ;;  %v3436_v26 = vmax.f32 %v3180_v2, 0.0  ;;  %v4246_v16 = vld [vmem:[%s7430_s1 + $0x6f8] sm:$0xff]  ;;  %v7749_v2 = vld [vmem:[#allocation117_spill] sm:$0xff]  ;;  %v1911_v51 = vmul.f32 %v6527_v63, %v7750_v50 }
 0x3df   : > { %v2615_v11 = vpop.permute.xlu1 %2614  ;;  %v2619_v12 = vpop.permute.xlu0 %2618  ;;  %v1912_v49 = vmul.f32 %v6527_v63, %v7749_v2 }
 0x3e0   : > { %3691 = vst [vmem:[%s6024_s18 + $0x4b0] sm:$0xff] %v3435_v25  ;;  %3692 = vst [vmem:[%s6024_s18 + $0x4b8] sm:$0xff] %v3436_v26  ;;  %v3181_v37 = vadd.f32 %v2615_v11, %v1901_v32  ;;  %v3182_v38 = vadd.f32 %v2619_v12, %v1902_v52  ;;  %2862 = vperm.xlu1 %4021, %v4237_v59   ;;  %2866 = vperm.xlu0 %4020, %v4238_v60   ;;  %v4247_v12 = vld [vmem:[%s7430_s1 + $0x700] sm:$0xff] }
 0x3e1   : > { %v7752_v60 = vld [vmem:[#allocation120_spill] sm:$0xff] }
 0x3e2   : > { %v3437_v17 = vmax.f32 %v3181_v37, 0.0  ;;  %v3438_v18 = vmax.f32 %v3182_v38, 0.0  ;;  %v4248_v37 = vld [vmem:[%s7430_s1 + $0x708] sm:$0xff]  ;;  %v7751_v38 = vld [vmem:[#allocation119_spill] sm:$0xff]  ;;  %v1913_v9 = vmul.f32 %v6527_v63, %v7752_v60 }
 0x3e3   : > { %v2623_v19 = vpop.permute.xlu1 %2622  ;;  %v2627_v20 = vpop.permute.xlu0 %2626  ;;  %v1914_v59 = vmul.f32 %v6527_v63, %v7751_v38 }
 0x3e4   : > { %3693 = vst [vmem:[%s6024_s18 + $0x4c0] sm:$0xff] %v3437_v17  ;;  %3694 = vst [vmem:[%s6024_s18 + $0x4c8] sm:$0xff] %v3438_v18  ;;  %v3183_v7 = vadd.f32 %v2623_v19, %v1903_v54  ;;  %v3184_v8 = vadd.f32 %v2627_v20, %v1904_v10  ;;  %2870 = vperm.xlu1 %4021, %v4239_v0   ;;  %2874 = vperm.xlu0 %4020, %v4240_v31   ;;  %v4249_v20 = vld [vmem:[%s7430_s1 + $0x710] sm:$0xff] }
 0x3e5   : > { %v7754_v31 = vld [vmem:[#allocation122_spill] sm:$0xff] }
 0x3e6   : > { %v3439_v57 = vmax.f32 %v3183_v7, 0.0  ;;  %v3440_v58 = vmax.f32 %v3184_v8, 0.0  ;;  %v4250_v7 = vld [vmem:[%s7430_s1 + $0x718] sm:$0xff]  ;;  %v7753_v8 = vld [vmem:[#allocation121_spill] sm:$0xff]  ;;  %v1915_v48 = vmul.f32 %v6527_v63, %v7754_v31 }
 0x3e7   : > { %v2631_v23 = vpop.permute.xlu1 %2630  ;;  %v2635_v24 = vpop.permute.xlu0 %2634  ;;  %v1916_v0 = vmul.f32 %v6527_v63, %v7753_v8 }
 0x3e8   : > { %3695 = vst [vmem:[%s6024_s18 + $0x4d0] sm:$0xff] %v3439_v57  ;;  %3696 = vst [vmem:[%s6024_s18 + $0x4d8] sm:$0xff] %v3440_v58  ;;  %v3185_v27 = vadd.f32 %v2631_v23, %v1905_v42  ;;  %v3186_v28 = vadd.f32 %v2635_v24, %v1906_v1  ;;  %2878 = vperm.xlu1 %4021, %v4241_v29   ;;  %2882 = vperm.xlu0 %4020, %v4242_v30   ;;  %v4251_v24 = vld [vmem:[%s7430_s1 + $0x720] sm:$0xff] }
 0x3e9   : > { %v7756_v30 = vld [vmem:[#allocation124_spill] sm:$0xff] }
 0x3ea   : > { %v3441_v21 = vmax.f32 %v3185_v27, 0.0  ;;  %v3442_v39 = vmax.f32 %v3186_v28, 0.0  ;;  %v4252_v27 = vld [vmem:[%s7430_s1 + $0x728] sm:$0xff]  ;;  %v7755_v28 = vld [vmem:[#allocation123_spill] sm:$0xff]  ;;  %v1917_v5 = vmul.f32 %v6527_v63, %v7756_v30 }
 0x3eb   : > { %v2639_v22 = vpop.permute.xlu1 %2638  ;;  %v2643_v35 = vpop.permute.xlu0 %2642  ;;  %v1918_v29 = vmul.f32 %v6527_v63, %v7755_v28 }
 0x3ec   : > { %3697 = vst [vmem:[%s6024_s18 + $0x4e0] sm:$0xff] %v3441_v21  ;;  %3698 = vst [vmem:[%s6024_s18 + $0x4e8] sm:$0xff] %v3442_v39  ;;  %v3187_v36 = vadd.f32 %v2639_v22, %v1907_v55  ;;  %v3188_v61 = vadd.f32 %v2643_v35, %v1908_v56  ;;  %2886 = vperm.xlu1 %4021, %v4243_v62   ;;  %2890 = vperm.xlu0 %4020, %v4244_v45   ;;  %v4253_v35 = vld [vmem:[%s7430_s1 + $0x730] sm:$0xff] }
 0x3ed   : > { %v7758_v45 = vld [vmem:[#allocation126_spill] sm:$0xff] }
 0x3ee   : > { %v3443_v34 = vmax.f32 %v3187_v36, 0.0  ;;  %v3444_v43 = vmax.f32 %v3188_v61, 0.0  ;;  %v4254_v36 = vld [vmem:[%s7430_s1 + $0x738] sm:$0xff]  ;;  %v7757_v61 = vld [vmem:[#allocation125_spill] sm:$0xff]  ;;  %v1919_v46 = vmul.f32 %v6527_v63, %v7758_v45 }
 0x3ef   : > { %v2647_v44 = vpop.permute.xlu1 %2646  ;;  %v2651_v40 = vpop.permute.xlu0 %2650  ;;  %v1920_v62 = vmul.f32 %v6527_v63, %v7757_v61  ;;  %v7046_v63 = vld [vmem:[%s4534_s6] ss:$0 sm:$0xff] }
 0x3f0   : > { %3699 = vst [vmem:[%s6024_s18 + $0x4f0] sm:$0xff] %v3443_v34  ;;  %3700 = vst [vmem:[%s6024_s18 + $0x4f8] sm:$0xff] %v3444_v43  ;;  %v3189_v15 = vadd.f32 %v2647_v44, %v1909_v33  ;;  %v3190_v3 = vadd.f32 %v2651_v40, %v1910_v13  ;;  %2894 = vperm.xlu1 %4021, %v4245_v4   ;;  %2898 = vperm.xlu0 %4020, %v4246_v16   ;;  %v4255_v40 = vld [vmem:[%s7430_s1 + $0x740] sm:$0xff] }
 0x3f1   : > { %v7760_v16 = vld [vmem:[#allocation128_spill] sm:$0xff] }
 0x3f2   : > { %v3445_v52 = vmax.f32 %v3189_v15, 0.0  ;;  %v3446_v6 = vmax.f32 %v3190_v3, 0.0  ;;  %v4256_v15 = vld [vmem:[%s7430_s1 + $0x748] sm:$0xff]  ;;  %v7759_v3 = vld [vmem:[#allocation127_spill] sm:$0xff]  ;;  %v1921_v2 = vmul.f32 %v7046_v63, %v7760_v16 }
 0x3f3   : > { %v2655_v32 = vpop.permute.xlu1 %2654  ;;  %v2659_v25 = vpop.permute.xlu0 %2658  ;;  %v1922_v4 = vmul.f32 %v7046_v63, %v7759_v3 }
 0x3f4   : > { %3701 = vst [vmem:[%s6024_s18 + $0x500] sm:$0xff] %v3445_v52  ;;  %3702 = vst [vmem:[%s6024_s18 + $0x508] sm:$0xff] %v3446_v6  ;;  %v3191_v26 = vadd.f32 %v2655_v32, %v1911_v51  ;;  %v3192_v11 = vadd.f32 %v2659_v25, %v1912_v49  ;;  %2902 = vperm.xlu1 %4021, %v4247_v12   ;;  %2906 = vperm.xlu0 %4020, %v4248_v37   ;;  %v4258_v25 = vld [vmem:[%s7430_s1 + $0x750] sm:$0xff] }
 0x3f5   : > { %v7762_v37 = vld [vmem:[#allocation130_spill] sm:$0xff] }
 0x3f6   : > { %v3447_v10 = vmax.f32 %v3191_v26, 0.0  ;;  %v3448_v53 = vmax.f32 %v3192_v11, 0.0  ;;  %v4259_v26 = vld [vmem:[%s7430_s1 + $0x758] sm:$0xff]  ;;  %v7761_v11 = vld [vmem:[#allocation129_spill] sm:$0xff]  ;;  %v1923_v38 = vmul.f32 %v7046_v63, %v7762_v37 }
 0x3f7   : > { %v2663_v54 = vpop.permute.xlu1 %2662  ;;  %v2667_v17 = vpop.permute.xlu0 %2666  ;;  %v1924_v12 = vmul.f32 %v7046_v63, %v7761_v11 }
 0x3f8   : > { %3703 = vst [vmem:[%s6024_s18 + $0x510] sm:$0xff] %v3447_v10  ;;  %3704 = vst [vmem:[%s6024_s18 + $0x518] sm:$0xff] %v3448_v53  ;;  %v3193_v18 = vadd.f32 %v2663_v54, %v1913_v9  ;;  %v3194_v19 = vadd.f32 %v2667_v17, %v1914_v59  ;;  %2910 = vperm.xlu1 %4021, %v4249_v20   ;;  %2914 = vperm.xlu0 %4020, %v4250_v7   ;;  %v4260_v17 = vld [vmem:[%s7430_s1 + $0x760] sm:$0xff] }
 0x3f9   : > { %v7764_v7 = vld [vmem:[#allocation132_spill] sm:$0xff] }
 0x3fa   : > { %v3449_v1 = vmax.f32 %v3193_v18, 0.0  ;;  %v3450_v41 = vmax.f32 %v3194_v19, 0.0  ;;  %v4261_v18 = vld [vmem:[%s7430_s1 + $0x768] sm:$0xff]  ;;  %v7763_v19 = vld [vmem:[#allocation131_spill] sm:$0xff]  ;;  %v1925_v8 = vmul.f32 %v7046_v63, %v7764_v7 }
 0x3fb   : > { %v2671_v42 = vpop.permute.xlu1 %2670  ;;  %v2675_v57 = vpop.permute.xlu0 %2674  ;;  %v1926_v20 = vmul.f32 %v7046_v63, %v7763_v19 }
 0x3fc   : > { %3705 = vst [vmem:[%s6024_s18 + $0x520] sm:$0xff] %v3449_v1  ;;  %3706 = vst [vmem:[%s6024_s18 + $0x528] sm:$0xff] %v3450_v41  ;;  %v3195_v58 = vadd.f32 %v2671_v42, %v1915_v48  ;;  %v3196_v23 = vadd.f32 %v2675_v57, %v1916_v0  ;;  %2918 = vperm.xlu1 %4021, %v4251_v24   ;;  %2922 = vperm.xlu0 %4020, %v4252_v27   ;;  %v4262_v57 = vld [vmem:[%s7430_s1 + $0x770] sm:$0xff] }
 0x3fd   : > { %v7766_v27 = vld [vmem:[#allocation134_spill] sm:$0xff] }
 0x3fe   : > { %v3451_v56 = vmax.f32 %v3195_v58, 0.0  ;;  %v3452_v47 = vmax.f32 %v3196_v23, 0.0  ;;  %v4263_v58 = vld [vmem:[%s7430_s1 + $0x778] sm:$0xff]  ;;  %v7765_v23 = vld [vmem:[#allocation133_spill] sm:$0xff]  ;;  %v1927_v28 = vmul.f32 %v7046_v63, %v7766_v27 }
 0x3ff   : > { %v2679_v55 = vpop.permute.xlu1 %2678  ;;  %v2683_v21 = vpop.permute.xlu0 %2682  ;;  %v1928_v24 = vmul.f32 %v7046_v63, %v7765_v23 }
 0x400   : > { %3707 = vst [vmem:[%s6024_s18 + $0x530] sm:$0xff] %v3451_v56  ;;  %3708 = vst [vmem:[%s6024_s18 + $0x538] sm:$0xff] %v3452_v47  ;;  %v3197_v39 = vadd.f32 %v2679_v55, %v1917_v5  ;;  %v3198_v22 = vadd.f32 %v2683_v21, %v1918_v29  ;;  %2926 = vperm.xlu1 %4021, %v4253_v35   ;;  %2930 = vperm.xlu0 %4020, %v4254_v36   ;;  %v4264_v21 = vld [vmem:[%s7430_s1 + $0x780] sm:$0xff] }
 0x401   : > { %v7768_v36 = vld [vmem:[#allocation136_spill] sm:$0xff] }
 0x402   : > { %v3453_v13 = vmax.f32 %v3197_v39, 0.0  ;;  %v3454_v14 = vmax.f32 %v3198_v22, 0.0  ;;  %v4265_v39 = vld [vmem:[%s7430_s1 + $0x788] sm:$0xff]  ;;  %v7767_v22 = vld [vmem:[#allocation135_spill] sm:$0xff]  ;;  %v1929_v61 = vmul.f32 %v7046_v63, %v7768_v36 }
 0x403   : > { %v2687_v33 = vpop.permute.xlu1 %2686  ;;  %v2691_v34 = vpop.permute.xlu0 %2690  ;;  %v1930_v35 = vmul.f32 %v7046_v63, %v7767_v22 }
 0x404   : > { %3709 = vst [vmem:[%s6024_s18 + $0x540] sm:$0xff] %v3453_v13  ;;  %3710 = vst [vmem:[%s6024_s18 + $0x548] sm:$0xff] %v3454_v14  ;;  %v3199_v43 = vadd.f32 %v2687_v33, %v1919_v46  ;;  %v3200_v44 = vadd.f32 %v2691_v34, %v1920_v62  ;;  %2934 = vperm.xlu1 %4021, %v4255_v40   ;;  %2938 = vperm.xlu0 %4020, %v4256_v15   ;;  %v4266_v34 = vld [vmem:[%s7430_s1 + $0x790] sm:$0xff] }
 0x405   : > { %v7770_v15 = vld [vmem:[#allocation138_spill] sm:$0xff] }
 0x406   : > { %v3455_v49 = vmax.f32 %v3199_v43, 0.0  ;;  %v3456_v50 = vmax.f32 %v3200_v44, 0.0  ;;  %v4267_v43 = vld [vmem:[%s7430_s1 + $0x798] sm:$0xff]  ;;  %v7769_v44 = vld [vmem:[#allocation137_spill] sm:$0xff]  ;;  %v1931_v3 = vmul.f32 %v7046_v63, %v7770_v15 }
 0x407   : > { %v2695_v51 = vpop.permute.xlu1 %2694  ;;  %v2699_v52 = vpop.permute.xlu0 %2698  ;;  %v1932_v40 = vmul.f32 %v7046_v63, %v7769_v44 }
 0x408   : > { %3711 = vst [vmem:[%s6024_s18 + $0x550] sm:$0xff] %v3455_v49  ;;  %3712 = vst [vmem:[%s6024_s18 + $0x558] sm:$0xff] %v3456_v50  ;;  %v3201_v6 = vadd.f32 %v2695_v51, %v1921_v2  ;;  %v3202_v32 = vadd.f32 %v2699_v52, %v1922_v4  ;;  %2942 = vperm.xlu1 %4021, %v4258_v25   ;;  %2946 = vperm.xlu0 %4020, %v4259_v26   ;;  %v4268_v52 = vld [vmem:[%s7430_s1 + $0x7a0] sm:$0xff] }
 0x409   : > { %v7772_v26 = vld [vmem:[#allocation140_spill] sm:$0xff] }
 0x40a   : > { %v3457_v59 = vmax.f32 %v3201_v6, 0.0  ;;  %v3458_v60 = vmax.f32 %v3202_v32, 0.0  ;;  %v4269_v6 = vld [vmem:[%s7430_s1 + $0x7a8] sm:$0xff]  ;;  %v7771_v32 = vld [vmem:[#allocation139_spill] sm:$0xff]  ;;  %v1933_v11 = vmul.f32 %v7046_v63, %v7772_v26 }
 0x40b   : > { %v2703_v9 = vpop.permute.xlu1 %2702  ;;  %v2707_v10 = vpop.permute.xlu0 %2706  ;;  %v1934_v25 = vmul.f32 %v7046_v63, %v7771_v32 }
 0x40c   : > { %3713 = vst [vmem:[%s6024_s18 + $0x560] sm:$0xff] %v3457_v59  ;;  %3714 = vst [vmem:[%s6024_s18 + $0x568] sm:$0xff] %v3458_v60  ;;  %v3203_v53 = vadd.f32 %v2703_v9, %v1923_v38  ;;  %v3204_v54 = vadd.f32 %v2707_v10, %v1924_v12  ;;  %2950 = vperm.xlu1 %4021, %v4260_v17   ;;  %2954 = vperm.xlu0 %4020, %v4261_v18   ;;  %v4270_v10 = vld [vmem:[%s7430_s1 + $0x7b0] sm:$0xff] }
 0x40d   : > { %v7774_v18 = vld [vmem:[#allocation142_spill] sm:$0xff] }
 0x40e   : > { %v3459_v0 = vmax.f32 %v3203_v53, 0.0  ;;  %v3460_v31 = vmax.f32 %v3204_v54, 0.0  ;;  %v4271_v53 = vld [vmem:[%s7430_s1 + $0x7b8] sm:$0xff]  ;;  %v7773_v54 = vld [vmem:[#allocation141_spill] sm:$0xff]  ;;  %v1935_v19 = vmul.f32 %v7046_v63, %v7774_v18 }
 0x40f   : > { %v2711_v48 = vpop.permute.xlu1 %2710  ;;  %v2715_v1 = vpop.permute.xlu0 %2714  ;;  %v1936_v17 = vmul.f32 %v7046_v63, %v7773_v54 }
 0x410   : > { %3715 = vst [vmem:[%s6024_s18 + $0x570] sm:$0xff] %v3459_v0  ;;  %3716 = vst [vmem:[%s6024_s18 + $0x578] sm:$0xff] %v3460_v31  ;;  %v3205_v41 = vadd.f32 %v2711_v48, %v1925_v8  ;;  %v3206_v42 = vadd.f32 %v2715_v1, %v1926_v20  ;;  %2958 = vperm.xlu1 %4021, %v4262_v57   ;;  %2962 = vperm.xlu0 %4020, %v4263_v58   ;;  %v4272_v1 = vld [vmem:[%s7430_s1 + $0x7c0] sm:$0xff] }
 0x411   : > { %v7776_v58 = vld [vmem:[#allocation144_spill] sm:$0xff] }
 0x412   : > { %v3461_v29 = vmax.f32 %v3205_v41, 0.0  ;;  %v3462_v30 = vmax.f32 %v3206_v42, 0.0  ;;  %v4273_v41 = vld [vmem:[%s7430_s1 + $0x7c8] sm:$0xff]  ;;  %v7775_v42 = vld [vmem:[#allocation143_spill] sm:$0xff]  ;;  %v1937_v23 = vmul.f32 %v7046_v63, %v7776_v58 }
 0x413   : > { %v2719_v5 = vpop.permute.xlu1 %2718  ;;  %v2723_v56 = vpop.permute.xlu0 %2722  ;;  %v1938_v57 = vmul.f32 %v7046_v63, %v7775_v42 }
 0x414   : > { %3717 = vst [vmem:[%s6024_s18 + $0x580] sm:$0xff] %v3461_v29  ;;  %3718 = vst [vmem:[%s6024_s18 + $0x588] sm:$0xff] %v3462_v30  ;;  %v3207_v47 = vadd.f32 %v2719_v5, %v1927_v28  ;;  %v3208_v55 = vadd.f32 %v2723_v56, %v1928_v24  ;;  %2966 = vperm.xlu1 %4021, %v4264_v21   ;;  %2970 = vperm.xlu0 %4020, %v4265_v39   ;;  %v4274_v56 = vld [vmem:[%s7430_s1 + $0x7d0] sm:$0xff] }
 0x415   : > { %v7778_v39 = vld [vmem:[#allocation146_spill] sm:$0xff] }
 0x416   : > { %v3463_v62 = vmax.f32 %v3207_v47, 0.0  ;;  %v3464_v45 = vmax.f32 %v3208_v55, 0.0  ;;  %v4275_v47 = vld [vmem:[%s7430_s1 + $0x7d8] sm:$0xff]  ;;  %v7777_v55 = vld [vmem:[#allocation145_spill] sm:$0xff]  ;;  %v1939_v22 = vmul.f32 %v7046_v63, %v7778_v39 }
 0x417   : > { %v2727_v46 = vpop.permute.xlu1 %2726  ;;  %v2731_v13 = vpop.permute.xlu0 %2730  ;;  %v1940_v21 = vmul.f32 %v7046_v63, %v7777_v55 }
 0x418   : > { %3719 = vst [vmem:[%s6024_s18 + $0x590] sm:$0xff] %v3463_v62  ;;  %3720 = vst [vmem:[%s6024_s18 + $0x598] sm:$0xff] %v3464_v45  ;;  %v3209_v14 = vadd.f32 %v2727_v46, %v1929_v61  ;;  %v3210_v33 = vadd.f32 %v2731_v13, %v1930_v35  ;;  %2974 = vperm.xlu1 %4021, %v4266_v34   ;;  %2978 = vperm.xlu0 %4020, %v4267_v43   ;;  %v4276_v13 = vld [vmem:[%s7430_s1 + $0x7e0] sm:$0xff] }
 0x419   : > { %v7780_v43 = vld [vmem:[#allocation148_spill] sm:$0xff] }
 0x41a   : > { %v3465_v4 = vmax.f32 %v3209_v14, 0.0  ;;  %v3466_v16 = vmax.f32 %v3210_v33, 0.0  ;;  %v4277_v14 = vld [vmem:[%s7430_s1 + $0x7e8] sm:$0xff]  ;;  %v7779_v33 = vld [vmem:[#allocation147_spill] sm:$0xff]  ;;  %v1941_v44 = vmul.f32 %v7046_v63, %v7780_v43 }
 0x41b   : > { %v2735_v2 = vpop.permute.xlu1 %2734  ;;  %v2739_v49 = vpop.permute.xlu0 %2738  ;;  %v1942_v34 = vmul.f32 %v7046_v63, %v7779_v33 }
 0x41c   : > { %3721 = vst [vmem:[%s6024_s18 + $0x5a0] sm:$0xff] %v3465_v4  ;;  %3722 = vst [vmem:[%s6024_s18 + $0x5a8] sm:$0xff] %v3466_v16  ;;  %v3211_v50 = vadd.f32 %v2735_v2, %v1931_v3  ;;  %v3212_v51 = vadd.f32 %v2739_v49, %v1932_v40  ;;  %2982 = vperm.xlu1 %4021, %v4268_v52   ;;  %2986 = vperm.xlu0 %4020, %v4269_v6   ;;  %v4278_v49 = vld [vmem:[%s7430_s1 + $0x7f0] sm:$0xff] }
 0x41d   : > { %v7782_v6 = vld [vmem:[#allocation150_spill] sm:$0xff] }
 0x41e   : > { %v3467_v12 = vmax.f32 %v3211_v50, 0.0  ;;  %v3468_v37 = vmax.f32 %v3212_v51, 0.0  ;;  %v4279_v50 = vld [vmem:[%s7430_s1 + $0x7f8] sm:$0xff]  ;;  %v7781_v51 = vld [vmem:[#allocation149_spill] sm:$0xff]  ;;  %v1943_v32 = vmul.f32 %v7046_v63, %v7782_v6 }
 0x41f   : > { %v2743_v38 = vpop.permute.xlu1 %2742  ;;  %v2747_v59 = vpop.permute.xlu0 %2746  ;;  %v1944_v52 = vmul.f32 %v7046_v63, %v7781_v51 }
 0x420   : > { %3723 = vst [vmem:[%s6024_s18 + $0x5b0] sm:$0xff] %v3467_v12  ;;  %3724 = vst [vmem:[%s6024_s18 + $0x5b8] sm:$0xff] %v3468_v37  ;;  %v3213_v60 = vadd.f32 %v2743_v38, %v1933_v11  ;;  %v3214_v9 = vadd.f32 %v2747_v59, %v1934_v25  ;;  %2990 = vperm.xlu1 %4021, %v4270_v10   ;;  %2994 = vperm.xlu0 %4020, %v4271_v53   ;;  %v7783_v59 = vld [vmem:[#allocation151_spill] sm:$0xff] }
 0x422   : > { %v3469_v20 = vmax.f32 %v3213_v60, 0.0  ;;  %v3470_v7 = vmax.f32 %v3214_v9, 0.0  ;;  %v1946_v60 = vmul.f32 %v7046_v63, %v7783_v59  ;;  %v7784_v9 = vld [vmem:[#allocation152_spill] sm:$0xff] }
 0x423   : > { %v2751_v8 = vpop.permute.xlu1 %2750  ;;  %v2755_v0 = vpop.permute.xlu0 %2754  ;;  %v1945_v10 = vmul.f32 %v7046_v63, %v7784_v9 }
 0x424   : > { %3725 = vst [vmem:[%s6024_s18 + $0x5c0] sm:$0xff] %v3469_v20  ;;  %3726 = vst [vmem:[%s6024_s18 + $0x5c8] sm:$0xff] %v3470_v7  ;;  %v3215_v31 = vadd.f32 %v2751_v8, %v1935_v19  ;;  %v3216_v48 = vadd.f32 %v2755_v0, %v1936_v17  ;;  %2998 = vperm.xlu1 %4021, %v4272_v1   ;;  %3002 = vperm.xlu0 %4020, %v4273_v41   ;;  %v7785_v7 = vld [vmem:[#allocation153_spill] sm:$0xff]  ;;  %v7786_v0 = vld [vmem:[#allocation154_spill] sm:$0xff] }
 0x425   : > { %v1948_v8 = vmul.f32 %v7046_v63, %v7785_v7 }
 0x426   : > { %v3471_v24 = vmax.f32 %v3215_v31, 0.0  ;;  %v3472_v27 = vmax.f32 %v3216_v48, 0.0  ;;  %v1947_v31 = vmul.f32 %v7046_v63, %v7786_v0 }
 0x427   : > { %v2759_v28 = vpop.permute.xlu1 %2758  ;;  %v2763_v29 = vpop.permute.xlu0 %2762 }
 0x428   : > { %3727 = vst [vmem:[%s6024_s18 + $0x5d0] sm:$0xff] %v3471_v24  ;;  %3728 = vst [vmem:[%s6024_s18 + $0x5d8] sm:$0xff] %v3472_v27  ;;  %v3217_v30 = vadd.f32 %v2759_v28, %v1937_v23  ;;  %v3218_v5 = vadd.f32 %v2763_v29, %v1938_v57  ;;  %3006 = vperm.xlu1 %4021, %v4274_v56   ;;  %3010 = vperm.xlu0 %4020, %v4275_v47   ;;  %v7787_v23 = vld [vmem:[#allocation155_spill] sm:$0xff]  ;;  %v7788_v27 = vld [vmem:[#allocation156_spill] sm:$0xff] }
 0x429   : > { %v1950_v24 = vmul.f32 %v7046_v63, %v7787_v23  ;;  %v1949_v28 = vmul.f32 %v7046_v63, %v7788_v27 }
 0x42a   : > { %v3473_v35 = vmax.f32 %v3217_v30, 0.0  ;;  %v3474_v36 = vmax.f32 %v3218_v5, 0.0 }
 0x42b   : > { %v2767_v61 = vpop.permute.xlu1 %2766  ;;  %v2771_v62 = vpop.permute.xlu0 %2770 }
 0x42c   : > { %3729 = vst [vmem:[%s6024_s18 + $0x5e0] sm:$0xff] %v3473_v35  ;;  %3730 = vst [vmem:[%s6024_s18 + $0x5e8] sm:$0xff] %v3474_v36  ;;  %v3219_v45 = vadd.f32 %v2767_v61, %v1939_v22  ;;  %v3220_v46 = vadd.f32 %v2771_v62, %v1940_v21  ;;  %3014 = vperm.xlu1 %4021, %v4276_v13   ;;  %3018 = vperm.xlu0 %4020, %v4277_v14   ;;  %v7789_v21 = vld [vmem:[#allocation157_spill] sm:$0xff]  ;;  %v7790_v22 = vld [vmem:[#allocation158_spill] sm:$0xff] }
 0x42d   : > { %v1952_v39 = vmul.f32 %v7046_v63, %v7789_v21  ;;  %v1951_v35 = vmul.f32 %v7046_v63, %v7790_v22  ;;  %v7791_v14 = vld [vmem:[#allocation159_spill] sm:$0xff] }
 0x42e   : > { %v3475_v40 = vmax.f32 %v3219_v45, 0.0  ;;  %v3476_v15 = vmax.f32 %v3220_v46, 0.0  ;;  %v1954_v33 = vmul.f32 %v7046_v63, %v7791_v14 }
 0x42f   : > { %v2775_v3 = vpop.permute.xlu1 %2774  ;;  %v2779_v4 = vpop.permute.xlu0 %2778 }
 0x430   : > { %3731 = vst [vmem:[%s6024_s18 + $0x5f0] sm:$0xff] %v3475_v40  ;;  %3732 = vst [vmem:[%s6024_s18 + $0x5f8] sm:$0xff] %v3476_v15  ;;  %v3221_v16 = vadd.f32 %v2775_v3, %v1941_v44  ;;  %v3222_v2 = vadd.f32 %v2779_v4, %v1942_v34  ;;  %3022 = vperm.xlu1 %4021, %v4278_v49   ;;  %3026 = vperm.xlu0 %4020, %v4279_v50   ;;  %v7792_v34 = vld [vmem:[#allocation160_spill] sm:$0xff]  ;;  %v7794_v50 = vld [vmem:[#allocation162_spill] sm:$0xff] }
 0x431   : > { %v1953_v43 = vmul.f32 %v7046_v63, %v7792_v34  ;;  %v1955_v51 = vmul.f32 %v7046_v63, %v7794_v50 }
 0x432   : > { %v3477_v25 = vmax.f32 %v3221_v16, 0.0  ;;  %v3478_v26 = vmax.f32 %v3222_v2, 0.0  ;;  %v7793_v2 = vld [vmem:[#allocation161_spill] sm:$0xff] }
 0x433   : > { %v2783_v11 = vpop.permute.xlu1 %2782  ;;  %v2787_v12 = vpop.permute.xlu0 %2786  ;;  %v1956_v49 = vmul.f32 %v7046_v63, %v7793_v2 }
 0x434   : > { %3733 = vst [vmem:[%s6024_s18 + $0x600] sm:$0xff] %v3477_v25  ;;  %3734 = vst [vmem:[%s6024_s18 + $0x608] sm:$0xff] %v3478_v26  ;;  %v3223_v37 = vadd.f32 %v2783_v11, %v1943_v32  ;;  %v3224_v38 = vadd.f32 %v2787_v12, %v1944_v52  ;;  %v7795_v12 = vld [vmem:[#allocation163_spill] sm:$0xff] }
 0x436   : > { %v3479_v53 = vmax.f32 %v3223_v37, 0.0  ;;  %v3480_v54 = vmax.f32 %v3224_v38, 0.0  ;;  %v1958_v37 = vmul.f32 %v7046_v63, %v7795_v12  ;;  %v7796_v38 = vld [vmem:[#allocation164_spill] sm:$0xff] }
 0x437   : > { %v2791_v17 = vpop.permute.xlu1 %2790  ;;  %v2795_v18 = vpop.permute.xlu0 %2794  ;;  %v1957_v59 = vmul.f32 %v7046_v63, %v7796_v38 }
 0x438   : > { %3735 = vst [vmem:[%s6024_s18 + $0x610] sm:$0xff] %v3479_v53  ;;  %3736 = vst [vmem:[%s6024_s18 + $0x618] sm:$0xff] %v3480_v54  ;;  %v3225_v19 = vadd.f32 %v2791_v17, %v1945_v10  ;;  %v3226_v20 = vadd.f32 %v2795_v18, %v1946_v60  ;;  %v7797_v18 = vld [vmem:[#allocation165_spill] sm:$0xff] }
 0x43a   : > { %v3481_v48 = vmax.f32 %v3225_v19, 0.0  ;;  %v3482_v1 = vmax.f32 %v3226_v20, 0.0  ;;  %v1960_v19 = vmul.f32 %v7046_v63, %v7797_v18  ;;  %v7798_v20 = vld [vmem:[#allocation166_spill] sm:$0xff] }
 0x43b   : > { %v2799_v41 = vpop.permute.xlu1 %2798  ;;  %v2803_v42 = vpop.permute.xlu0 %2802  ;;  %v1959_v7 = vmul.f32 %v7046_v63, %v7798_v20 }
 0x43c   : > { %3737 = vst [vmem:[%s6024_s18 + $0x620] sm:$0xff] %v3481_v48  ;;  %3738 = vst [vmem:[%s6024_s18 + $0x628] sm:$0xff] %v3482_v1  ;;  %v3227_v57 = vadd.f32 %v2799_v41, %v1947_v31  ;;  %v3228_v58 = vadd.f32 %v2803_v42, %v1948_v8  ;;  %v7799_v42 = vld [vmem:[#allocation167_spill] sm:$0xff] }
 0x43e   : > { %v3483_v29 = vmax.f32 %v3227_v57, 0.0  ;;  %v3484_v30 = vmax.f32 %v3228_v58, 0.0  ;;  %v1962_v57 = vmul.f32 %v7046_v63, %v7799_v42  ;;  %v7800_v58 = vld [vmem:[#allocation168_spill] sm:$0xff] }
 0x43f   : > { %v2807_v5 = vpop.permute.xlu1 %2806  ;;  %v2811_v56 = vpop.permute.xlu0 %2810  ;;  %v1961_v23 = vmul.f32 %v7046_v63, %v7800_v58 }
 0x440   : > { %3739 = vst [vmem:[%s6024_s18 + $0x630] sm:$0xff] %v3483_v29  ;;  %3740 = vst [vmem:[%s6024_s18 + $0x638] sm:$0xff] %v3484_v30  ;;  %v3229_v47 = vadd.f32 %v2807_v5, %v1949_v28  ;;  %v3230_v55 = vadd.f32 %v2811_v56, %v1950_v24  ;;  %v7801_v56 = vld [vmem:[#allocation169_spill] sm:$0xff] }
 0x442   : > { %v3485_v36 = vmax.f32 %v3229_v47, 0.0  ;;  %v3486_v61 = vmax.f32 %v3230_v55, 0.0  ;;  %v1964_v47 = vmul.f32 %v7046_v63, %v7801_v56  ;;  %v7802_v55 = vld [vmem:[#allocation170_spill] sm:$0xff] }
 0x443   : > { %v2815_v62 = vpop.permute.xlu1 %2814  ;;  %v2819_v45 = vpop.permute.xlu0 %2818  ;;  %v1963_v21 = vmul.f32 %v7046_v63, %v7802_v55 }
 0x444   : > { %3741 = vst [vmem:[%s6024_s18 + $0x640] sm:$0xff] %v3485_v36  ;;  %3742 = vst [vmem:[%s6024_s18 + $0x648] sm:$0xff] %v3486_v61  ;;  %v3231_v46 = vadd.f32 %v2815_v62, %v1951_v35  ;;  %v3232_v13 = vadd.f32 %v2819_v45, %v1952_v39  ;;  %v7803_v45 = vld [vmem:[#allocation171_spill] sm:$0xff] }
 0x446   : > { %v3487_v44 = vmax.f32 %v3231_v46, 0.0  ;;  %v3488_v40 = vmax.f32 %v3232_v13, 0.0  ;;  %v1966_v46 = vmul.f32 %v7046_v63, %v7803_v45  ;;  %v7804_v13 = vld [vmem:[#allocation172_spill] sm:$0xff] }
 0x447   : > { %v2823_v15 = vpop.permute.xlu1 %2822  ;;  %v2827_v3 = vpop.permute.xlu0 %2826  ;;  %v1965_v14 = vmul.f32 %v7046_v63, %v7804_v13 }
 0x448   : > { %3743 = vst [vmem:[%s6024_s18 + $0x650] sm:$0xff] %v3487_v44  ;;  %3744 = vst [vmem:[%s6024_s18 + $0x658] sm:$0xff] %v3488_v40  ;;  %v3233_v4 = vadd.f32 %v2823_v15, %v1953_v43  ;;  %v3234_v16 = vadd.f32 %v2827_v3, %v1954_v33  ;;  %v7805_v3 = vld [vmem:[#allocation173_spill] sm:$0xff] }
 0x44a   : > { %v3489_v52 = vmax.f32 %v3233_v4, 0.0  ;;  %v3490_v6 = vmax.f32 %v3234_v16, 0.0  ;;  %v1968_v4 = vmul.f32 %v7046_v63, %v7805_v3  ;;  %v7806_v16 = vld [vmem:[#allocation174_spill] sm:$0xff] }
 0x44b   : > { %v2831_v32 = vpop.permute.xlu1 %2830  ;;  %v2835_v25 = vpop.permute.xlu0 %2834  ;;  %v1967_v2 = vmul.f32 %v7046_v63, %v7806_v16 }
 0x44c   : > { %3745 = vst [vmem:[%s6024_s18 + $0x660] sm:$0xff] %v3489_v52  ;;  %3746 = vst [vmem:[%s6024_s18 + $0x668] sm:$0xff] %v3490_v6  ;;  %v3235_v26 = vadd.f32 %v2831_v32, %v1955_v51  ;;  %v3236_v11 = vadd.f32 %v2835_v25, %v1956_v49  ;;  %v7807_v25 = vld [vmem:[#allocation175_spill] sm:$0xff] }
 0x44e   : > { %v3491_v60 = vmax.f32 %v3235_v26, 0.0  ;;  %v3492_v9 = vmax.f32 %v3236_v11, 0.0  ;;  %v1970_v26 = vmul.f32 %v7046_v63, %v7807_v25  ;;  %v7808_v11 = vld [vmem:[#allocation176_spill] sm:$0xff] }
 0x44f   : > { %v2839_v10 = vpop.permute.xlu1 %2838  ;;  %v2843_v53 = vpop.permute.xlu0 %2842  ;;  %v1969_v12 = vmul.f32 %v7046_v63, %v7808_v11 }
 0x450   : > { %3747 = vst [vmem:[%s6024_s18 + $0x670] sm:$0xff] %v3491_v60  ;;  %3748 = vst [vmem:[%s6024_s18 + $0x678] sm:$0xff] %v3492_v9  ;;  %v3237_v54 = vadd.f32 %v2839_v10, %v1957_v59  ;;  %v3238_v17 = vadd.f32 %v2843_v53, %v1958_v37  ;;  %v7809_v53 = vld [vmem:[#allocation177_spill] sm:$0xff] }
 0x452   : > { %v3493_v8 = vmax.f32 %v3237_v54, 0.0  ;;  %v3494_v0 = vmax.f32 %v3238_v17, 0.0  ;;  %v1972_v54 = vmul.f32 %v7046_v63, %v7809_v53  ;;  %v7810_v17 = vld [vmem:[#allocation178_spill] sm:$0xff] }
 0x453   : > { %v2847_v31 = vpop.permute.xlu1 %2846  ;;  %v2851_v48 = vpop.permute.xlu0 %2850  ;;  %v1971_v18 = vmul.f32 %v7046_v63, %v7810_v17 }
 0x454   : > { %3749 = vst [vmem:[%s6024_s18 + $0x680] sm:$0xff] %v3493_v8  ;;  %3750 = vst [vmem:[%s6024_s18 + $0x688] sm:$0xff] %v3494_v0  ;;  %v3239_v1 = vadd.f32 %v2847_v31, %v1959_v7  ;;  %v3240_v41 = vadd.f32 %v2851_v48, %v1960_v19  ;;  %v7811_v48 = vld [vmem:[#allocation179_spill] sm:$0xff] }
 0x456   : > { %v3495_v24 = vmax.f32 %v3239_v1, 0.0  ;;  %v3496_v27 = vmax.f32 %v3240_v41, 0.0  ;;  %v1974_v1 = vmul.f32 %v7046_v63, %v7811_v48  ;;  %v7812_v41 = vld [vmem:[#allocation180_spill] sm:$0xff] }
 0x457   : > { %v2855_v28 = vpop.permute.xlu1 %2854  ;;  %v2859_v29 = vpop.permute.xlu0 %2858  ;;  %v1973_v42 = vmul.f32 %v7046_v63, %v7812_v41 }
 0x458   : > { %3751 = vst [vmem:[%s6024_s18 + $0x690] sm:$0xff] %v3495_v24  ;;  %3752 = vst [vmem:[%s6024_s18 + $0x698] sm:$0xff] %v3496_v27  ;;  %v3241_v30 = vadd.f32 %v2855_v28, %v1961_v23  ;;  %v3242_v5 = vadd.f32 %v2859_v29, %v1962_v57  ;;  %v7813_v29 = vld [vmem:[#allocation181_spill] sm:$0xff] }
 0x45a   : > { %v3497_v39 = vmax.f32 %v3241_v30, 0.0  ;;  %v3498_v22 = vmax.f32 %v3242_v5, 0.0  ;;  %v1976_v30 = vmul.f32 %v7046_v63, %v7813_v29  ;;  %v7814_v5 = vld [vmem:[#allocation182_spill] sm:$0xff] }
 0x45b   : > { %v2863_v35 = vpop.permute.xlu1 %2862  ;;  %v2867_v36 = vpop.permute.xlu0 %2866  ;;  %v1975_v56 = vmul.f32 %v7046_v63, %v7814_v5 }
 0x45c   : > { %3753 = vst [vmem:[%s6024_s18 + $0x6a0] sm:$0xff] %v3497_v39  ;;  %3754 = vst [vmem:[%s6024_s18 + $0x6a8] sm:$0xff] %v3498_v22  ;;  %v3243_v61 = vadd.f32 %v2863_v35, %v1963_v21  ;;  %v3244_v62 = vadd.f32 %v2867_v36, %v1964_v47  ;;  %v7815_v36 = vld [vmem:[#allocation183_spill] sm:$0xff] }
 0x45e   : > { %v3499_v33 = vmax.f32 %v3243_v61, 0.0  ;;  %v3500_v34 = vmax.f32 %v3244_v62, 0.0  ;;  %v1978_v61 = vmul.f32 %v7046_v63, %v7815_v36  ;;  %v7816_v62 = vld [vmem:[#allocation184_spill] sm:$0xff] }
 0x45f   : > { %v2871_v43 = vpop.permute.xlu1 %2870  ;;  %v2875_v44 = vpop.permute.xlu0 %2874  ;;  %v1977_v45 = vmul.f32 %v7046_v63, %v7816_v62 }
 0x460   : > { %3755 = vst [vmem:[%s6024_s18 + $0x6b0] sm:$0xff] %v3499_v33  ;;  %3756 = vst [vmem:[%s6024_s18 + $0x6b8] sm:$0xff] %v3500_v34  ;;  %v3245_v40 = vadd.f32 %v2871_v43, %v1965_v14  ;;  %v3246_v15 = vadd.f32 %v2875_v44, %v1966_v46  ;;  %v7817_v44 = vld [vmem:[#allocation185_spill] sm:$0xff] }
 0x462   : > { %v3501_v49 = vmax.f32 %v3245_v40, 0.0  ;;  %v3502_v50 = vmax.f32 %v3246_v15, 0.0  ;;  %v1980_v40 = vmul.f32 %v7046_v63, %v7817_v44  ;;  %v7818_v15 = vld [vmem:[#allocation186_spill] sm:$0xff] }
 0x463   : > { %v2879_v51 = vpop.permute.xlu1 %2878  ;;  %v2883_v52 = vpop.permute.xlu0 %2882  ;;  %v1979_v3 = vmul.f32 %v7046_v63, %v7818_v15 }
 0x464   : > { %3757 = vst [vmem:[%s6024_s18 + $0x6c0] sm:$0xff] %v3501_v49  ;;  %3758 = vst [vmem:[%s6024_s18 + $0x6c8] sm:$0xff] %v3502_v50  ;;  %v3247_v6 = vadd.f32 %v2879_v51, %v1967_v2  ;;  %v3248_v32 = vadd.f32 %v2883_v52, %v1968_v4  ;;  %v7819_v52 = vld [vmem:[#allocation187_spill] sm:$0xff] }
 0x466   : > { %v3503_v37 = vmax.f32 %v3247_v6, 0.0  ;;  %v3504_v38 = vmax.f32 %v3248_v32, 0.0  ;;  %v1982_v6 = vmul.f32 %v7046_v63, %v7819_v52  ;;  %v7820_v32 = vld [vmem:[#allocation188_spill] sm:$0xff] }
 0x467   : > { %v2887_v59 = vpop.permute.xlu1 %2886  ;;  %v2891_v60 = vpop.permute.xlu0 %2890  ;;  %v1981_v25 = vmul.f32 %v7046_v63, %v7820_v32 }
 0x468   : > { %3759 = vst [vmem:[%s6024_s18 + $0x6d0] sm:$0xff] %v3503_v37  ;;  %3760 = vst [vmem:[%s6024_s18 + $0x6d8] sm:$0xff] %v3504_v38  ;;  %v3249_v9 = vadd.f32 %v2887_v59, %v1969_v12  ;;  %v3250_v10 = vadd.f32 %v2891_v60, %v1970_v26  ;;  %v7821_v60 = vld [vmem:[#allocation189_spill] sm:$0xff] }
 0x46a   : > { %v3505_v19 = vmax.f32 %v3249_v9, 0.0  ;;  %v3506_v20 = vmax.f32 %v3250_v10, 0.0  ;;  %v1984_v9 = vmul.f32 %v7046_v63, %v7821_v60  ;;  %v7822_v10 = vld [vmem:[#allocation190_spill] sm:$0xff] }
 0x46b   : > { %v2895_v7 = vpop.permute.xlu1 %2894  ;;  %v2899_v8 = vpop.permute.xlu0 %2898  ;;  %v1983_v53 = vmul.f32 %v7046_v63, %v7822_v10 }
 0x46c   : > { %3761 = vst [vmem:[%s6024_s18 + $0x6e0] sm:$0xff] %v3505_v19  ;;  %3762 = vst [vmem:[%s6024_s18 + $0x6e8] sm:$0xff] %v3506_v20  ;;  %v3251_v0 = vadd.f32 %v2895_v7, %v1971_v18  ;;  %v3252_v31 = vadd.f32 %v2899_v8, %v1972_v54  ;;  %v7823_v8 = vld [vmem:[#allocation191_spill] sm:$0xff] }
 0x46e   : > { %v3507_v57 = vmax.f32 %v3251_v0, 0.0  ;;  %v3508_v58 = vmax.f32 %v3252_v31, 0.0  ;;  %v1986_v0 = vmul.f32 %v7046_v63, %v7823_v8  ;;  %v7824_v31 = vld [vmem:[#allocation192_spill] sm:$0xff] }
 0x46f   : > { %v2903_v23 = vpop.permute.xlu1 %2902  ;;  %v2907_v24 = vpop.permute.xlu0 %2906  ;;  %v1985_v48 = vmul.f32 %v7046_v63, %v7824_v31 }
 0x470   : > { %3763 = vst [vmem:[%s6024_s18 + $0x6f0] sm:$0xff] %v3507_v57  ;;  %3764 = vst [vmem:[%s6024_s18 + $0x6f8] sm:$0xff] %v3508_v58  ;;  %v3253_v27 = vadd.f32 %v2903_v23, %v1973_v42  ;;  %v3254_v28 = vadd.f32 %v2907_v24, %v1974_v1  ;;  %v7825_v24 = vld [vmem:[#allocation193_spill] sm:$0xff] }
 0x472   : > { %v3509_v47 = vmax.f32 %v3253_v27, 0.0  ;;  %v3510_v55 = vmax.f32 %v3254_v28, 0.0  ;;  %v1988_v27 = vmul.f32 %v7046_v63, %v7825_v24  ;;  %v7826_v28 = vld [vmem:[#allocation194_spill] sm:$0xff] }
 0x473   : > { %v2911_v21 = vpop.permute.xlu1 %2910  ;;  %v2915_v39 = vpop.permute.xlu0 %2914  ;;  %v1987_v29 = vmul.f32 %v7046_v63, %v7826_v28 }
 0x474   : > { %3765 = vst [vmem:[%s6024_s18 + $0x700] sm:$0xff] %v3509_v47  ;;  %3766 = vst [vmem:[%s6024_s18 + $0x708] sm:$0xff] %v3510_v55  ;;  %v3255_v22 = vadd.f32 %v2911_v21, %v1975_v56  ;;  %v3256_v35 = vadd.f32 %v2915_v39, %v1976_v30  ;;  %v7827_v39 = vld [vmem:[#allocation195_spill] sm:$0xff] }
 0x476   : > { %v3511_v46 = vmax.f32 %v3255_v22, 0.0  ;;  %v3512_v13 = vmax.f32 %v3256_v35, 0.0  ;;  %v1990_v22 = vmul.f32 %v7046_v63, %v7827_v39  ;;  %v7828_v35 = vld [vmem:[#allocation196_spill] sm:$0xff] }
 0x477   : > { %v2919_v14 = vpop.permute.xlu1 %2918  ;;  %v2923_v33 = vpop.permute.xlu0 %2922  ;;  %v1989_v36 = vmul.f32 %v7046_v63, %v7828_v35 }
 0x478   : > { %3767 = vst [vmem:[%s6024_s18 + $0x710] sm:$0xff] %v3511_v46  ;;  %3768 = vst [vmem:[%s6024_s18 + $0x718] sm:$0xff] %v3512_v13  ;;  %v3257_v34 = vadd.f32 %v2919_v14, %v1977_v45  ;;  %v3258_v43 = vadd.f32 %v2923_v33, %v1978_v61  ;;  %v7829_v33 = vld [vmem:[#allocation197_spill] sm:$0xff] }
 0x47a   : > { %v3513_v4 = vmax.f32 %v3257_v34, 0.0  ;;  %v3514_v16 = vmax.f32 %v3258_v43, 0.0  ;;  %v1992_v34 = vmul.f32 %v7046_v63, %v7829_v33  ;;  %v7830_v43 = vld [vmem:[#allocation198_spill] sm:$0xff] }
 0x47b   : > { %v2927_v2 = vpop.permute.xlu1 %2926  ;;  %v2931_v49 = vpop.permute.xlu0 %2930  ;;  %v1991_v44 = vmul.f32 %v7046_v63, %v7830_v43 }
 0x47c   : > { %3769 = vst [vmem:[%s6024_s18 + $0x720] sm:$0xff] %v3513_v4  ;;  %3770 = vst [vmem:[%s6024_s18 + $0x728] sm:$0xff] %v3514_v16  ;;  %v3259_v50 = vadd.f32 %v2927_v2, %v1979_v3  ;;  %v3260_v51 = vadd.f32 %v2931_v49, %v1980_v40  ;;  %v7831_v49 = vld [vmem:[#allocation199_spill] sm:$0xff] }
 0x47e   : > { %v3515_v26 = vmax.f32 %v3259_v50, 0.0  ;;  %v3516_v11 = vmax.f32 %v3260_v51, 0.0  ;;  %v1994_v50 = vmul.f32 %v7046_v63, %v7831_v49  ;;  %v7832_v51 = vld [vmem:[#allocation200_spill] sm:$0xff] }
 0x47f   : > { %v2935_v12 = vpop.permute.xlu1 %2934  ;;  %v2939_v37 = vpop.permute.xlu0 %2938  ;;  %v1993_v52 = vmul.f32 %v7046_v63, %v7832_v51 }
 0x480   : > { %3771 = vst [vmem:[%s6024_s18 + $0x730] sm:$0xff] %v3515_v26  ;;  %3772 = vst [vmem:[%s6024_s18 + $0x738] sm:$0xff] %v3516_v11  ;;  %v3261_v38 = vadd.f32 %v2935_v12, %v1981_v25  ;;  %v3262_v59 = vadd.f32 %v2939_v37, %v1982_v6  ;;  %v7833_v37 = vld [vmem:[#allocation201_spill] sm:$0xff] }
 0x482   : > { %v3517_v54 = vmax.f32 %v3261_v38, 0.0  ;;  %v3518_v17 = vmax.f32 %v3262_v59, 0.0  ;;  %v1996_v38 = vmul.f32 %v7046_v63, %v7833_v37  ;;  %v7834_v59 = vld [vmem:[#allocation202_spill] sm:$0xff] }
 0x483   : > { %v2943_v18 = vpop.permute.xlu1 %2942  ;;  %v2947_v19 = vpop.permute.xlu0 %2946  ;;  %v1995_v60 = vmul.f32 %v7046_v63, %v7834_v59 }
 0x484   : > { %3773 = vst [vmem:[%s6024_s18 + $0x740] sm:$0xff] %v3517_v54  ;;  %3774 = vst [vmem:[%s6024_s18 + $0x748] sm:$0xff] %v3518_v17  ;;  %v3263_v20 = vadd.f32 %v2943_v18, %v1983_v53  ;;  %v3264_v7 = vadd.f32 %v2947_v19, %v1984_v9  ;;  %v7835_v19 = vld [vmem:[#allocation203_spill] sm:$0xff] }
 0x486   : > { %v3519_v1 = vmax.f32 %v3263_v20, 0.0  ;;  %v3520_v41 = vmax.f32 %v3264_v7, 0.0  ;;  %v1998_v20 = vmul.f32 %v7046_v63, %v7835_v19  ;;  %v7836_v7 = vld [vmem:[#allocation204_spill] sm:$0xff] }
 0x487   : > { %v2951_v42 = vpop.permute.xlu1 %2950  ;;  %v2955_v57 = vpop.permute.xlu0 %2954  ;;  %v1997_v8 = vmul.f32 %v7046_v63, %v7836_v7 }
 0x488   : > { %3775 = vst [vmem:[%s6024_s18 + $0x750] sm:$0xff] %v3519_v1  ;;  %3776 = vst [vmem:[%s6024_s18 + $0x758] sm:$0xff] %v3520_v41  ;;  %v3265_v58 = vadd.f32 %v2951_v42, %v1985_v48  ;;  %v3266_v23 = vadd.f32 %v2955_v57, %v1986_v0  ;;  %v7837_v57 = vld [vmem:[#allocation205_spill] sm:$0xff] }
 0x48a   : > { %v3521_v30 = vmax.f32 %v3265_v58, 0.0  ;;  %v3522_v5 = vmax.f32 %v3266_v23, 0.0  ;;  %v2000_v58 = vmul.f32 %v7046_v63, %v7837_v57  ;;  %v7838_v23 = vld [vmem:[#allocation206_spill] sm:$0xff] }
 0x48b   : > { %v2959_v56 = vpop.permute.xlu1 %2958  ;;  %v2963_v47 = vpop.permute.xlu0 %2962  ;;  %v1999_v24 = vmul.f32 %v7046_v63, %v7838_v23 }
 0x48c   : > { %3777 = vst [vmem:[%s6024_s18 + $0x760] sm:$0xff] %v3521_v30  ;;  %3778 = vst [vmem:[%s6024_s18 + $0x768] sm:$0xff] %v3522_v5  ;;  %v3267_v55 = vadd.f32 %v2959_v56, %v1987_v29  ;;  %v3268_v21 = vadd.f32 %v2963_v47, %v1988_v27  ;;  %v7839_v47 = vld [vmem:[#allocation207_spill] sm:$0xff] }
 0x48e   : > { %v3523_v61 = vmax.f32 %v3267_v55, 0.0  ;;  %v3524_v62 = vmax.f32 %v3268_v21, 0.0  ;;  %v2002_v55 = vmul.f32 %v7046_v63, %v7839_v47  ;;  %v7840_v21 = vld [vmem:[#allocation208_spill] sm:$0xff] }
 0x48f   : > { %v2967_v45 = vpop.permute.xlu1 %2966  ;;  %v2971_v46 = vpop.permute.xlu0 %2970  ;;  %v2001_v39 = vmul.f32 %v7046_v63, %v7840_v21 }
 0x490   : > { %3779 = vst [vmem:[%s6024_s18 + $0x770] sm:$0xff] %v3523_v61  ;;  %3780 = vst [vmem:[%s6024_s18 + $0x778] sm:$0xff] %v3524_v62  ;;  %v3269_v13 = vadd.f32 %v2967_v45, %v1989_v36  ;;  %v3270_v14 = vadd.f32 %v2971_v46, %v1990_v22  ;;  %v7841_v46 = vld [vmem:[#allocation209_spill] sm:$0xff] }
 0x492   : > { %v3525_v40 = vmax.f32 %v3269_v13, 0.0  ;;  %v3526_v15 = vmax.f32 %v3270_v14, 0.0  ;;  %v2004_v13 = vmul.f32 %v7046_v63, %v7841_v46  ;;  %v7842_v14 = vld [vmem:[#allocation210_spill] sm:$0xff] }
 0x493   : > { %v2975_v3 = vpop.permute.xlu1 %2974  ;;  %v2979_v4 = vpop.permute.xlu0 %2978  ;;  %v2003_v33 = vmul.f32 %v7046_v63, %v7842_v14 }
 0x494   : > { %3781 = vst [vmem:[%s6024_s18 + $0x780] sm:$0xff] %v3525_v40  ;;  %3782 = vst [vmem:[%s6024_s18 + $0x788] sm:$0xff] %v3526_v15  ;;  %v3271_v16 = vadd.f32 %v2975_v3, %v1991_v44  ;;  %v3272_v2 = vadd.f32 %v2979_v4, %v1992_v34 }
 0x496   : > { %v3527_v6 = vmax.f32 %v3271_v16, 0.0  ;;  %v3528_v32 = vmax.f32 %v3272_v2, 0.0 }
 0x497   : > { %v2983_v25 = vpop.permute.xlu1 %2982  ;;  %v2987_v26 = vpop.permute.xlu0 %2986 }
 0x498   : > { %3783 = vst [vmem:[%s6024_s18 + $0x790] sm:$0xff] %v3527_v6  ;;  %3784 = vst [vmem:[%s6024_s18 + $0x798] sm:$0xff] %v3528_v32  ;;  %v3273_v11 = vadd.f32 %v2983_v25, %v1993_v52  ;;  %v3274_v12 = vadd.f32 %v2987_v26, %v1994_v50 }
 0x49a   : > { %v3529_v9 = vmax.f32 %v3273_v11, 0.0  ;;  %v3530_v10 = vmax.f32 %v3274_v12, 0.0 }
 0x49b   : > { %v2991_v53 = vpop.permute.xlu1 %2990  ;;  %v2995_v54 = vpop.permute.xlu0 %2994 }
 0x49c   : > { %3785 = vst [vmem:[%s6024_s18 + $0x7a0] sm:$0xff] %v3529_v9  ;;  %3786 = vst [vmem:[%s6024_s18 + $0x7a8] sm:$0xff] %v3530_v10  ;;  %v3275_v17 = vadd.f32 %v2991_v53, %v1995_v60  ;;  %v3276_v18 = vadd.f32 %v2995_v54, %v1996_v38 }
 0x49e   : > { %v3531_v0 = vmax.f32 %v3275_v17, 0.0  ;;  %v3532_v31 = vmax.f32 %v3276_v18, 0.0 }
 0x49f   : > { %v2999_v48 = vpop.permute.xlu1 %2998  ;;  %v3003_v1 = vpop.permute.xlu0 %3002 }
 0x4a0   : > { %3787 = vst [vmem:[%s6024_s18 + $0x7b0] sm:$0xff] %v3531_v0  ;;  %3788 = vst [vmem:[%s6024_s18 + $0x7b8] sm:$0xff] %v3532_v31  ;;  %v3277_v41 = vadd.f32 %v2999_v48, %v1997_v8  ;;  %v3278_v42 = vadd.f32 %v3003_v1, %v1998_v20 }
 0x4a2   : > { %v3533_v27 = vmax.f32 %v3277_v41, 0.0  ;;  %v3534_v28 = vmax.f32 %v3278_v42, 0.0 }
 0x4a3   : > { %v3007_v29 = vpop.permute.xlu1 %3006  ;;  %v3011_v30 = vpop.permute.xlu0 %3010 }
 0x4a4   : > { %3789 = vst [vmem:[%s6024_s18 + $0x7c0] sm:$0xff] %v3533_v27  ;;  %3790 = vst [vmem:[%s6024_s18 + $0x7c8] sm:$0xff] %v3534_v28  ;;  %v3279_v5 = vadd.f32 %v3007_v29, %v1999_v24  ;;  %v3280_v56 = vadd.f32 %v3011_v30, %v2000_v58 }
 0x4a6   : > { %v3535_v22 = vmax.f32 %v3279_v5, 0.0  ;;  %v3536_v35 = vmax.f32 %v3280_v56, 0.0 }
 0x4a7   : > { %v3015_v36 = vpop.permute.xlu1 %3014  ;;  %v3019_v61 = vpop.permute.xlu0 %3018 }
 0x4a8   : > { %3791 = vst [vmem:[%s6024_s18 + $0x7d0] sm:$0xff] %v3535_v22  ;;  %3792 = vst [vmem:[%s6024_s18 + $0x7d8] sm:$0xff] %v3536_v35  ;;  %v3281_v62 = vadd.f32 %v3015_v36, %v2001_v39  ;;  %v3282_v45 = vadd.f32 %v3019_v61, %v2002_v55 }
 0x4aa   : > { %v3537_v34 = vmax.f32 %v3281_v62, 0.0  ;;  %v3538_v43 = vmax.f32 %v3282_v45, 0.0 }
 0x4ab   : > { %v3023_v44 = vpop.permute.xlu1 %3022  ;;  %v3027_v40 = vpop.permute.xlu0 %3026 }
 0x4ac   : > { %3793 = vst [vmem:[%s6024_s18 + $0x7e0] sm:$0xff] %v3537_v34  ;;  %3794 = vst [vmem:[%s6024_s18 + $0x7e8] sm:$0xff] %v3538_v43  ;;  %v3283_v15 = vadd.f32 %v3023_v44, %v2003_v33  ;;  %v3284_v3 = vadd.f32 %v3027_v40, %v2004_v13 }
 0x4ae   : > { %v3539_v63 = vmax.f32 %v3283_v15, 0.0  ;;  %v3540_v4 = vmax.f32 %v3284_v3, 0.0 }
 0x4b0   : > { %3795 = vst [vmem:[%s6024_s18 + $0x7f0] sm:$0xff] %v3539_v63  ;;  %3796 = vst [vmem:[%s6024_s18 + $0x7f8] sm:$0xff] %v3540_v4 }
 0x4b1   : > { %4321 = shalt.err (!%p4318_p5)
}
 0x4b2   : > { %s4322_s18 = scalar_lea.hbm %s7372_s22, 32768  ;;  %s4326_s4 = scalar_lea.hbm %s7431_s2, 131072 }
 0x4b3   : > { %p4323_p6 = scmp.ne.s32.totalorder %s7372_s22, %s4322_s18  ;;  %p4327_p10 = scmp.lt.s32.totalorder %s7372_s22, %s7431_s2 }
 0x4b4   : > { %p4328_p11 = scmp.lt.s32.totalorder %s4326_s4, %s4322_s18 }
 0x4b5   : > { %p4324_p7 = pnand %p4323_p6, %p4493_p9 }
 0x4b6   : > { %p4329_p13 = por %p4328_p11, %p4327_p10 }
 0x4b7   : > { %p4325_p3 = pneg %p4324_p7 }
 0x4b9   : > { %p4330_p8 = pnand %p4329_p13, %p4325_p3 }
 0x4bb   : > { %4333 = shalt.err (!%p4330_p8)
}
 0x4bc   : > { %s4410_s13 = smov 128   ;;  %s4411_s8 = smov 256  }
 0x4bd   : > { %s4412_s17 = smov 8  }
 0x4be   : > { %3937 = dma.vmem_to_hbm [thread:$0]  (%p4493_p9), %s7374_s12, 32768, %s7372_s22, %s3798_s21, %s4410_s13, %s4411_s8, %s4412_s17  }
 0x4bf PF: > { %p3948_p12 = scmp.ge.s32.totalorder %s4404_s16, 2  ;;  %s3830_s24 = sand.u32 1, %s4376_s9  }
 0x4c0   : > { %p7843_p0 = scmp.ne.s32.totalorder %s7435_s28, 0  ;;  %s3831_s26 = scalar_lea.sflag [#allocation4], %s3830_s24 }
 0x4c2   : > { %p3944_p1 = pnand %p3948_p12, %p7843_p0 }
 0x4c4   : > { %p3945_p2 = pneg %p3944_p1 }
 0x4c6   : > { %4371 = dma.done.wait (%p3945_p2), %s3831_s26, 32768  }
 0x4c7   : > { %4373 = vsyncadd (%p3945_p2), %s3831_s26, 4294934528  ;;  %s18_s16 = sadd.s32 1, %s4404_s16   ;;  %s7844_s9 = smov %s4380_s10 }
 0x4c8   : > { %p15_p4 = scmp.ge.s32.totalorder %s18_s16, 6   ;;  %s7845_s10 = smov %s4384_s11 }
 0x4c9   : > { %s7846_s11 = smov %s4506_s30  ;;  %s7847_s12 = smov %s4396_s14 }
 0x4ca   : > { %s7848_s13 = smov %s4400_s15  ;;  %s7849_s14 = smov %s7852_s19 }
 0x4cb   : > { %s7850_s15 = smov %s7856_s20  ;;  %17 = sbr.rel (!%p15_p4) target bundleno = 7 (0x7), region = 76 }
 0x4d0   :  { %3836 = vsyncpa [#allocation3], 1 }
 0x4d1   :  { %3838 = vsyncpa [#allocation3 + $0x1], 1 }
 0x4d2   :  { %3839 = vsyncpa [#allocation4], 1 }
 0x4d3   :  { %3841 = vsyncpa [#allocation4 + $0x1], 1 }

</bundles_post_ra>
